<compile_context>
chip_gen: v7x
topology: tpu7x:2x2x1
jax: 0.10.0
libtpu: 0.0.40
codegen_flags: <defaults>
</compile_context>

<pallas_src>
import functools

import jax
import jax.numpy as jnp
from jax.experimental import pallas as pl
from jax.experimental.pallas import tpu as pltpu

HIGHEST = jax.lax.Precision.HIGHEST


# ----------------------------------------------------------------------------
# Pallas kernel
# ----------------------------------------------------------------------------
def ssl_encoder_kernel(
    c_ref,        # [1, T, Cin_p]    bf16
    w_pre_ref,    # [Cin_p, Hp]      bf16
    b_pre_ref,    # [1, Hp]          f32
    w_in_ref,     # [L, K*Hp, 2*Hp]  bf16  (fused tanh|sigmoid, im2col-ready)
    b_in_ref,     # [L, 1, 2*Hp]     f32
    w_rs_ref,     # [L, Hp, 2*Hp]    bf16  (fused res|skip; last layer res = 0)
    b_rs_ref,     # [L, 1, 2*Hp]     f32
    w_proj_ref,   # [Hp, OUTp]       bf16  (only the `m` half of proj)
    b_proj_ref,   # [1, OUTp]        f32
    m_ref,        # [1, T, OUTp]     f32
    x_ref,        # scratch [T, Hp]            f32  (residual stream)
    skip_ref,     # scratch [T, Hp]            f32  (skip accumulator)
    xpad_ref,     # scratch [T_slab, Hp]       bf16 (zero-haloed conv slab)
    *,
    n_layers,
    kernel_size,
    dilation_rate,
    hidden_p,
    T,
    max_pad,
):
    Hp = hidden_p
    K = kernel_size

    # pre 1x1 conv (x_mask == 1 since x_lengths is None)
    x_ref[...] = (
        jnp.dot(c_ref[0], w_pre_ref[...], preferred_element_type=jnp.float32)
        + b_pre_ref[...]
    )
    skip_ref[...] = jnp.zeros_like(skip_ref)
    xpad_ref[...] = jnp.zeros_like(xpad_ref)   # halos stay zero for every layer

    for i in range(n_layers):
        d = dilation_rate ** i
        pad = (kernel_size * d - d) // 2

        # refresh the centre of the zero-haloed slab with the current x (bf16)
        xpad_ref[pl.ds(max_pad, T), :] = x_ref[...].astype(xpad_ref.dtype)

        # im2col: K statically-shifted views -> [T, K*Hp] slab, single matmul.
        # Column offsets are multiples of Hp (lane-aligned, Hp % 128 == 0).
        taps = [xpad_ref[pl.ds(max_pad + k * d - pad, T), :]
                for k in range(K)]
        slab = jnp.concatenate(taps, axis=1)                   # [T, K*Hp] bf16
        pre = (
            jnp.dot(slab, w_in_ref[i], preferred_element_type=jnp.float32)
            + b_in_ref[i]
        )  # [T, 2*Hp] = [tanh half | sigmoid half]

        # fused_add_tanh_sigmoid_multiply (g is None -> g_l == 0); Dropout(0)=id
        acts = jnp.tanh(pre[:, :Hp]) * jax.nn.sigmoid(pre[:, Hp:])

        rs = (
            jnp.dot(acts.astype(jnp.bfloat16), w_rs_ref[i],
                    preferred_element_type=jnp.float32)
            + b_rs_ref[i]
        )  # [T, 2*Hp] = [res | skip]
        if i < n_layers - 1:
            x_ref[...] = x_ref[...] + rs[:, :Hp]     # * x_mask (== 1)
        skip_ref[...] = skip_ref[...] + rs[:, Hp:]

    # proj 1x1 conv; only the `m` half is needed (forward returns m only)
    m = (
        jnp.dot(skip_ref[...].astype(jnp.bfloat16), w_proj_ref[...],
                preferred_element_type=jnp.float32)
        + b_proj_ref[...]
    )
    m_ref[0] = m.astype(m_ref.dtype)


# ----------------------------------------------------------------------------
# Wrapper: parameter packing (fused / zero-padded / bf16) + pallas_call
# ----------------------------------------------------------------------------
def _rup(n, m):
    return ((n + m - 1) // m) * m


def ssl_encoder_forward(c_ncl, params, *, n_layers, kernel_size, dilation_rate,
                        hidden, out_channels):
    """c_ncl: [B, Cin, T] (PyTorch conv layout). Returns m: [B, OUT, T]."""
    B, Cin, T = c_ncl.shape
    H, OUT, L, K = hidden, out_channels, n_layers, kernel_size
    Cin_p, Hp, OUTp = _rup(Cin, 128), _rup(H, 128), _rup(OUT, 128)
    d_max = dilation_rate ** (L - 1)
    max_pad = (K * d_max - d_max) // 2
    T_slab = _rup(T + 2 * max_pad, 8)      # sublane-aligned haloed slab extent

    f32, bf16 = jnp.float32, jnp.bfloat16

    # --- pack PyTorch-shaped weights into fused, zero-padded kernel layouts ---
    w_pre = jnp.zeros((Cin_p, Hp), f32).at[:Cin, :H].set(
        params["pre_w"][:, :, 0].T)
    b_pre = jnp.zeros((1, Hp), f32).at[0, :H].set(params["pre_b"])

    w_in = jnp.zeros((L, K * Hp, 2 * Hp), f32)
    b_in = jnp.zeros((L, 1, 2 * Hp), f32)
    for i in range(L):
        Wi, bi = params["in_w"][i], params["in_b"][i]        # [2H, H, K], [2H]
        for k in range(K):
            w_in = w_in.at[i, k * Hp:k * Hp + H, :H].set(Wi[:H, :, k].T)
            w_in = w_in.at[i, k * Hp:k * Hp + H, Hp:Hp + H].set(Wi[H:, :, k].T)
        b_in = b_in.at[i, 0, :H].set(bi[:H])
        b_in = b_in.at[i, 0, Hp:Hp + H].set(bi[H:])

    w_rs = jnp.zeros((L, Hp, 2 * Hp), f32)
    b_rs = jnp.zeros((L, 1, 2 * Hp), f32)
    for i in range(L):
        Wi, bi = params["rs_w"][i], params["rs_b"][i]
        if i < L - 1:                                        # [2H, H]: res|skip
            w_rs = w_rs.at[i, :H, :H].set(Wi[:H].T)
            w_rs = w_rs.at[i, :H, Hp:Hp + H].set(Wi[H:].T)
            b_rs = b_rs.at[i, 0, :H].set(bi[:H])
            b_rs = b_rs.at[i, 0, Hp:Hp + H].set(bi[H:])
        else:                                                # [H, H]: skip only
            w_rs = w_rs.at[i, :H, Hp:Hp + H].set(Wi.T)
            b_rs = b_rs.at[i, 0, Hp:Hp + H].set(bi)

    w_proj = jnp.zeros((Hp, OUTp), f32).at[:H, :OUT].set(
        params["proj_w"][:OUT, :, 0].T)
    b_proj = jnp.zeros((1, OUTp), f32).at[0, :OUT].set(params["proj_b"][:OUT])

    # bf16 matmul operands (f32 accumulation happens in the kernel).
    w_pre, w_in, w_rs, w_proj = tuple(
        w.astype(bf16) for w in (w_pre, w_in, w_rs, w_proj))

    # [B, T, Cin_p] bf16, zero-padded channels.
    c_btc = jnp.transpose(c_ncl, (0, 2, 1))
    c_btc = jnp.pad(c_btc, ((0, 0), (0, 0), (0, Cin_p - Cin))).astype(bf16)

    kern = functools.partial(
        ssl_encoder_kernel,
        n_layers=L, kernel_size=K, dilation_rate=dilation_rate,
        hidden_p=Hp, T=T, max_pad=max_pad)

    inputs = (c_btc, w_pre, b_pre, w_in, b_in, w_rs, b_rs, w_proj, b_proj)

    nbytes = lambda a: int(a.size) * a.dtype.itemsize
    flops = 2 * B * T * (Cin_p * Hp + L * K * Hp * 2 * Hp + L * Hp * 2 * Hp
                         + Hp * OUTp)
    bytes_accessed = sum(nbytes(a) for a in inputs) + B * T * OUTp * 4

    # Weights kept VMEM-resident (fine for v5e/v6e/v7x once the scoped limit is
    # raised); scratch = x + skip accumulator + zero-haloed bf16 conv slab,
    # plus double-buffered c / m blocks.
    weight_bytes = sum(nbytes(a) for a in inputs[1:])
    stream_bytes = 2 * (T * Cin_p * 2 + T * OUTp * 4)
    scratch_bytes = 2 * T * Hp * 4 + T_slab * Hp * 2
    vmem_needed = weight_bytes + stream_bytes + scratch_bytes
    vmem_limit = int(min(max(2 * vmem_needed + (4 << 20), 32 << 20), 100 << 20))

    full = lambda shape: pl.BlockSpec(shape, lambda b: (0,) * len(shape))
    m_btc = pl.pallas_call(
        kern,
        out_shape=jax.ShapeDtypeStruct((B, T, OUTp), f32),
        grid_spec=pltpu.PrefetchScalarGridSpec(
            num_scalar_prefetch=0,
            grid=(B,),
            in_specs=[
                pl.BlockSpec((1, T, Cin_p), lambda b: (b, 0, 0)),
                full((Cin_p, Hp)), full((1, Hp)),
                full((L, K * Hp, 2 * Hp)), full((L, 1, 2 * Hp)),
                full((L, Hp, 2 * Hp)), full((L, 1, 2 * Hp)),
                full((Hp, OUTp)), full((1, OUTp)),
            ],
            out_specs=pl.BlockSpec((1, T, OUTp), lambda b: (b, 0, 0)),
            scratch_shapes=[
                pltpu.VMEM((T, Hp), f32),          # residual stream x
                pltpu.VMEM((T, Hp), f32),          # skip accumulator
                pltpu.VMEM((T_slab, Hp), bf16),    # zero-haloed conv slab
            ],
        ),
        compiler_params=pltpu.CompilerParams(
            dimension_semantics=("parallel",),
            vmem_limit_bytes=vmem_limit),
        cost_estimate=pl.CostEstimate(
            flops=flops,
            transcendentals=2 * B * T * Hp * L,
            bytes_accessed=bytes_accessed),
    )(*inputs)

    return jnp.transpose(m_btc[:, :, :OUT], (0, 2, 1))       # [B, OUT, T]


# ----------------------------------------------------------------------------
# Pure-JAX reference (mirrors the PyTorch forward, NCL layout, f32 HIGHEST)
# ----------------------------------------------------------------------------
def reference_forward(c, params, *, n_layers, kernel_size, dilation_rate,
                      hidden, out_channels):
    B, Cin, T = c.shape
    H, L, K = hidden, n_layers, kernel_size
    ee = functools.partial(jnp.einsum, precision=HIGHEST)

    x = ee("oc,bct->bot", params["pre_w"][:, :, 0], c) \
        + params["pre_b"][None, :, None]
    output = jnp.zeros((B, H, T), jnp.float32)
    for i in range(L):
        d = dilation_rate ** i
        pad = (K * d - d) // 2
        x_pad = jnp.pad(x, ((0, 0), (0, 0), (pad, pad)))
        Wi, bi = params["in_w"][i], params["in_b"][i]
        x_in = sum(
            ee("oc,bct->bot", Wi[:, :, k], x_pad[:, :, k * d:k * d + T])
            for k in range(K)
        ) + bi[None, :, None]
        acts = jnp.tanh(x_in[:, :H]) * jax.nn.sigmoid(x_in[:, H:])
        rs = ee("oc,bct->bot", params["rs_w"][i], acts) \
            + params["rs_b"][i][None, :, None]
        if i < L - 1:
            x = x + rs[:, :H]
            output = output + rs[:, H:]
        else:
            output = output + rs
    stats = ee("oc,bct->bot", params["proj_w"][:, :, 0], output) \
        + params["proj_b"][None, :, None]
    return stats[:, :out_channels]


# ----------------------------------------------------------------------------
# main
# ----------------------------------------------------------------------------
if __name__ == "__main__":
    # Small, module-consistent shapes.
    B, T = 2, 16
    SSL_DIM = 32          # stands in for WavLM's 1024-d features
    EMB_DIM = 16          # emb_dim == hidden_channels == out_channels
    N_LAYERS = 4
    KERNEL_SIZE = 5
    DILATION_RATE = 1
    H, OUT = EMB_DIM, EMB_DIM

    key = jax.random.PRNGKey(0)
    keys = iter(jax.random.split(key, 64))
    nrm = lambda shape, s=0.1: s * jax.random.normal(next(keys), shape,
                                                     jnp.float32)

    # PyTorch-shaped parameters (conv1d weight = [out_ch, in_ch, k]).
    params = {
        "pre_w": nrm((H, SSL_DIM, 1)),
        "pre_b": nrm((H,)),
        "in_w": [nrm((2 * H, H, KERNEL_SIZE)) for _ in range(N_LAYERS)],
        "in_b": [nrm((2 * H,)) for _ in range(N_LAYERS)],
        "rs_w": [nrm((2 * H, H)) if i < N_LAYERS - 1 else nrm((H, H))
                 for i in range(N_LAYERS)],
        "rs_b": [nrm((2 * H,)) if i < N_LAYERS - 1 else nrm((H,))
                 for i in range(N_LAYERS)],
        "proj_w": nrm((2 * OUT, H, 1)),
        "proj_b": nrm((2 * OUT,)),
    }

    # SSL feature tensor c (what WavLM would have produced), NCL layout.
    c = jax.random.normal(next(keys), (B, SSL_DIM, T), jnp.float32)

    m = ssl_encoder_forward(
        c, params,
        n_layers=N_LAYERS, kernel_size=KERNEL_SIZE,
        dilation_rate=DILATION_RATE, hidden=H, out_channels=OUT,
    )
    m = jax.block_until_ready(m)

    m_ref = reference_forward(
        c, params,
        n_layers=N_LAYERS, kernel_size=KERNEL_SIZE,
        dilation_rate=DILATION_RATE, hidden=H, out_channels=OUT,
    )
    m_ref = jax.block_until_ready(m_ref)

    assert m.shape == (B, OUT, T), m.shape
    # bf16 MXU inputs (f32 accumulation) vs. the f32 HIGHEST reference.
    assert jnp.allclose(m, m_ref, rtol=5e-2, atol=3e-2), (
        float(jnp.max(jnp.abs(m - m_ref))))
    print("KERNEL_OK")
</pallas_src>

<mosaic_0001>
module attributes {stable_mosaic.version = 11 : i64} {
  func.func @ssl_encoder_kernel(%arg0: i32, %arg1: memref<1x16x128xbf16, #tpu.memory_space<vmem>>, %arg2: memref<128x128xbf16, #tpu.memory_space<vmem>>, %arg3: memref<1x128xf32, #tpu.memory_space<vmem>>, %arg4: memref<4x640x256xbf16, #tpu.memory_space<vmem>>, %arg5: memref<4x1x256xf32, #tpu.memory_space<vmem>>, %arg6: memref<4x128x256xbf16, #tpu.memory_space<vmem>>, %arg7: memref<4x1x256xf32, #tpu.memory_space<vmem>>, %arg8: memref<128x128xbf16, #tpu.memory_space<vmem>>, %arg9: memref<1x128xf32, #tpu.memory_space<vmem>>, %arg10: memref<1x16x128xf32, #tpu.memory_space<vmem>>, %arg11: memref<16x128xf32, #tpu.memory_space<vmem>>, %arg12: memref<16x128xf32, #tpu.memory_space<vmem>>, %arg13: memref<24x128xbf16, #tpu.memory_space<vmem>>) attributes {dimension_semantics = [#tpu.dimension_semantics<parallel>], iteration_bounds = array<i64: 2>, scalar_prefetch = 0 : i64, scratch_operands = 3 : i64, tpu.core_type = #tpu.core_type<tc>, window_params = [{transform_indices = @transform_0, window_bounds = array<i64: 1, 16, 128>}, {pipeline_mode = #tpu.pipeline_mode<synchronous>, transform_indices = @transform_1, window_bounds = array<i64: 128, 128>}, {pipeline_mode = #tpu.pipeline_mode<synchronous>, transform_indices = @transform_2, window_bounds = array<i64: 1, 128>}, {pipeline_mode = #tpu.pipeline_mode<synchronous>, transform_indices = @transform_3, window_bounds = array<i64: 4, 640, 256>}, {pipeline_mode = #tpu.pipeline_mode<synchronous>, transform_indices = @transform_4, window_bounds = array<i64: 4, 1, 256>}, {pipeline_mode = #tpu.pipeline_mode<synchronous>, transform_indices = @transform_5, window_bounds = array<i64: 4, 128, 256>}, {pipeline_mode = #tpu.pipeline_mode<synchronous>, transform_indices = @transform_6, window_bounds = array<i64: 4, 1, 256>}, {pipeline_mode = #tpu.pipeline_mode<synchronous>, transform_indices = @transform_7, window_bounds = array<i64: 128, 128>}, {pipeline_mode = #tpu.pipeline_mode<synchronous>, transform_indices = @transform_8, window_bounds = array<i64: 1, 128>}, {transform_indices = @transform_9, window_bounds = array<i64: 1, 16, 128>}]} {
    %c0 = arith.constant 0 : index
    %c0_0 = arith.constant 0 : index
    %c0_1 = arith.constant 0 : index
    %0 = vector.load %arg1[%c0, %c0_0, %c0_1] : memref<1x16x128xbf16, #tpu.memory_space<vmem>>, vector<1x16x128xbf16>
    %1 = vector.shape_cast %0 : vector<1x16x128xbf16> to vector<16x128xbf16>
    %c0_2 = arith.constant 0 : index
    %c0_3 = arith.constant 0 : index
    %2 = vector.load %arg2[%c0_2, %c0_3] : memref<128x128xbf16, #tpu.memory_space<vmem>>, vector<128x128xbf16>
    %cst = arith.constant dense<0.000000e+00> : vector<16x128xf32>
    %3 = tpu.matmul %1, %2, %cst {dimension_numbers = #tpu.dot_dimension_numbers<[1], [0], [0], [1], [0, 0, 1, 1], [], []>} : vector<16x128xbf16>, vector<128x128xbf16>, vector<16x128xf32> -> vector<16x128xf32>
    %c0_4 = arith.constant 0 : index
    %c0_5 = arith.constant 0 : index
    %4 = vector.load %arg3[%c0_4, %c0_5] : memref<1x128xf32, #tpu.memory_space<vmem>>, vector<1x128xf32>
    %5 = vector.broadcast %4 : vector<1x128xf32> to vector<16x128xf32>
    %6 = arith.addf %3, %5 : vector<16x128xf32>
    %c0_6 = arith.constant 0 : index
    %c0_7 = arith.constant 0 : index
    %7 = vector.load %arg11[%c0_6, %c0_7] : memref<16x128xf32, #tpu.memory_space<vmem>>, vector<16x128xf32>
    tpu.vector_store %arg11[%c0_6, %c0_7], %6 {strides = array<i32>} : memref<16x128xf32, #tpu.memory_space<vmem>>, vector<16x128xf32>,
    %cst_8 = arith.constant 0.000000e+00 : f32
    %8 = vector.broadcast %cst_8 : f32 to vector<16x128xf32>
    %c0_9 = arith.constant 0 : index
    %c0_10 = arith.constant 0 : index
    %9 = vector.load %arg12[%c0_9, %c0_10] : memref<16x128xf32, #tpu.memory_space<vmem>>, vector<16x128xf32>
    tpu.vector_store %arg12[%c0_9, %c0_10], %8 {strides = array<i32>} : memref<16x128xf32, #tpu.memory_space<vmem>>, vector<16x128xf32>,
    %cst_11 = arith.constant 0.000000e+00 : bf16
    %10 = vector.broadcast %cst_11 : bf16 to vector<24x128xbf16>
    %c0_12 = arith.constant 0 : index
    %c0_13 = arith.constant 0 : index
    %11 = vector.load %arg13[%c0_12, %c0_13] : memref<24x128xbf16, #tpu.memory_space<vmem>>, vector<24x128xbf16>
    tpu.vector_store %arg13[%c0_12, %c0_13], %10 {strides = array<i32>} : memref<24x128xbf16, #tpu.memory_space<vmem>>, vector<24x128xbf16>,
    %c0_14 = arith.constant 0 : index
    %c0_15 = arith.constant 0 : index
    %12 = vector.load %arg11[%c0_14, %c0_15] : memref<16x128xf32, #tpu.memory_space<vmem>>, vector<16x128xf32>
    %13 = arith.truncf %12 : vector<16x128xf32> to vector<16x128xbf16>
    %c2 = arith.constant 2 : index
    %c0_16 = arith.constant 0 : index
    %14 = vector.load %arg13[%c2, %c0_16] : memref<24x128xbf16, #tpu.memory_space<vmem>>, vector<16x128xbf16>
    tpu.vector_store %arg13[%c2, %c0_16], %13 {strides = array<i32>} : memref<24x128xbf16, #tpu.memory_space<vmem>>, vector<16x128xbf16>,
    %c0_17 = arith.constant 0 : index
    %c0_18 = arith.constant 0 : index
    %15 = vector.load %arg13[%c0_17, %c0_18] : memref<24x128xbf16, #tpu.memory_space<vmem>>, vector<16x128xbf16>
    %c1 = arith.constant 1 : index
    %c0_19 = arith.constant 0 : index
    %16 = vector.load %arg13[%c1, %c0_19] : memref<24x128xbf16, #tpu.memory_space<vmem>>, vector<16x128xbf16>
    %c2_20 = arith.constant 2 : index
    %c0_21 = arith.constant 0 : index
    %17 = vector.load %arg13[%c2_20, %c0_21] : memref<24x128xbf16, #tpu.memory_space<vmem>>, vector<16x128xbf16>
    %c3 = arith.constant 3 : index
    %c0_22 = arith.constant 0 : index
    %18 = vector.load %arg13[%c3, %c0_22] : memref<24x128xbf16, #tpu.memory_space<vmem>>, vector<16x128xbf16>
    %c4 = arith.constant 4 : index
    %c0_23 = arith.constant 0 : index
    %19 = vector.load %arg13[%c4, %c0_23] : memref<24x128xbf16, #tpu.memory_space<vmem>>, vector<16x128xbf16>
    %20 = tpu.concatenate %15, %16, %17, %18, %19 in 1 : vector<16x128xbf16>, vector<16x128xbf16>, vector<16x128xbf16>, vector<16x128xbf16>, vector<16x128xbf16> -> vector<16x640xbf16>
    %c0_24 = arith.constant 0 : index
    %c0_25 = arith.constant 0 : index
    %c0_26 = arith.constant 0 : index
    %21 = vector.load %arg4[%c0_24, %c0_25, %c0_26] : memref<4x640x256xbf16, #tpu.memory_space<vmem>>, vector<1x640x256xbf16>
    %22 = vector.shape_cast %21 : vector<1x640x256xbf16> to vector<640x256xbf16>
    %cst_27 = arith.constant dense<0.000000e+00> : vector<16x256xf32>
    %23 = tpu.matmul %20, %22, %cst_27 {dimension_numbers = #tpu.dot_dimension_numbers<[1], [0], [0], [1], [0, 0, 1, 1], [], []>} : vector<16x640xbf16>, vector<640x256xbf16>, vector<16x256xf32> -> vector<16x256xf32>
    %c0_28 = arith.constant 0 : index
    %c0_29 = arith.constant 0 : index
    %c0_30 = arith.constant 0 : index
    %24 = vector.load %arg5[%c0_28, %c0_29, %c0_30] : memref<4x1x256xf32, #tpu.memory_space<vmem>>, vector<1x1x256xf32>
    %25 = vector.shape_cast %24 : vector<1x1x256xf32> to vector<1x256xf32>
    %26 = vector.broadcast %25 : vector<1x256xf32> to vector<16x256xf32>
    %27 = arith.addf %23, %26 : vector<16x256xf32>
    %28 = vector.extract_strided_slice %27 {offsets = [0, 0], sizes = [16, 128], strides = [1, 1]} : vector<16x256xf32> to vector<16x128xf32>
    %29 = math.tanh %28 : vector<16x128xf32>
    %30 = vector.extract_strided_slice %27 {offsets = [0, 128], sizes = [16, 128], strides = [1, 1]} : vector<16x256xf32> to vector<16x128xf32>
    %31 = arith.negf %30 : vector<16x128xf32>
    %32 = math.exp %31 : vector<16x128xf32>
    %cst_31 = arith.constant 1.000000e+00 : f32
    %33 = vector.broadcast %cst_31 : f32 to vector<16x128xf32>
    %34 = arith.addf %33, %32 : vector<16x128xf32>
    %35 = arith.divf %33, %34 : vector<16x128xf32>
    %36 = arith.mulf %29, %35 : vector<16x128xf32>
    %37 = arith.truncf %36 : vector<16x128xf32> to vector<16x128xbf16>
    %c0_32 = arith.constant 0 : index
    %c0_33 = arith.constant 0 : index
    %c0_34 = arith.constant 0 : index
    %38 = vector.load %arg6[%c0_32, %c0_33, %c0_34] : memref<4x128x256xbf16, #tpu.memory_space<vmem>>, vector<1x128x256xbf16>
    %39 = vector.shape_cast %38 : vector<1x128x256xbf16> to vector<128x256xbf16>
    %cst_35 = arith.constant dense<0.000000e+00> : vector<16x256xf32>
    %40 = tpu.matmul %37, %39, %cst_35 {dimension_numbers = #tpu.dot_dimension_numbers<[1], [0], [0], [1], [0, 0, 1, 1], [], []>} : vector<16x128xbf16>, vector<128x256xbf16>, vector<16x256xf32> -> vector<16x256xf32>
    %c0_36 = arith.constant 0 : index
    %c0_37 = arith.constant 0 : index
    %c0_38 = arith.constant 0 : index
    %41 = vector.load %arg7[%c0_36, %c0_37, %c0_38] : memref<4x1x256xf32, #tpu.memory_space<vmem>>, vector<1x1x256xf32>
    %42 = vector.shape_cast %41 : vector<1x1x256xf32> to vector<1x256xf32>
    %43 = vector.broadcast %42 : vector<1x256xf32> to vector<16x256xf32>
    %44 = arith.addf %40, %43 : vector<16x256xf32>
    %c0_39 = arith.constant 0 : index
    %c0_40 = arith.constant 0 : index
    %45 = vector.load %arg11[%c0_39, %c0_40] : memref<16x128xf32, #tpu.memory_space<vmem>>, vector<16x128xf32>
    %46 = vector.extract_strided_slice %44 {offsets = [0, 0], sizes = [16, 128], strides = [1, 1]} : vector<16x256xf32> to vector<16x128xf32>
    %47 = arith.addf %45, %46 : vector<16x128xf32>
    %c0_41 = arith.constant 0 : index
    %c0_42 = arith.constant 0 : index
    %48 = vector.load %arg11[%c0_41, %c0_42] : memref<16x128xf32, #tpu.memory_space<vmem>>, vector<16x128xf32>
    tpu.vector_store %arg11[%c0_41, %c0_42], %47 {strides = array<i32>} : memref<16x128xf32, #tpu.memory_space<vmem>>, vector<16x128xf32>,
    %c0_43 = arith.constant 0 : index
    %c0_44 = arith.constant 0 : index
    %49 = vector.load %arg12[%c0_43, %c0_44] : memref<16x128xf32, #tpu.memory_space<vmem>>, vector<16x128xf32>
    %50 = vector.extract_strided_slice %44 {offsets = [0, 128], sizes = [16, 128], strides = [1, 1]} : vector<16x256xf32> to vector<16x128xf32>
    %51 = arith.addf %49, %50 : vector<16x128xf32>
    %c0_45 = arith.constant 0 : index
    %c0_46 = arith.constant 0 : index
    %52 = vector.load %arg12[%c0_45, %c0_46] : memref<16x128xf32, #tpu.memory_space<vmem>>, vector<16x128xf32>
    tpu.vector_store %arg12[%c0_45, %c0_46], %51 {strides = array<i32>} : memref<16x128xf32, #tpu.memory_space<vmem>>, vector<16x128xf32>,
    %c0_47 = arith.constant 0 : index
    %c0_48 = arith.constant 0 : index
    %53 = vector.load %arg11[%c0_47, %c0_48] : memref<16x128xf32, #tpu.memory_space<vmem>>, vector<16x128xf32>
    %54 = arith.truncf %53 : vector<16x128xf32> to vector<16x128xbf16>
    %c2_49 = arith.constant 2 : index
    %c0_50 = arith.constant 0 : index
    %55 = vector.load %arg13[%c2_49, %c0_50] : memref<24x128xbf16, #tpu.memory_space<vmem>>, vector<16x128xbf16>
    tpu.vector_store %arg13[%c2_49, %c0_50], %54 {strides = array<i32>} : memref<24x128xbf16, #tpu.memory_space<vmem>>, vector<16x128xbf16>,
    %c0_51 = arith.constant 0 : index
    %c0_52 = arith.constant 0 : index
    %56 = vector.load %arg13[%c0_51, %c0_52] : memref<24x128xbf16, #tpu.memory_space<vmem>>, vector<16x128xbf16>
    %c1_53 = arith.constant 1 : index
    %c0_54 = arith.constant 0 : index
    %57 = vector.load %arg13[%c1_53, %c0_54] : memref<24x128xbf16, #tpu.memory_space<vmem>>, vector<16x128xbf16>
    %c2_55 = arith.constant 2 : index
    %c0_56 = arith.constant 0 : index
    %58 = vector.load %arg13[%c2_55, %c0_56] : memref<24x128xbf16, #tpu.memory_space<vmem>>, vector<16x128xbf16>
    %c3_57 = arith.constant 3 : index
    %c0_58 = arith.constant 0 : index
    %59 = vector.load %arg13[%c3_57, %c0_58] : memref<24x128xbf16, #tpu.memory_space<vmem>>, vector<16x128xbf16>
    %c4_59 = arith.constant 4 : index
    %c0_60 = arith.constant 0 : index
    %60 = vector.load %arg13[%c4_59, %c0_60] : memref<24x128xbf16, #tpu.memory_space<vmem>>, vector<16x128xbf16>
    %61 = tpu.concatenate %56, %57, %58, %59, %60 in 1 : vector<16x128xbf16>, vector<16x128xbf16>, vector<16x128xbf16>, vector<16x128xbf16>, vector<16x128xbf16> -> vector<16x640xbf16>
    %c1_61 = arith.constant 1 : index
    %c0_62 = arith.constant 0 : index
    %c0_63 = arith.constant 0 : index
    %62 = vector.load %arg4[%c1_61, %c0_62, %c0_63] : memref<4x640x256xbf16, #tpu.memory_space<vmem>>, vector<1x640x256xbf16>
    %63 = vector.shape_cast %62 : vector<1x640x256xbf16> to vector<640x256xbf16>
    %cst_64 = arith.constant dense<0.000000e+00> : vector<16x256xf32>
    %64 = tpu.matmul %61, %63, %cst_64 {dimension_numbers = #tpu.dot_dimension_numbers<[1], [0], [0], [1], [0, 0, 1, 1], [], []>} : vector<16x640xbf16>, vector<640x256xbf16>, vector<16x256xf32> -> vector<16x256xf32>
    %c1_65 = arith.constant 1 : index
    %c0_66 = arith.constant 0 : index
    %c0_67 = arith.constant 0 : index
    %65 = vector.load %arg5[%c1_65, %c0_66, %c0_67] : memref<4x1x256xf32, #tpu.memory_space<vmem>>, vector<1x1x256xf32>
    %66 = vector.shape_cast %65 : vector<1x1x256xf32> to vector<1x256xf32>
    %67 = vector.broadcast %66 : vector<1x256xf32> to vector<16x256xf32>
    %68 = arith.addf %64, %67 : vector<16x256xf32>
    %69 = vector.extract_strided_slice %68 {offsets = [0, 0], sizes = [16, 128], strides = [1, 1]} : vector<16x256xf32> to vector<16x128xf32>
    %70 = math.tanh %69 : vector<16x128xf32>
    %71 = vector.extract_strided_slice %68 {offsets = [0, 128], sizes = [16, 128], strides = [1, 1]} : vector<16x256xf32> to vector<16x128xf32>
    %72 = arith.negf %71 : vector<16x128xf32>
    %73 = math.exp %72 : vector<16x128xf32>
    %cst_68 = arith.constant 1.000000e+00 : f32
    %74 = vector.broadcast %cst_68 : f32 to vector<16x128xf32>
    %75 = arith.addf %74, %73 : vector<16x128xf32>
    %76 = arith.divf %74, %75 : vector<16x128xf32>
    %77 = arith.mulf %70, %76 : vector<16x128xf32>
    %78 = arith.truncf %77 : vector<16x128xf32> to vector<16x128xbf16>
    %c1_69 = arith.constant 1 : index
    %c0_70 = arith.constant 0 : index
    %c0_71 = arith.constant 0 : index
    %79 = vector.load %arg6[%c1_69, %c0_70, %c0_71] : memref<4x128x256xbf16, #tpu.memory_space<vmem>>, vector<1x128x256xbf16>
    %80 = vector.shape_cast %79 : vector<1x128x256xbf16> to vector<128x256xbf16>
    %cst_72 = arith.constant dense<0.000000e+00> : vector<16x256xf32>
    %81 = tpu.matmul %78, %80, %cst_72 {dimension_numbers = #tpu.dot_dimension_numbers<[1], [0], [0], [1], [0, 0, 1, 1], [], []>} : vector<16x128xbf16>, vector<128x256xbf16>, vector<16x256xf32> -> vector<16x256xf32>
    %c1_73 = arith.constant 1 : index
    %c0_74 = arith.constant 0 : index
    %c0_75 = arith.constant 0 : index
    %82 = vector.load %arg7[%c1_73, %c0_74, %c0_75] : memref<4x1x256xf32, #tpu.memory_space<vmem>>, vector<1x1x256xf32>
    %83 = vector.shape_cast %82 : vector<1x1x256xf32> to vector<1x256xf32>
    %84 = vector.broadcast %83 : vector<1x256xf32> to vector<16x256xf32>
    %85 = arith.addf %81, %84 : vector<16x256xf32>
    %c0_76 = arith.constant 0 : index
    %c0_77 = arith.constant 0 : index
    %86 = vector.load %arg11[%c0_76, %c0_77] : memref<16x128xf32, #tpu.memory_space<vmem>>, vector<16x128xf32>
    %87 = vector.extract_strided_slice %85 {offsets = [0, 0], sizes = [16, 128], strides = [1, 1]} : vector<16x256xf32> to vector<16x128xf32>
    %88 = arith.addf %86, %87 : vector<16x128xf32>
    %c0_78 = arith.constant 0 : index
    %c0_79 = arith.constant 0 : index
    %89 = vector.load %arg11[%c0_78, %c0_79] : memref<16x128xf32, #tpu.memory_space<vmem>>, vector<16x128xf32>
    tpu.vector_store %arg11[%c0_78, %c0_79], %88 {strides = array<i32>} : memref<16x128xf32, #tpu.memory_space<vmem>>, vector<16x128xf32>,
    %c0_80 = arith.constant 0 : index
    %c0_81 = arith.constant 0 : index
    %90 = vector.load %arg12[%c0_80, %c0_81] : memref<16x128xf32, #tpu.memory_space<vmem>>, vector<16x128xf32>
    %91 = vector.extract_strided_slice %85 {offsets = [0, 128], sizes = [16, 128], strides = [1, 1]} : vector<16x256xf32> to vector<16x128xf32>
    %92 = arith.addf %90, %91 : vector<16x128xf32>
    %c0_82 = arith.constant 0 : index
    %c0_83 = arith.constant 0 : index
    %93 = vector.load %arg12[%c0_82, %c0_83] : memref<16x128xf32, #tpu.memory_space<vmem>>, vector<16x128xf32>
    tpu.vector_store %arg12[%c0_82, %c0_83], %92 {strides = array<i32>} : memref<16x128xf32, #tpu.memory_space<vmem>>, vector<16x128xf32>,
    %c0_84 = arith.constant 0 : index
    %c0_85 = arith.constant 0 : index
    %94 = vector.load %arg11[%c0_84, %c0_85] : memref<16x128xf32, #tpu.memory_space<vmem>>, vector<16x128xf32>
    %95 = arith.truncf %94 : vector<16x128xf32> to vector<16x128xbf16>
    %c2_86 = arith.constant 2 : index
    %c0_87 = arith.constant 0 : index
    %96 = vector.load %arg13[%c2_86, %c0_87] : memref<24x128xbf16, #tpu.memory_space<vmem>>, vector<16x128xbf16>
    tpu.vector_store %arg13[%c2_86, %c0_87], %95 {strides = array<i32>} : memref<24x128xbf16, #tpu.memory_space<vmem>>, vector<16x128xbf16>,
    %c0_88 = arith.constant 0 : index
    %c0_89 = arith.constant 0 : index
    %97 = vector.load %arg13[%c0_88, %c0_89] : memref<24x128xbf16, #tpu.memory_space<vmem>>, vector<16x128xbf16>
    %c1_90 = arith.constant 1 : index
    %c0_91 = arith.constant 0 : index
    %98 = vector.load %arg13[%c1_90, %c0_91] : memref<24x128xbf16, #tpu.memory_space<vmem>>, vector<16x128xbf16>
    %c2_92 = arith.constant 2 : index
    %c0_93 = arith.constant 0 : index
    %99 = vector.load %arg13[%c2_92, %c0_93] : memref<24x128xbf16, #tpu.memory_space<vmem>>, vector<16x128xbf16>
    %c3_94 = arith.constant 3 : index
    %c0_95 = arith.constant 0 : index
    %100 = vector.load %arg13[%c3_94, %c0_95] : memref<24x128xbf16, #tpu.memory_space<vmem>>, vector<16x128xbf16>
    %c4_96 = arith.constant 4 : index
    %c0_97 = arith.constant 0 : index
    %101 = vector.load %arg13[%c4_96, %c0_97] : memref<24x128xbf16, #tpu.memory_space<vmem>>, vector<16x128xbf16>
    %102 = tpu.concatenate %97, %98, %99, %100, %101 in 1 : vector<16x128xbf16>, vector<16x128xbf16>, vector<16x128xbf16>, vector<16x128xbf16>, vector<16x128xbf16> -> vector<16x640xbf16>
    %c2_98 = arith.constant 2 : index
    %c0_99 = arith.constant 0 : index
    %c0_100 = arith.constant 0 : index
    %103 = vector.load %arg4[%c2_98, %c0_99, %c0_100] : memref<4x640x256xbf16, #tpu.memory_space<vmem>>, vector<1x640x256xbf16>
    %104 = vector.shape_cast %103 : vector<1x640x256xbf16> to vector<640x256xbf16>
    %cst_101 = arith.constant dense<0.000000e+00> : vector<16x256xf32>
    %105 = tpu.matmul %102, %104, %cst_101 {dimension_numbers = #tpu.dot_dimension_numbers<[1], [0], [0], [1], [0, 0, 1, 1], [], []>} : vector<16x640xbf16>, vector<640x256xbf16>, vector<16x256xf32> -> vector<16x256xf32>
    %c2_102 = arith.constant 2 : index
    %c0_103 = arith.constant 0 : index
    %c0_104 = arith.constant 0 : index
    %106 = vector.load %arg5[%c2_102, %c0_103, %c0_104] : memref<4x1x256xf32, #tpu.memory_space<vmem>>, vector<1x1x256xf32>
    %107 = vector.shape_cast %106 : vector<1x1x256xf32> to vector<1x256xf32>
    %108 = vector.broadcast %107 : vector<1x256xf32> to vector<16x256xf32>
    %109 = arith.addf %105, %108 : vector<16x256xf32>
    %110 = vector.extract_strided_slice %109 {offsets = [0, 0], sizes = [16, 128], strides = [1, 1]} : vector<16x256xf32> to vector<16x128xf32>
    %111 = math.tanh %110 : vector<16x128xf32>
    %112 = vector.extract_strided_slice %109 {offsets = [0, 128], sizes = [16, 128], strides = [1, 1]} : vector<16x256xf32> to vector<16x128xf32>
    %113 = arith.negf %112 : vector<16x128xf32>
    %114 = math.exp %113 : vector<16x128xf32>
    %cst_105 = arith.constant 1.000000e+00 : f32
    %115 = vector.broadcast %cst_105 : f32 to vector<16x128xf32>
    %116 = arith.addf %115, %114 : vector<16x128xf32>
    %117 = arith.divf %115, %116 : vector<16x128xf32>
    %118 = arith.mulf %111, %117 : vector<16x128xf32>
    %119 = arith.truncf %118 : vector<16x128xf32> to vector<16x128xbf16>
    %c2_106 = arith.constant 2 : index
    %c0_107 = arith.constant 0 : index
    %c0_108 = arith.constant 0 : index
    %120 = vector.load %arg6[%c2_106, %c0_107, %c0_108] : memref<4x128x256xbf16, #tpu.memory_space<vmem>>, vector<1x128x256xbf16>
    %121 = vector.shape_cast %120 : vector<1x128x256xbf16> to vector<128x256xbf16>
    %cst_109 = arith.constant dense<0.000000e+00> : vector<16x256xf32>
    %122 = tpu.matmul %119, %121, %cst_109 {dimension_numbers = #tpu.dot_dimension_numbers<[1], [0], [0], [1], [0, 0, 1, 1], [], []>} : vector<16x128xbf16>, vector<128x256xbf16>, vector<16x256xf32> -> vector<16x256xf32>
    %c2_110 = arith.constant 2 : index
    %c0_111 = arith.constant 0 : index
    %c0_112 = arith.constant 0 : index
    %123 = vector.load %arg7[%c2_110, %c0_111, %c0_112] : memref<4x1x256xf32, #tpu.memory_space<vmem>>, vector<1x1x256xf32>
    %124 = vector.shape_cast %123 : vector<1x1x256xf32> to vector<1x256xf32>
    %125 = vector.broadcast %124 : vector<1x256xf32> to vector<16x256xf32>
    %126 = arith.addf %122, %125 : vector<16x256xf32>
    %c0_113 = arith.constant 0 : index
    %c0_114 = arith.constant 0 : index
    %127 = vector.load %arg11[%c0_113, %c0_114] : memref<16x128xf32, #tpu.memory_space<vmem>>, vector<16x128xf32>
    %128 = vector.extract_strided_slice %126 {offsets = [0, 0], sizes = [16, 128], strides = [1, 1]} : vector<16x256xf32> to vector<16x128xf32>
    %129 = arith.addf %127, %128 : vector<16x128xf32>
    %c0_115 = arith.constant 0 : index
    %c0_116 = arith.constant 0 : index
    %130 = vector.load %arg11[%c0_115, %c0_116] : memref<16x128xf32, #tpu.memory_space<vmem>>, vector<16x128xf32>
    tpu.vector_store %arg11[%c0_115, %c0_116], %129 {strides = array<i32>} : memref<16x128xf32, #tpu.memory_space<vmem>>, vector<16x128xf32>,
    %c0_117 = arith.constant 0 : index
    %c0_118 = arith.constant 0 : index
    %131 = vector.load %arg12[%c0_117, %c0_118] : memref<16x128xf32, #tpu.memory_space<vmem>>, vector<16x128xf32>
    %132 = vector.extract_strided_slice %126 {offsets = [0, 128], sizes = [16, 128], strides = [1, 1]} : vector<16x256xf32> to vector<16x128xf32>
    %133 = arith.addf %131, %132 : vector<16x128xf32>
    %c0_119 = arith.constant 0 : index
    %c0_120 = arith.constant 0 : index
    %134 = vector.load %arg12[%c0_119, %c0_120] : memref<16x128xf32, #tpu.memory_space<vmem>>, vector<16x128xf32>
    tpu.vector_store %arg12[%c0_119, %c0_120], %133 {strides = array<i32>} : memref<16x128xf32, #tpu.memory_space<vmem>>, vector<16x128xf32>,
    %c0_121 = arith.constant 0 : index
    %c0_122 = arith.constant 0 : index
    %135 = vector.load %arg11[%c0_121, %c0_122] : memref<16x128xf32, #tpu.memory_space<vmem>>, vector<16x128xf32>
    %136 = arith.truncf %135 : vector<16x128xf32> to vector<16x128xbf16>
    %c2_123 = arith.constant 2 : index
    %c0_124 = arith.constant 0 : index
    %137 = vector.load %arg13[%c2_123, %c0_124] : memref<24x128xbf16, #tpu.memory_space<vmem>>, vector<16x128xbf16>
    tpu.vector_store %arg13[%c2_123, %c0_124], %136 {strides = array<i32>} : memref<24x128xbf16, #tpu.memory_space<vmem>>, vector<16x128xbf16>,
    %c0_125 = arith.constant 0 : index
    %c0_126 = arith.constant 0 : index
    %138 = vector.load %arg13[%c0_125, %c0_126] : memref<24x128xbf16, #tpu.memory_space<vmem>>, vector<16x128xbf16>
    %c1_127 = arith.constant 1 : index
    %c0_128 = arith.constant 0 : index
    %139 = vector.load %arg13[%c1_127, %c0_128] : memref<24x128xbf16, #tpu.memory_space<vmem>>, vector<16x128xbf16>
    %c2_129 = arith.constant 2 : index
    %c0_130 = arith.constant 0 : index
    %140 = vector.load %arg13[%c2_129, %c0_130] : memref<24x128xbf16, #tpu.memory_space<vmem>>, vector<16x128xbf16>
    %c3_131 = arith.constant 3 : index
    %c0_132 = arith.constant 0 : index
    %141 = vector.load %arg13[%c3_131, %c0_132] : memref<24x128xbf16, #tpu.memory_space<vmem>>, vector<16x128xbf16>
    %c4_133 = arith.constant 4 : index
    %c0_134 = arith.constant 0 : index
    %142 = vector.load %arg13[%c4_133, %c0_134] : memref<24x128xbf16, #tpu.memory_space<vmem>>, vector<16x128xbf16>
    %143 = tpu.concatenate %138, %139, %140, %141, %142 in 1 : vector<16x128xbf16>, vector<16x128xbf16>, vector<16x128xbf16>, vector<16x128xbf16>, vector<16x128xbf16> -> vector<16x640xbf16>
    %c3_135 = arith.constant 3 : index
    %c0_136 = arith.constant 0 : index
    %c0_137 = arith.constant 0 : index
    %144 = vector.load %arg4[%c3_135, %c0_136, %c0_137] : memref<4x640x256xbf16, #tpu.memory_space<vmem>>, vector<1x640x256xbf16>
    %145 = vector.shape_cast %144 : vector<1x640x256xbf16> to vector<640x256xbf16>
    %cst_138 = arith.constant dense<0.000000e+00> : vector<16x256xf32>
    %146 = tpu.matmul %143, %145, %cst_138 {dimension_numbers = #tpu.dot_dimension_numbers<[1], [0], [0], [1], [0, 0, 1, 1], [], []>} : vector<16x640xbf16>, vector<640x256xbf16>, vector<16x256xf32> -> vector<16x256xf32>
    %c3_139 = arith.constant 3 : index
    %c0_140 = arith.constant 0 : index
    %c0_141 = arith.constant 0 : index
    %147 = vector.load %arg5[%c3_139, %c0_140, %c0_141] : memref<4x1x256xf32, #tpu.memory_space<vmem>>, vector<1x1x256xf32>
    %148 = vector.shape_cast %147 : vector<1x1x256xf32> to vector<1x256xf32>
    %149 = vector.broadcast %148 : vector<1x256xf32> to vector<16x256xf32>
    %150 = arith.addf %146, %149 : vector<16x256xf32>
    %151 = vector.extract_strided_slice %150 {offsets = [0, 0], sizes = [16, 128], strides = [1, 1]} : vector<16x256xf32> to vector<16x128xf32>
    %152 = math.tanh %151 : vector<16x128xf32>
    %153 = vector.extract_strided_slice %150 {offsets = [0, 128], sizes = [16, 128], strides = [1, 1]} : vector<16x256xf32> to vector<16x128xf32>
    %154 = arith.negf %153 : vector<16x128xf32>
    %155 = math.exp %154 : vector<16x128xf32>
    %cst_142 = arith.constant 1.000000e+00 : f32
    %156 = vector.broadcast %cst_142 : f32 to vector<16x128xf32>
    %157 = arith.addf %156, %155 : vector<16x128xf32>
    %158 = arith.divf %156, %157 : vector<16x128xf32>
    %159 = arith.mulf %152, %158 : vector<16x128xf32>
    %160 = arith.truncf %159 : vector<16x128xf32> to vector<16x128xbf16>
    %c3_143 = arith.constant 3 : index
    %c0_144 = arith.constant 0 : index
    %c0_145 = arith.constant 0 : index
    %161 = vector.load %arg6[%c3_143, %c0_144, %c0_145] : memref<4x128x256xbf16, #tpu.memory_space<vmem>>, vector<1x128x256xbf16>
    %162 = vector.shape_cast %161 : vector<1x128x256xbf16> to vector<128x256xbf16>
    %cst_146 = arith.constant dense<0.000000e+00> : vector<16x256xf32>
    %163 = tpu.matmul %160, %162, %cst_146 {dimension_numbers = #tpu.dot_dimension_numbers<[1], [0], [0], [1], [0, 0, 1, 1], [], []>} : vector<16x128xbf16>, vector<128x256xbf16>, vector<16x256xf32> -> vector<16x256xf32>
    %c3_147 = arith.constant 3 : index
    %c0_148 = arith.constant 0 : index
    %c0_149 = arith.constant 0 : index
    %164 = vector.load %arg7[%c3_147, %c0_148, %c0_149] : memref<4x1x256xf32, #tpu.memory_space<vmem>>, vector<1x1x256xf32>
    %165 = vector.shape_cast %164 : vector<1x1x256xf32> to vector<1x256xf32>
    %166 = vector.broadcast %165 : vector<1x256xf32> to vector<16x256xf32>
    %167 = arith.addf %163, %166 : vector<16x256xf32>
    %c0_150 = arith.constant 0 : index
    %c0_151 = arith.constant 0 : index
    %168 = vector.load %arg12[%c0_150, %c0_151] : memref<16x128xf32, #tpu.memory_space<vmem>>, vector<16x128xf32>
    %169 = vector.extract_strided_slice %167 {offsets = [0, 128], sizes = [16, 128], strides = [1, 1]} : vector<16x256xf32> to vector<16x128xf32>
    %170 = arith.addf %168, %169 : vector<16x128xf32>
    %c0_152 = arith.constant 0 : index
    %c0_153 = arith.constant 0 : index
    %171 = vector.load %arg12[%c0_152, %c0_153] : memref<16x128xf32, #tpu.memory_space<vmem>>, vector<16x128xf32>
    tpu.vector_store %arg12[%c0_152, %c0_153], %170 {strides = array<i32>} : memref<16x128xf32, #tpu.memory_space<vmem>>, vector<16x128xf32>,
    %c0_154 = arith.constant 0 : index
    %c0_155 = arith.constant 0 : index
    %172 = vector.load %arg12[%c0_154, %c0_155] : memref<16x128xf32, #tpu.memory_space<vmem>>, vector<16x128xf32>
    %173 = arith.truncf %172 : vector<16x128xf32> to vector<16x128xbf16>
    %c0_156 = arith.constant 0 : index
    %c0_157 = arith.constant 0 : index
    %174 = vector.load %arg8[%c0_156, %c0_157] : memref<128x128xbf16, #tpu.memory_space<vmem>>, vector<128x128xbf16>
    %cst_158 = arith.constant dense<0.000000e+00> : vector<16x128xf32>
    %175 = tpu.matmul %173, %174, %cst_158 {dimension_numbers = #tpu.dot_dimension_numbers<[1], [0], [0], [1], [0, 0, 1, 1], [], []>} : vector<16x128xbf16>, vector<128x128xbf16>, vector<16x128xf32> -> vector<16x128xf32>
    %c0_159 = arith.constant 0 : index
    %c0_160 = arith.constant 0 : index
    %176 = vector.load %arg9[%c0_159, %c0_160] : memref<1x128xf32, #tpu.memory_space<vmem>>, vector<1x128xf32>
    %177 = vector.broadcast %176 : vector<1x128xf32> to vector<16x128xf32>
    %178 = arith.addf %175, %177 : vector<16x128xf32>
    %c0_161 = arith.constant 0 : index
    %c0_162 = arith.constant 0 : index
    %c0_163 = arith.constant 0 : index
    %179 = vector.load %arg10[%c0_161, %c0_162, %c0_163] : memref<1x16x128xf32, #tpu.memory_space<vmem>>, vector<1x16x128xf32>
    %180 = vector.shape_cast %179 : vector<1x16x128xf32> to vector<16x128xf32>
    %181 = vector.shape_cast %178 : vector<16x128xf32> to vector<1x16x128xf32>
    tpu.vector_store %arg10[%c0_161, %c0_162, %c0_163], %181 {strides = array<i32>} : memref<1x16x128xf32, #tpu.memory_space<vmem>>, vector<1x16x128xf32>,
    return
  }
  func.func @transform_0(%arg0: i32) -> (i32, i32, i32) {
    %c0_i32 = arith.constant 0 : i32
    %c0_i32_0 = arith.constant 0 : i32
    %c0_i32_1 = arith.constant 0 : i32
    return %arg0, %c0_i32, %c0_i32_0 : i32, i32, i32
  }
  func.func @transform_1(%arg0: i32) -> (i32, i32) {
    %c0_i32 = arith.constant 0 : i32
    %c0_i32_0 = arith.constant 0 : i32
    %c0_i32_1 = arith.constant 0 : i32
    return %c0_i32, %c0_i32_0 : i32, i32
  }
  func.func @transform_2(%arg0: i32) -> (i32, i32) {
    %c0_i32 = arith.constant 0 : i32
    %c0_i32_0 = arith.constant 0 : i32
    %c0_i32_1 = arith.constant 0 : i32
    return %c0_i32, %c0_i32_0 : i32, i32
  }
  func.func @transform_3(%arg0: i32) -> (i32, i32, i32) {
    %c0_i32 = arith.constant 0 : i32
    %c0_i32_0 = arith.constant 0 : i32
    %c0_i32_1 = arith.constant 0 : i32
    %c0_i32_2 = arith.constant 0 : i32
    return %c0_i32, %c0_i32_0, %c0_i32_1 : i32, i32, i32
  }
  func.func @transform_4(%arg0: i32) -> (i32, i32, i32) {
    %c0_i32 = arith.constant 0 : i32
    %c0_i32_0 = arith.constant 0 : i32
    %c0_i32_1 = arith.constant 0 : i32
    %c0_i32_2 = arith.constant 0 : i32
    return %c0_i32, %c0_i32_0, %c0_i32_1 : i32, i32, i32
  }
  func.func @transform_5(%arg0: i32) -> (i32, i32, i32) {
    %c0_i32 = arith.constant 0 : i32
    %c0_i32_0 = arith.constant 0 : i32
    %c0_i32_1 = arith.constant 0 : i32
    %c0_i32_2 = arith.constant 0 : i32
    return %c0_i32, %c0_i32_0, %c0_i32_1 : i32, i32, i32
  }
  func.func @transform_6(%arg0: i32) -> (i32, i32, i32) {
    %c0_i32 = arith.constant 0 : i32
    %c0_i32_0 = arith.constant 0 : i32
    %c0_i32_1 = arith.constant 0 : i32
    %c0_i32_2 = arith.constant 0 : i32
    return %c0_i32, %c0_i32_0, %c0_i32_1 : i32, i32, i32
  }
  func.func @transform_7(%arg0: i32) -> (i32, i32) {
    %c0_i32 = arith.constant 0 : i32
    %c0_i32_0 = arith.constant 0 : i32
    %c0_i32_1 = arith.constant 0 : i32
    return %c0_i32, %c0_i32_0 : i32, i32
  }
  func.func @transform_8(%arg0: i32) -> (i32, i32) {
    %c0_i32 = arith.constant 0 : i32
    %c0_i32_0 = arith.constant 0 : i32
    %c0_i32_1 = arith.constant 0 : i32
    return %c0_i32, %c0_i32_0 : i32, i32
  }
  func.func @transform_9(%arg0: i32) -> (i32, i32, i32) {
    %c0_i32 = arith.constant 0 : i32
    %c0_i32_0 = arith.constant 0 : i32
    %c0_i32_1 = arith.constant 0 : i32
    return %arg0, %c0_i32, %c0_i32_0 : i32, i32, i32
  }
}

</mosaic_0001>

<bundles_post_ra>
// kernel: tpu_custom_call.1
= control target key start
LH: loop header
LB: loop body
LE: loop exit
PB: predicated region body
PF: predicated region fallthrough
CT: control target
= control target key end

     0   :  { %s6813_s0 = inlined_call_operand.hbm [shape: bf16[2,16,128], index: 0, kind: input, shape index: {}]   ;;  %s6814_s1 = inlined_call_operand.hbm [shape: bf16[128,128], index: 1, kind: input, shape index: {}]   ;;  %s6815_s2 = inlined_call_operand.hbm [shape: f32[1,128], index: 2, kind: input, shape index: {}]   ;;  %s6816_s3 = inlined_call_operand.hbm [shape: bf16[4,640,256], index: 3, kind: input, shape index: {}]   ;;  %s6817_s4 = inlined_call_operand.hbm [shape: f32[4,1,256], index: 4, kind: input, shape index: {}]   ;;  %s6818_s5 = inlined_call_operand.hbm [shape: bf16[4,128,256], index: 5, kind: input, shape index: {}]   ;;  %s6819_s6 = inlined_call_operand.hbm [shape: f32[4,1,256], index: 6, kind: input, shape index: {}]   ;;  %s6820_s7 = inlined_call_operand.hbm [shape: bf16[128,128], index: 7, kind: input, shape index: {}]   ;;  %s6821_s8 = inlined_call_operand.hbm [shape: f32[1,128], index: 8, kind: input, shape index: {}]   ;;  %s6822_s9 = inlined_call_operand.hbm [shape: f32[2,16,128], index: 9, kind: output, shape index: {}]  }
   0x1   :  { %6831 = sst [smem:[#allocation27_spill]] %s6814_s1 }
   0x2   :  { %6832 = sst [smem:[#allocation28_spill]] %s6815_s2 }
   0x3   :  { %6833 = sst [smem:[#allocation29_spill]] %s6822_s9 }
   0x4   :  { %14 = vsyncpa [#allocation6], 0 }
   0x5   :  { %16 = vsyncpa [#allocation6 + $0x1], 0 }
   0x6   :  { %17 = vsyncpa [#allocation9], 0 }
   0x7   :  { %18 = vsyncpa [#allocation12], 0 }
   0x8   :  { %19 = vsyncpa [#allocation15], 0 }
   0x9   :  { %20 = vsyncpa [#allocation18], 0 }
   0xa   :  { %21 = vsyncpa [#allocation7], 0 }
   0xb   :  { %23 = vsyncpa [#allocation7 + $0x1], 0  ;;  %s6238_s30 = smov 0   ;;  %s6240_s10 = smov 0  }
   0xc   :  { %s6242_s11 = smov 0   ;;  %s6244_s12 = smov 0  }
   0xd LB: > { %s6167_s13 = smov [#allocation8]   ;;  %s6259_s15 = sadd.s32 4294967295, %s6165_s12   ;;  %s6165_s12 = sphi %s6244_s12, %s6865_s12   ;;  %s6161_s11 = sphi %s6242_s11, %s6864_s11   ;;  %s6157_s10 = sphi %s6240_s10, %s6863_s10   ;;  %s6153_s30 = sphi %s6238_s30, %s6862_s30  }
   0xe   : > { %s266_s14 = sshll.u32 %s6167_s13, 4  ;;  %p4438_p0 = scmp.ge.s32.totalorder %s6165_s12, 1  ;;  %s6264_s14 = int_to_ptr.vmem [resolvable:$true] %s266_s14 }
   0xf   : > { %p6826_p1 = scmp.eq.s32.totalorder %s6259_s15, 0  ;;  %p254_p2 = scmp.lt.s32.totalorder %s6165_s12, 3 }
  0x10   : > { %s6168_s17 = smov [#allocation11]   ;;  %s6169_s20 = smov [#allocation14]  }
  0x11   : > { %p6266_p3 = pnand %p4438_p0, %p254_p2  ;;  %s290_s18 = sshll.u32 %s6168_s17, 4  ;;  %s6279_s18 = int_to_ptr.vmem [resolvable:$true] %s290_s18 }
  0x12   : > { %s6281_s21 = sshll.u32 %s6169_s20, 4  ;;  %s6836_s1 = sld [smem:[#allocation27_spill]]  ;;  %s317_s21 = int_to_ptr.vmem [resolvable:$true] %s6281_s21 }
  0x13   : > { %s6834_s16 = scalar_select %p6266_p3, 1, 0 }
  0x14   : > { %p5062_p5 = pneg %p6266_p3 }
  0x16   : > { %p6275_p6 = pnand %p5062_p5, %p6826_p1 }
  0x18   : > { %s5829_s24 = scalar_lea.hbm %s6836_s1, 1024  ;;  %p6291_p8 = pneg %p6275_p6 }
  0x19   : > { %p5830_p7 = scmp.ne.s32.totalorder %s6836_s1, %s5829_s24  ;;  %p5836_p11 = scmp.lt.u32.totalorder %s5829_s24, %s6836_s1 }
  0x1b   : > { %p5832_p9 = pnand %p6291_p8, %p5830_p7 }
  0x1d   : > { %p5833_p10 = pneg %p5832_p9 }
  0x1f   : > { %p5838_p12 = pnand %p5836_p11, %p5833_p10 }
  0x21   : > { %5841 = shalt.err (!%p5838_p12)
}
  0x22   : > { %s5842_s13 = scalar_lea.vmem %s6264_s14, 1024  ;;  %p5850_p5 = scmp.lt.s32.totalorder %s6264_s14, %s6264_s14 }
  0x23   : > { %p5843_p13 = scmp.ne.s32.totalorder %s6264_s14, %s5842_s13  ;;  %p5851_p4 = scmp.lt.s32.totalorder %s5842_s13, %s5842_s13 }
  0x25   : > { %p5845_p0 = pnand %p5843_p13, %p6291_p8  ;;  %p5852_p7 = por %p5851_p4, %p5850_p5 }
  0x27   : > { %p5846_p2 = pneg %p5845_p0 }
  0x29   : > { %p5853_p9 = pnand %p5852_p7, %p5846_p2 }
  0x2b   : > { %5856 = shalt.err (!%p5853_p9)
}
  0x2c   : > { %s6824_s17 = smov 64   ;;  %s6828_s20 = smov 4  }
  0x2d   : > { %5065 = dma.hbm_to_vmem [thread:$0]  (!%p6275_p6), %s6836_s1, 1024, %s6264_s14, [#allocation9], %s6824_s17, %s6824_s17, %s6828_s20  }
  0x2e   : > { %s5857_s26 = scalar_lea.hbm %s6816_s3, 40960 }
  0x2f   : > { %p5858_p4 = scmp.ne.s32.totalorder %s6816_s3, %s5857_s26  ;;  %p5864_p12 = scmp.lt.u32.totalorder %s5857_s26, %s6816_s3 }
  0x31   : > { %p5860_p10 = pnand %p5858_p4, %p6291_p8 }
  0x33   : > { %p5861_p11 = pneg %p5860_p10 }
  0x35   : > { %p5866_p13 = pnand %p5864_p12, %p5861_p11 }
  0x37   : > { %5869 = shalt.err (!%p5866_p13)
}
  0x38   : > { %s5870_s14 = scalar_lea.vmem %s6279_s18, 40960  ;;  %p5878_p7 = scmp.lt.s32.totalorder %s6279_s18, %s6279_s18 }
  0x39   : > { %p5871_p0 = scmp.ne.s32.totalorder %s6279_s18, %s5870_s14  ;;  %p5879_p9 = scmp.lt.s32.totalorder %s5870_s14, %s5870_s14 }
  0x3b   : > { %p5873_p2 = pnand %p5871_p0, %p6291_p8  ;;  %p5880_p4 = por %p5879_p9, %p5878_p7 }
  0x3d   : > { %p5874_p5 = pneg %p5873_p2 }
  0x3f   : > { %p5881_p10 = pnand %p5880_p4, %p5874_p5 }
  0x41   : > { %5884 = shalt.err (!%p5881_p10)
}
  0x42   : > { %s6172_s22 = smov 128   ;;  %s6173_s9 = smov 8  }
  0x43   : > { %5071 = dma.hbm_to_vmem [thread:$0]  (!%p6275_p6), %s6816_s3, 40960, %s6279_s18, [#allocation12], %s6172_s22, %s6172_s22, %s6173_s9  }
  0x44   : > { %s5885_s28 = scalar_lea.hbm %s6818_s5, 8192 }
  0x45   : > { %p5886_p11 = scmp.ne.s32.totalorder %s6818_s5, %s5885_s28  ;;  %p5892_p0 = scmp.lt.u32.totalorder %s5885_s28, %s6818_s5 }
  0x47   : > { %p5888_p12 = pnand %p5886_p11, %p6291_p8 }
  0x49   : > { %p5889_p13 = pneg %p5888_p12 }
  0x4b   : > { %p5894_p2 = pnand %p5892_p0, %p5889_p13 }
  0x4d   : > { %5897 = shalt.err (!%p5894_p2)
}
  0x4e   : > { %s5898_s23 = scalar_lea.vmem %s317_s21, 8192  ;;  %p5906_p4 = scmp.lt.s32.totalorder %s317_s21, %s317_s21 }
  0x4f   : > { %p5899_p5 = scmp.ne.s32.totalorder %s317_s21, %s5898_s23  ;;  %p5907_p10 = scmp.lt.s32.totalorder %s5898_s23, %s5898_s23 }
  0x51   : > { %p5901_p7 = pnand %p5899_p5, %p6291_p8  ;;  %p5908_p1 = por %p5907_p10, %p5906_p4 }
  0x53   : > { %p5902_p9 = pneg %p5901_p7 }
  0x55   : > { %p5909_p3 = pnand %p5908_p1, %p5902_p9 }
  0x57   : > { %5912 = shalt.err (!%p5909_p3)
}
  0x58   : > { %5077 = dma.hbm_to_vmem [thread:$0]  (!%p6275_p6), %s6818_s5, 8192, %s317_s21, [#allocation15], %s6172_s22, %s6172_s22, %s6173_s9  }
  0x59   : > { %s6174_s17 = smov [#allocation17]   ;;  %s6175_s26 = smov [#allocation10]  }
  0x5a   : > { %s342_s25 = sshll.u32 %s6174_s17, 4  ;;  %s280_s28 = sshll.u32 %s6175_s26, 4  ;;  %s343_s25 = int_to_ptr.vmem [resolvable:$true] %s342_s25  ;;  %s281_s28 = int_to_ptr.vmem [resolvable:$true] %s280_s28 }
  0x5b   : > { %s5913_s14 = scalar_lea.hbm %s6820_s7, 1024 }
  0x5c   : > { %p5914_p1 = scmp.ne.s32.totalorder %s6820_s7, %s5913_s14  ;;  %p5920_p12 = scmp.lt.u32.totalorder %s5913_s14, %s6820_s7 }
  0x5e   : > { %p5916_p3 = pnand %p5914_p1, %p6291_p8 }
  0x60   : > { %p5917_p11 = pneg %p5916_p3 }
  0x62   : > { %p5922_p13 = pnand %p5920_p12, %p5917_p11 }
  0x64   : > { %5925 = shalt.err (!%p5922_p13)
}
  0x65   : > { %s5926_s21 = scalar_lea.vmem %s343_s25, 1024  ;;  %p5934_p7 = scmp.lt.s32.totalorder %s343_s25, %s343_s25 }
  0x66   : > { %p5927_p0 = scmp.ne.s32.totalorder %s343_s25, %s5926_s21  ;;  %p5935_p9 = scmp.lt.s32.totalorder %s5926_s21, %s5926_s21 }
  0x68   : > { %p5929_p2 = pnand %p5927_p0, %p6291_p8  ;;  %p5936_p4 = por %p5935_p9, %p5934_p7 }
  0x6a   : > { %p5930_p5 = pneg %p5929_p2 }
  0x6c   : > { %p5937_p10 = pnand %p5936_p4, %p5930_p5 }
  0x6e   : > { %5940 = shalt.err (!%p5937_p10)
}
  0x6f   : > { %s6838_s20 = smov 4   ;;  %s6839_s22 = smov 64  }
  0x70   : > { %5083 = dma.hbm_to_vmem [thread:$0]  (!%p6275_p6), %s6820_s7, 1024, %s343_s25, [#allocation18], %s6839_s22, %s6839_s22, %s6838_s20  }
  0x71   : > { %s6840_s2 = sld [smem:[#allocation28_spill]] }
  0x77   : > { %s5941_s26 = scalar_lea.hbm %s6840_s2, 16 }
  0x78   : > { %p5942_p1 = scmp.ne.s32.totalorder %s6840_s2, %s5941_s26  ;;  %p5948_p12 = scmp.lt.u32.totalorder %s5941_s26, %s6840_s2 }
  0x7a   : > { %p5944_p3 = pnand %p5942_p1, %p6291_p8 }
  0x7c   : > { %p5945_p11 = pneg %p5944_p3 }
  0x7e   : > { %p5950_p13 = pnand %p5948_p12, %p5945_p11 }
  0x80   : > { %5953 = shalt.err (!%p5950_p13)
}
  0x81   : > { %s5954_s18 = scalar_lea.vmem %s281_s28, 16  ;;  %s5961_s25 = scalar_lea.vmem %s281_s28, 32 }
  0x82   : > { %p5955_p0 = scmp.ne.s32.totalorder %s281_s28, %s5954_s18  ;;  %p5962_p7 = scmp.lt.s32.totalorder %s281_s28, %s281_s28 }
  0x83   : > { %p5963_p9 = scmp.lt.s32.totalorder %s5961_s25, %s5954_s18 }
  0x84   : > { %p5957_p2 = pnand %p5955_p0, %p6291_p8 }
  0x85   : > { %p5964_p4 = por %p5963_p9, %p5962_p7 }
  0x86   : > { %p5958_p5 = pneg %p5957_p2 }
  0x88   : > { %p5965_p10 = pnand %p5964_p4, %p5958_p5 }
  0x8a   : > { %5968 = shalt.err (!%p5965_p10)
}
  0x8b   : > { %5068 = dma.hbm_to_vmem [thread:$0]  (!%p6275_p6), %s6840_s2, 16, %s281_s28, [#allocation9]  }
  0x8c   : > { %s6176_s9 = smov [#allocation13]   ;;  %s5969_s29 = scalar_lea.hbm %s6817_s4, 128 }
  0x8d   : > { %s303_s24 = sshll.u32 %s6176_s9, 4  ;;  %p5970_p1 = scmp.ne.s32.totalorder %s6817_s4, %s5969_s29  ;;  %s304_s24 = int_to_ptr.vmem [resolvable:$true] %s303_s24 }
  0x8e   : > { %p5976_p12 = scmp.lt.u32.totalorder %s5969_s29, %s6817_s4 }
  0x8f   : > { %p5972_p3 = pnand %p5970_p1, %p6291_p8 }
  0x91   : > { %p5973_p11 = pneg %p5972_p3 }
  0x93   : > { %p5978_p13 = pnand %p5976_p12, %p5973_p11 }
  0x95   : > { %5981 = shalt.err (!%p5978_p13)
}
  0x96   : > { %s5982_s28 = scalar_lea.vmem %s304_s24, 128  ;;  %p5990_p7 = scmp.lt.s32.totalorder %s304_s24, %s304_s24 }
  0x97   : > { %p5983_p0 = scmp.ne.s32.totalorder %s304_s24, %s5982_s28  ;;  %p5991_p9 = scmp.lt.s32.totalorder %s5982_s28, %s5982_s28 }
  0x99   : > { %p5985_p2 = pnand %p5983_p0, %p6291_p8  ;;  %p5992_p4 = por %p5991_p9, %p5990_p7 }
  0x9b   : > { %p5986_p5 = pneg %p5985_p2 }
  0x9d   : > { %p5993_p10 = pnand %p5992_p4, %p5986_p5 }
  0x9f   : > { %5996 = shalt.err (!%p5993_p10)
}
  0xa0   : > { %s6177_s25 = smov 32   ;;  %s6178_s21 = smov 2  }
  0xa1   : > { %5074 = dma.hbm_to_vmem [thread:$0]  (!%p6275_p6), %s6817_s4, 128, %s304_s24, [#allocation12], %s6177_s25, %s6177_s25, %s6178_s21  }
  0xa2   : > { %s6179_s17 = smov [#allocation16]   ;;  %s6180_s29 = smov [#allocation19]  }
  0xa3   : > { %s329_s26 = sshll.u32 %s6179_s17, 4  ;;  %s356_s13 = sshll.u32 %s6180_s29, 4  ;;  %s330_s26 = int_to_ptr.vmem [resolvable:$true] %s329_s26  ;;  %s6414_s13 = int_to_ptr.vmem [resolvable:$true] %s356_s13 }
  0xa4   : > { %s5997_s18 = scalar_lea.hbm %s6819_s6, 128 }
  0xa5   : > { %p5998_p1 = scmp.ne.s32.totalorder %s6819_s6, %s5997_s18  ;;  %p6004_p12 = scmp.lt.u32.totalorder %s5997_s18, %s6819_s6 }
  0xa7   : > { %p6000_p3 = pnand %p5998_p1, %p6291_p8 }
  0xa9   : > { %p6001_p11 = pneg %p6000_p3 }
  0xab   : > { %p6006_p13 = pnand %p6004_p12, %p6001_p11 }
  0xad   : > { %6009 = shalt.err (!%p6006_p13)
}
  0xae   : > { %s6010_s9 = scalar_lea.vmem %s330_s26, 128  ;;  %p6018_p7 = scmp.lt.s32.totalorder %s330_s26, %s330_s26 }
  0xaf   : > { %p6011_p0 = scmp.ne.s32.totalorder %s330_s26, %s6010_s9  ;;  %p6019_p9 = scmp.lt.s32.totalorder %s6010_s9, %s6010_s9 }
  0xb1   : > { %p6013_p2 = pnand %p6011_p0, %p6291_p8  ;;  %p6020_p4 = por %p6019_p9, %p6018_p7 }
  0xb3   : > { %p6014_p5 = pneg %p6013_p2 }
  0xb5   : > { %p6021_p10 = pnand %p6020_p4, %p6014_p5 }
  0xb7   : > { %6024 = shalt.err (!%p6021_p10)
}
  0xb8   : > { %5080 = dma.hbm_to_vmem [thread:$0]  (!%p6275_p6), %s6819_s6, 128, %s330_s26, [#allocation15], %s6177_s25, %s6177_s25, %s6178_s21  }
  0xb9   : > { %s6025_s23 = scalar_lea.hbm %s6821_s8, 16 }
  0xba   : > { %p6026_p1 = scmp.ne.s32.totalorder %s6821_s8, %s6025_s23  ;;  %p6032_p12 = scmp.lt.u32.totalorder %s6025_s23, %s6821_s8 }
  0xbc   : > { %p6028_p3 = pnand %p6026_p1, %p6291_p8 }
  0xbe   : > { %p6029_p11 = pneg %p6028_p3 }
  0xc0   : > { %p6034_p13 = pnand %p6032_p12, %p6029_p11 }
  0xc2   : > { %6037 = shalt.err (!%p6034_p13)
}
  0xc3   : > { %s6038_s25 = scalar_lea.vmem %s6414_s13, 16  ;;  %s6045_s21 = scalar_lea.vmem %s6414_s13, 32 }
  0xc4   : > { %p6039_p0 = scmp.ne.s32.totalorder %s6414_s13, %s6038_s25  ;;  %p6046_p7 = scmp.lt.s32.totalorder %s6414_s13, %s6414_s13 }
  0xc5   : > { %p6047_p9 = scmp.lt.s32.totalorder %s6045_s21, %s6038_s25 }
  0xc6   : > { %p6041_p2 = pnand %p6039_p0, %p6291_p8 }
  0xc7   : > { %p6048_p4 = por %p6047_p9, %p6046_p7 }
  0xc8   : > { %p6042_p5 = pneg %p6041_p2 }
  0xca   : > { %p6049_p10 = pnand %p6048_p4, %p6042_p5 }
  0xcc   : > { %6052 = shalt.err (!%p6049_p10)
}
  0xcd   : > { %5086 = dma.hbm_to_vmem [thread:$0]  (!%p6275_p6), %s6821_s8, 16, %s6414_s13, [#allocation18]  }
  0xce   : > { %s4437_s19 = sadd.s32 4294967294, %s6165_s12   ;;  %s6460_s27 = sadd.s32 1, %s6165_s12  }
  0xcf   : > { %s33_s2 = ssub.s32 %s6165_s12, %s6460_s27  ;;  %s36_s17 = sadd.s32 1, %s6161_s11 }
  0xd0   : > { %p34_p8 = scmp.eq.s32.totalorder %s33_s2, 0  ;;  %p43_p1 = scmp.ne.s32.totalorder %s6161_s11, %s6157_s10 }
  0xd1   : > { %p44_p3 = scmp.eq.s32.totalorder %s6165_s12, 0  ;;  %p49_p11 = scmp.ne.s32.totalorder %s6157_s10, %s6153_s30 }
  0xd2   : > { %s6471_s29 = scalar_select %p34_p8, %s6161_s11, %s36_s17  }
  0xd3   : > { %p6473_p12 = por %p44_p3, %p43_p1  ;;  %p6842_p13 = scmp.eq.s32.totalorder %s6259_s15, 0 }
  0xd4   : > { %p241_p0 = scmp.eq.s32.totalorder %s6259_s15, 1  ;;  %p247_p2 = scmp.eq.s32.totalorder %s4437_s19, 1 }
  0xd5   : > { %p6479_p6 = por %p6842_p13, %p49_p11  ;;  %p5103_p5 = scmp.lt.s32.totalorder %s6165_s12, 2 }
  0xd6   : > { %s367_s23 = sand.u32 1, %s6161_s11   ;;  %p6486_p7 = por %p241_p0, %p43_p1 }
  0xd7   : > { %p6490_p9 = por %p247_p2, %p49_p11  ;;  %s4448_s1 = sshll.u32 %s367_s23, 3 }
  0xd8   : > { %s6844_s18 = scalar_select %p6486_p7, 1, 0 }
  0xd9   : > { %s6845_s28 = scalar_select %p6490_p9, 1, 0 }
  0xda   : > { %s4910_s24 = sshll.u32 %s6165_s12, 7  ;;  %s371_s9 = scalar_lea.vmem [#allocation5], %s4448_s1 }
  0xdb   : > { %s6498_s26 = scalar_lea.hbm %s6813_s0, %s4910_s24  ;;  %s378_s19 = sshll.u32 %s371_s9, 4  ;;  %s6500_s19 = int_to_ptr.vmem [resolvable:$true] %s378_s19 }
  0xdc   : > { %p6504_p4 = pnand %p5103_p5, %p6473_p12  ;;  %s6508_s17 = scalar_lea.sflag [#allocation6], %s367_s23 }
  0xdd   : > { %s6053_s25 = scalar_lea.hbm %s6498_s26, 128  ;;  %s6058_s14 = scalar_lea.hbm %s6813_s0, 256 }
  0xde   : > { %p6054_p10 = scmp.ne.s32.totalorder %s6498_s26, %s6053_s25  ;;  %p6055_p8 = pneg %p6504_p4 }
  0xdf   : > { %p6059_p11 = scmp.lt.u32.totalorder %s6498_s26, %s6813_s0  ;;  %p6060_p12 = scmp.lt.u32.totalorder %s6058_s14, %s6053_s25 }
  0xe0   : > { %p6056_p1 = pnand %p6055_p8, %p6054_p10  ;;  %p6062_p0 = scmp.lt.u32.totalorder %s6053_s25, %s6498_s26 }
  0xe1   : > { %p6061_p13 = por %p6060_p12, %p6059_p11 }
  0xe2   : > { %p6057_p3 = pneg %p6056_p1 }
  0xe3   : > { %p6063_p2 = por %p6062_p0, %p6061_p13 }
  0xe5   : > { %p6064_p5 = pnand %p6063_p2, %p6057_p3 }
  0xe7   : > { %6067 = shalt.err (!%p6064_p5)
}
  0xe8   : > { %s6068_s23 = scalar_lea.vmem %s6500_s19, 128  ;;  %s6181_s1 = smov [#allocation5]  }
  0xe9   : > { %p6069_p10 = scmp.ne.s32.totalorder %s6500_s19, %s6068_s23  ;;  %s6073_s24 = sshll.u32 %s6181_s1, 4  ;;  %s6074_s24 = int_to_ptr.vmem [resolvable:$false] %s6073_s24 }
  0xea   : > { %s6075_s21 = scalar_lea.vmem %s6074_s24, 256  ;;  %p6076_p7 = scmp.lt.s32.totalorder %s6500_s19, %s6074_s24 }
  0xeb   : > { %p6071_p1 = pnand %p6069_p10, %p6055_p8  ;;  %p6077_p11 = scmp.lt.s32.totalorder %s6075_s21, %s6068_s23 }
  0xed   : > { %p6072_p9 = pneg %p6071_p1  ;;  %p6078_p12 = por %p6077_p11, %p6076_p7 }
  0xef   : > { %p6079_p13 = pnand %p6078_p12, %p6072_p9 }
  0xf1   : > { %6082 = shalt.err (!%p6079_p13)
}
  0xf2   : > { %5090 = dma.hbm_to_vmem [thread:$0]  (!%p6504_p4), %s6498_s26, 128, %s6500_s19, %s6508_s17, %s6839_s22, %s6839_s22, %s6838_s20  }
  0xf3   : > { %p6847_p8 = scmp.ne.s32.totalorder %s6834_s16, 0 }
  0xf4   : > { %s6542_s25 = sand.u32 (!%p6847_p8), 1, %s6157_s10  }
  0xf5   : > { %390 = sbr.rel (%p6847_p8) target bundleno = 3085 (0xc0d), region = 56  ;;  %s4452_s14 = sshll.u32 (!%p6847_p8), %s6542_s25, 3 }
  0xf6   : > { %s393_s9 = scalar_lea.sflag (!%p6847_p8), [#allocation6], %s6542_s25  ;;  %s6546_s23 = scalar_lea.vmem (!%p6847_p8), [#allocation5], %s4452_s14 }
  0xfc   : > { %6128 = dma.done.wait (%p6479_p6), %s393_s9, 128  }
  0xfd   : > { %6130 = vsyncadd (%p6479_p6), %s393_s9, 4294967168  ;;  %p6848_p7 = scmp.eq.s32.totalorder %s6259_s15, 0 }
  0xff   : > { %6132 = dma.done.wait (%p6848_p7), [#allocation9], 1040   ;;  %p6849_p9 = pmov %p6848_p7 }
 0x100   : > { %p6850_p4 = pmov %p6848_p7 }
 0x101   : > { %6134 = vsyncadd (%p6849_p9), [#allocation9], 4294966256 }
 0x102   : > { %6136 = dma.done.wait (%p6850_p4), [#allocation12], 41088   ;;  %p6851_p3 = pmov %p6850_p4 }
 0x104   : > { %6138 = vsyncadd (%p6851_p3), [#allocation12], 4294926208  ;;  %p6852_p0 = pmov %p6851_p3 }
 0x106   : > { %6140 = dma.done.wait (%p6852_p0), [#allocation15], 8320   ;;  %p6853_p2 = pmov %p6852_p0 }
 0x107   : > { %p6854_p6 = pmov %p6852_p0 }
 0x108   : > { %6142 = vsyncadd (%p6853_p2), [#allocation15], 4294958976 }
 0x109   : > { %6144 = dma.done.wait (%p6854_p6), [#allocation18], 1040   ;;  %p6855_p5 = pmov %p6852_p0 }
 0x10a   : > { %v6182_v0 = vmov 0.0   ;;  %vm6183_vm0 = vmmov 0   ;;  %v5164_v1 = vld [vmem:[#allocation8] sm:$0xff]   ;;  %v5165_v2 = vld [vmem:[#allocation8 + $0x8] sm:$0xff]   ;;  %v5166_v3 = vld [vmem:[#allocation8 + $0x10] sm:$0xff]   ;;  %v6184_v31 = vmov 0  }
 0x10b   : > { %6146 = vsyncadd (%p6855_p5), [#allocation18], 4294966256  ;;  %4938 = vmatprep.subr.bf16.mxu0 %v6182_v0  ;;  %4954 = vmatprep.mubr.msk.bf16.mxu0 %vm6183_vm0, %v6182_v0  ;;  %v5167_v4 = vld [vmem:[#allocation8 + $0x18] sm:$0xff]   ;;  %v5173_v5 = vld [vmem:[#allocation11 + $0x4] ss:$8 sps:$4 sm:$0xff]   ;;  %vm599_vm1 = vcmask 1040384  }
 0x10c   : > { %4939 = vmatpush3.bf16.msra.mxu0 %v5164_v1  ;;  %v5175_v6 = vld [vmem:[#allocation11] ss:$8 sps:$4 sm:$0xff]   ;;  %1179 = vmatprep.subr.bf16.mxu1 %v5173_v5  ;;  %v5176_v7 = vld [vmem:[#allocation11 + $0x14] ss:$8 sps:$4 sm:$0xff]   ;;  %v5178_v8 = vld [vmem:[#allocation11 + $0x10] ss:$8 sps:$4 sm:$0xff]  }
 0x10d   : > { %4940 = vmatprep.subr.bf16.mxu0 %v6182_v0  ;;  %1180 = vmatpush1.bf16.msra.mxu1 %v5175_v6  ;;  %v5179_v9 = vld [vmem:[#allocation11 + $0x24] ss:$8 sps:$4 sm:$0xff]   ;;  %v5181_v11 = vld [vmem:[#allocation11 + $0x20] ss:$8 sps:$4 sm:$0xff]   ;;  %v5182_v12 = vld [vmem:[#allocation11 + $0x34] ss:$8 sps:$4 sm:$0xff]  }
 0x10e   : > { %1181 = vmatprep.subr.bf16.mxu1 %v5176_v7  ;;  %v5168_v10 = vld [vmem:[#allocation8 + $0x20] sm:$0xff]   ;;  %v5169_v13 = vld [vmem:[#allocation8 + $0x28] sm:$0xff]   ;;  %v5170_v14 = vld [vmem:[#allocation8 + $0x30] sm:$0xff]   ;;  %588 = vst [vmem:[#allocation4] sm:$0xf] %v6184_v31  ;;  %vm600_vm2 = vcmask 1044484  }
 0x10f   : > { %v5184_v15 = vld [vmem:[#allocation11 + $0x30] ss:$8 sps:$4 sm:$0xff]   ;;  %v5185_v16 = vld [vmem:[#allocation11 + $0x44] ss:$8 sps:$4 sm:$0xff]   ;;  %v5187_v17 = vld [vmem:[#allocation11 + $0x40] ss:$8 sps:$4 sm:$0xff]  }
 0x110   : > { %4941 = vmatpush3.bf16.msra.mxu0 %v5165_v2  ;;  %v5188_v18 = vld [vmem:[#allocation11 + $0x54] ss:$8 sps:$4 sm:$0xff]   ;;  %v5190_v20 = vld [vmem:[#allocation11 + $0x50] ss:$8 sps:$4 sm:$0xff]   ;;  %v5191_v22 = vld [vmem:[#allocation11 + $0x64] ss:$8 sps:$4 sm:$0xff]  }
 0x111   : > { %4942 = vmatprep.subr.bf16.mxu0 %v6182_v0  ;;  %1182 = vmatpush1.bf16.msra.mxu1 %v5178_v8  ;;  %v5171_v19 = vld [vmem:[#allocation8 + $0x38] sm:$0xff]   ;;  %v5193_v23 = vld [vmem:[#allocation11 + $0x60] ss:$8 sps:$4 sm:$0xff]   ;;  %v5197_v26 = vld [vmem:[#allocation11 + $0x84] ss:$8 sps:$4 sm:$0xff]   ;;  %vm652_vm6 = vcmask 1046528  }
 0x112   : > { %1183 = vmatprep.subr.bf16.mxu1 %v5179_v9  ;;  %v5172_v21 = vld [vmem:[%s6546_s23] sm:$0xff]   ;;  %v5199_v27 = vld [vmem:[#allocation11 + $0x80] ss:$8 sps:$4 sm:$0xff]   ;;  %589 = vst [vmem:[#allocation4 + $0x4] sm:$0xf] %v6184_v31  ;;  %vm6591_vm3 = vmor %vm599_vm1, %vm600_vm2  ;;  %vm682_vm7 = vcmask 1045504  }
 0x113   : > { %v5194_v24 = vld [vmem:[#allocation11 + $0x74] ss:$8 sps:$4 sm:$0xff]   ;;  %v5196_v25 = vld [vmem:[#allocation11 + $0x70] ss:$8 sps:$4 sm:$0xff]   ;;  %v5203_v30 = vld [vmem:[#allocation11 + $0xa4] ss:$8 sps:$4 sm:$0xff]  }
 0x114   : > { %4943 = vmatpush3.bf16.msra.mxu0 %v5166_v3  ;;  %v5200_v28 = vld [vmem:[#allocation11 + $0x94] ss:$8 sps:$4 sm:$0xff]   ;;  %v5202_v29 = vld [vmem:[#allocation11 + $0x90] ss:$8 sps:$4 sm:$0xff]   ;;  %590 = vst [vmem:[#allocation4 + $0x8] sm:$0xf] %v6184_v31 }
 0x115   : > { %4944 = vmatprep.subr.bf16.mxu0 %v6182_v0  ;;  %1184 = vmatpush1.bf16.msra.mxu1 %v5181_v11  ;;  %v5205_v32 = vld [vmem:[#allocation11 + $0xa0] ss:$8 sps:$4 sm:$0xff]   ;;  %v5206_v33 = vld [vmem:[#allocation11 + $0xb4] ss:$8 sps:$4 sm:$0xff]   ;;  %v5208_v34 = vld [vmem:[#allocation11 + $0xb0] ss:$8 sps:$4 sm:$0xff]  }
 0x116   : > { %1185 = vmatprep.subr.bf16.mxu1 %v5182_v12  ;;  %v5209_v35 = vld [vmem:[#allocation11 + $0xc4] ss:$8 sps:$4 sm:$0xff]   ;;  %v5211_v36 = vld [vmem:[#allocation11 + $0xc0] ss:$8 sps:$4 sm:$0xff]   ;;  %v5212_v37 = vld [vmem:[#allocation11 + $0xd4] ss:$8 sps:$4 sm:$0xff]  }
 0x117   : > { %v5214_v38 = vld [vmem:[#allocation11 + $0xd0] ss:$8 sps:$4 sm:$0xff]   ;;  %v5215_v39 = vld [vmem:[#allocation11 + $0xe4] ss:$8 sps:$4 sm:$0xff]   ;;  %v5217_v40 = vld [vmem:[#allocation11 + $0xe0] ss:$8 sps:$4 sm:$0xff]  }
 0x118   : > { %4945 = vmatpush3.bf16.msra.mxu0 %v5167_v4  ;;  %v5218_v41 = vld [vmem:[#allocation11 + $0xf4] ss:$8 sps:$4 sm:$0xff]   ;;  %v5220_v42 = vld [vmem:[#allocation11 + $0xf0] ss:$8 sps:$4 sm:$0xff]   ;;  %v5225_v43 = vld [vmem:[#allocation11 + $0x104] ss:$8 sps:$4 sm:$0xff]  }
 0x119   : > { %4946 = vmatprep.subr.bf16.mxu0 %v6182_v0  ;;  %1186 = vmatpush1.bf16.msra.mxu1 %v5184_v15  ;;  %v4462_v44 = vld [vmem:[#allocation10] ss:$0 sm:$0xff]  ;;  %vm635_vm4 = vsmask.f32 7424  ;;  %vm660_vm5 = vsmask.f32 6400 }
 0x11a   : > { %1187 = vmatprep.subr.bf16.mxu1 %v5185_v16  ;;  %s4461_s16 = sshll.u32 %s6542_s25, 4  ;;  %s4919_s13 = sshll.u32 %s6259_s15, 8 }
 0x11b   : > { %s462_s20 = scalar_lea.vmem [#allocation20], %s4461_s16  ;;  %s6858_s2 = sld [smem:[#allocation29_spill]] }
 0x11c   : > { %4947 = vmatpush3.bf16.msra.mxu0 %v5168_v10  ;;  %s4288_s22 = sshll.u32 %s462_s20, 4  ;;  %s4275_s1 = scalar_lea.sflag [#allocation7], %s6542_s25  ;;  %s6764_s22 = int_to_ptr.vmem [resolvable:$true] %s4288_s22 }
 0x11d   : > { %4948 = vmatprep.subr.bf16.mxu0 %v6182_v0  ;;  %1188 = vmatpush1.bf16.msra.mxu1 %v5187_v17  ;;  %v5223_v17 = vld [vmem:[#allocation11 + $0x100] ss:$8 sps:$4 sm:$0xff]   ;;  %s6083_s15 = scalar_lea.vmem %s6764_s22, 256  ;;  %p6859_p1 = scmp.ne.s32.totalorder %s6844_s18, 0 }
 0x11e   : > { %1189 = vmatprep.subr.bf16.mxu1 %v5188_v18  ;;  %p6084_p10 = scmp.ne.s32.totalorder %s6764_s22, %s6083_s15  ;;  %s6185_s24 = smov [#allocation20]  }
 0x11f   : > { %s6087_s21 = sshll.u32 %s6185_s24, 4  ;;  %s6088_s21 = int_to_ptr.vmem [resolvable:$false] %s6087_s21 }
 0x120   : > { %4949 = vmatpush3.bf16.msra.mxu0 %v5169_v13  ;;  %p6085_p11 = pnand %p6084_p10, %p6859_p1  ;;  %s6089_s14 = scalar_lea.vmem %s6088_s21, 512 }
 0x121   : > { %4950 = vmatprep.subr.bf16.mxu0 %v6182_v0  ;;  %1190 = vmatpush1.bf16.msra.mxu1 %v5190_v20  ;;  %s6769_s17 = scalar_lea.hbm %s6858_s2, %s4919_s13  ;;  %p6090_p13 = scmp.lt.s32.totalorder %s6764_s22, %s6088_s21 }
 0x122   : > { %1191 = vmatprep.subr.bf16.mxu1 %v5191_v22  ;;  %v5231_v22 = vld [vmem:[#allocation11 + $0x114] ss:$8 sps:$4 sm:$0xff]   ;;  %p6086_p12 = pneg %p6085_p11  ;;  %p6091_p8 = scmp.lt.s32.totalorder %s6089_s14, %s6083_s15 }
 0x124   : > { %4951 = vmatpush3.bf16.msra.mxu0 %v5170_v14  ;;  %p6092_p7 = por %p6091_p8, %p6090_p13 }
 0x125   : > { %4952 = vmatprep.subr.bf16.mxu0 %v6182_v0  ;;  %1192 = vmatpush1.bf16.msra.mxu1 %v5193_v23 }
 0x126   : > { %1193 = vmatprep.subr.bf16.mxu1 %v5194_v24  ;;  %v5229_v24 = vld [vmem:[#allocation11 + $0x110] ss:$8 sps:$4 sm:$0xff]   ;;  %p6093_p9 = pnand %p6092_p7, %p6086_p12 }
 0x128   : > { %4953 = vmatpush3.bf16.msra.mxu0 %v5171_v19 }
 0x129   : > { %1194 = vmatpush1.bf16.msra.mxu1 %v5196_v25  ;;  %v5234_v25 = vld [vmem:[#allocation11 + $0x124] ss:$8 sps:$4 sm:$0xff]  }
 0x12a   : > { %1195 = vmatprep.subr.bf16.mxu1 %v5197_v26  ;;  %v5232_v26 = vld [vmem:[#allocation11 + $0x120] ss:$8 sps:$4 sm:$0xff]  }
 0x12b   : > { %4955 = vmatmul.mubr.bf16.vlgmr.msra.gmra.mrb[0].mxu0 %v5172_v21 }
 0x12c   : > { %1465 = vmatprep.mubr.bf16.mxu0 %v6184_v31 }
 0x12d   : > { %1196 = vmatpush1.bf16.msra.mxu1 %v5199_v27  ;;  %v5237_v27 = vld [vmem:[#allocation11 + $0x134] ss:$8 sps:$4 sm:$0xff]  }
 0x12e   : > { %1197 = vmatprep.subr.bf16.mxu1 %v5200_v28  ;;  %v5235_v28 = vld [vmem:[#allocation11 + $0x130] ss:$8 sps:$4 sm:$0xff]  }
 0x131   : > { %1198 = vmatpush1.bf16.msra.mxu1 %v5202_v29  ;;  %v5240_v29 = vld [vmem:[#allocation11 + $0x144] ss:$8 sps:$4 sm:$0xff]  }
 0x132   : > { %1199 = vmatprep.subr.bf16.mxu1 %v5203_v30  ;;  %v5238_v30 = vld [vmem:[#allocation11 + $0x140] ss:$8 sps:$4 sm:$0xff]  }
 0x135   : > { %1200 = vmatpush1.bf16.msra.mxu1 %v5205_v32  ;;  %v5243_v32 = vld [vmem:[#allocation11 + $0x154] ss:$8 sps:$4 sm:$0xff]  }
 0x136   : > { %1201 = vmatprep.subr.bf16.mxu1 %v5206_v33  ;;  %v5241_v33 = vld [vmem:[#allocation11 + $0x150] ss:$8 sps:$4 sm:$0xff]  }
 0x139   : > { %1202 = vmatpush1.bf16.msra.mxu1 %v5208_v34  ;;  %v5246_v34 = vld [vmem:[#allocation11 + $0x164] ss:$8 sps:$4 sm:$0xff]  }
 0x13a   : > { %1203 = vmatprep.subr.bf16.mxu1 %v5209_v35  ;;  %v5244_v35 = vld [vmem:[#allocation11 + $0x160] ss:$8 sps:$4 sm:$0xff]  }
 0x13d   : > { %1204 = vmatpush1.bf16.msra.mxu1 %v5211_v36  ;;  %v5249_v36 = vld [vmem:[#allocation11 + $0x174] ss:$8 sps:$4 sm:$0xff]  }
 0x13e   : > { %1205 = vmatprep.subr.bf16.mxu1 %v5212_v37  ;;  %v5247_v37 = vld [vmem:[#allocation11 + $0x170] ss:$8 sps:$4 sm:$0xff]  }
 0x141   : > { %1206 = vmatpush1.bf16.msra.mxu1 %v5214_v38  ;;  %v5252_v38 = vld [vmem:[#allocation11 + $0x184] ss:$8 sps:$4 sm:$0xff]  }
 0x142   : > { %1207 = vmatprep.subr.bf16.mxu1 %v5215_v39  ;;  %v5250_v39 = vld [vmem:[#allocation11 + $0x180] ss:$8 sps:$4 sm:$0xff]  }
 0x145   : > { %1208 = vmatpush1.bf16.msra.mxu1 %v5217_v40  ;;  %v5255_v40 = vld [vmem:[#allocation11 + $0x194] ss:$8 sps:$4 sm:$0xff]  }
 0x146   : > { %1209 = vmatprep.subr.bf16.mxu1 %v5218_v41  ;;  %v5253_v41 = vld [vmem:[#allocation11 + $0x190] ss:$8 sps:$4 sm:$0xff]  }
 0x149   : > { %1210 = vmatpush1.bf16.msra.mxu1 %v5220_v42  ;;  %v5258_v42 = vld [vmem:[#allocation11 + $0x1a4] ss:$8 sps:$4 sm:$0xff]  }
 0x14a   : > { %1222 = vmatprep.subr.bf16.mxu1 %v5225_v43  ;;  %v5256_v43 = vld [vmem:[#allocation11 + $0x1a0] ss:$8 sps:$4 sm:$0xff]  }
 0x1fe   : > { %v577_v45 = vpop.f32.mrb[0].mxu0 }
 0x1ff   : > { %v6583_v46 = vadd.f32 %v4462_v44, %v577_v45  ;;  %v4956_v47 = vpop.f32.mrb[1].mxu0  ;;  %v5259_v45 = vld [vmem:[#allocation11 + $0x1b0] ss:$8 sps:$4 sm:$0xff]  }
 0x200   : > { %v580_v48 = vpop.f32.mrb[2].mxu0  ;;  %v5264_v47 = vld [vmem:[#allocation11 + $0x1c4] ss:$8 sps:$4 sm:$0xff]  }
 0x201   : > { %v4911_v49 = vpack.c.bf16 %v6583_v46, %v6583_v46  ;;  %v6587_v50 = vadd.f32 %v4462_v44, %v580_v48  ;;  %v4957_v51 = vpop.f32.mrb[3].mxu0  ;;  %v5261_v44 = vld [vmem:[#allocation11 + $0x1b4] ss:$8 sps:$4 sm:$0xff]   ;;  %v5262_v48 = vld [vmem:[#allocation11 + $0x1c0] ss:$8 sps:$4 sm:$0xff]  }
 0x202   : > { %v5265_v51 = vld [vmem:[#allocation11 + $0x1d0] ss:$8 sps:$4 sm:$0xff]  }
 0x203   : > { %v602_v52 = vrot.slane %v4911_v49, 7  ;;  %v4912_v53 = vpack.c.bf16 %v6587_v50, %v6587_v50  ;;  %v5267_v49 = vld [vmem:[#allocation11 + $0x1d4] ss:$8 sps:$4 sm:$0xff]  }
 0x205   : > { %v603_v55 = vrot.slane %v602_v52, 4  ;;  %610 = vst [vmem:[#allocation4] sm:$0xe] %v602_v52  ;;  %v604_v56 = vrot.slane %v4912_v53, 7  ;;  %v5270_v52 = vld [vmem:[#allocation11 + $0x1e4] ss:$8 sps:$4 sm:$0xff]  }
 0x206   : > { %v5268_v53 = vld [vmem:[#allocation11 + $0x1e0] ss:$8 sps:$4 sm:$0xff]  }
 0x207   : > { %v605_v57 = vsel %vm6591_vm3, %v603_v55, %v604_v56  ;;  %v606_v58 = vrot.slane %v604_v56, 4  ;;  %v5273_v55 = vld [vmem:[#allocation11 + $0x1f4] ss:$8 sps:$4 sm:$0xff]   ;;  %v5271_v56 = vld [vmem:[#allocation11 + $0x1f0] ss:$8 sps:$4 sm:$0xff]  }
 0x208   : > { %611 = vst [vmem:[#allocation4 + $0x4] sm:$0xf] %v605_v57  ;;  %v5276_v57 = vld [vmem:[#allocation11 + $0x204] ss:$8 sps:$4 sm:$0xff]  }
 0x209   : > { %612 = vst [vmem:[#allocation4 + $0x8] sm:$0x1] %v606_v58 }
 0x20c   : > { %v615_v59 = vld [vmem:[#allocation4] sm:$0xf] }
 0x20d   : > { %v618_v61 = vld [vmem:[#allocation4] sm:$0xe] }
 0x20f   : > { %v6597_v60 = vld [vmem:[#allocation4 + $0x4] sm:$0xf] }
 0x210   : > { %v4475_v62 = vcombine.low %v615_v59, %v6597_v60  ;;  %v6600_v63 = vld [vmem:[#allocation4 + $0x8] ss:$0 sps:$4 sm:$0x11]   ;;  %v6603_v1 = vcombine.low %v618_v61, %v6597_v60  ;;  %v5226_v21 = vld [vmem:[#allocation4] sm:$0xff]  }
 0x211   : > { %v6605_v2 = vld [vmem:[#allocation4 + $0x8] ss:$0 sps:$4 sm:$0x33]   ;;  %v644_v4 = vshll.u32 %v6600_v63, 16  ;;  %v654_v59 = vrot.slane %v6600_v63, 1 }
 0x212   : > { %v639_v3 = vshll.u32 %v4475_v62, 16  ;;  %v662_v5 = vshrl.u32 %v6603_v1, 16  ;;  %v665_v6 = vshll.u32 %v6603_v1, 16  ;;  %v670_v7 = vshrl.u32 %v6605_v2, 16  ;;  %v5274_v61 = vld [vmem:[#allocation11 + $0x200] ss:$8 sps:$4 sm:$0xff]  }
 0x213   : > { %v673_v8 = vshll.u32 %v6605_v2, 16  ;;  %v637_v9 = vshrl.u32 %v4475_v62, 16  ;;  %v646_v16 = vrot.slane %v644_v4, 1  ;;  %v653_v58 = vrot.slane %v6603_v1, 1  ;;  %v5279_v62 = vld [vmem:[#allocation11 + $0x214] ss:$8 sps:$4 sm:$0xff]  }
 0x214   : > { %v641_v10 = vrot.slane %v639_v3, 1  ;;  %v664_v11 = vrot.slane %v662_v5, 1  ;;  %v667_v12 = vrot.slane %v665_v6, 2  ;;  %v672_v13 = vrot.slane %v670_v7, 1  ;;  %v5277_v4 = vld [vmem:[#allocation11 + $0x210] ss:$8 sps:$4 sm:$0xff]  }
 0x215   : > { %v675_v14 = vrot.slane %v673_v8, 2  ;;  %v655_v3 = vsel %vm652_vm6, %v653_v58, %v654_v59  ;;  %v5282_v5 = vld [vmem:[#allocation11 + $0x224] ss:$8 sps:$4 sm:$0xff]   ;;  %v5280_v6 = vld [vmem:[#allocation11 + $0x220] ss:$8 sps:$4 sm:$0xff]  }
 0x216   : > { %v642_v15 = vor.u32 %v641_v10, %v637_v9  ;;  %v668_v18 = vor.u32 %v667_v12, %v664_v11  ;;  %v5285_v1 = vld [vmem:[#allocation11 + $0x234] ss:$8 sps:$4 sm:$0xff]   ;;  %v5283_v63 = vld [vmem:[#allocation11 + $0x230] ss:$8 sps:$4 sm:$0xff]   ;;  %v5288_v7 = vld [vmem:[#allocation11 + $0x244] ss:$8 sps:$4 sm:$0xff]  }
 0x217   : > { %v676_v19 = vor.u32 %v675_v14, %v672_v13  ;;  %v5286_v8 = vld [vmem:[#allocation11 + $0x240] ss:$8 sps:$4 sm:$0xff]   ;;  %v5291_v9 = vld [vmem:[#allocation11 + $0x254] ss:$8 sps:$4 sm:$0xff]   ;;  %v5289_v10 = vld [vmem:[#allocation11 + $0x250] ss:$8 sps:$4 sm:$0xff]  }
 0x218   : > { %v647_v20 = vsel %vm635_vm4, %v642_v15, %v646_v16  ;;  %v5294_v11 = vld [vmem:[#allocation11 + $0x264] ss:$8 sps:$4 sm:$0xff]   ;;  %v5292_v12 = vld [vmem:[#allocation11 + $0x260] ss:$8 sps:$4 sm:$0xff]   ;;  %v5297_v13 = vld [vmem:[#allocation11 + $0x274] ss:$8 sps:$4 sm:$0xff]  }
 0x219   : > { %1211 = vmatprep.mubr.bf16.mxu1 %v647_v20  ;;  %v677_v23 = vsel %vm660_vm5, %v668_v18, %v676_v19  ;;  %v620_v14 = vld [vmem:[#allocation4] sm:$0xc]  ;;  %v5295_v16 = vld [vmem:[#allocation11 + $0x270] ss:$8 sps:$4 sm:$0xff]   ;;  %v684_v18 = vrot.slane %v6605_v2, 2 }
 0x21a   : > { %1212 = vmatmul.mubr.bf16.vlgmr.msra.gmra.mrb[0].mxu1 %v5226_v21  ;;  %v4479_v15 = vcombine.low %v620_v14, %v6597_v60  ;;  %v5301_v20 = vld [vmem:[#allocation14 + $0x4] ss:$8 sps:$4 sm:$0xff]   ;;  %v5299_v21 = vld [vmem:[#allocation14] ss:$8 sps:$4 sm:$0xff]   ;;  %v5310_v2 = vld [vmem:[#allocation14 + $0x34] ss:$8 sps:$4 sm:$0xff]  }
 0x21b   : > { %1223 = vmatpush1.bf16.msra.mxu1 %v5223_v17  ;;  %1254 = vmatprep.mubr.bf16.mxu1 %v677_v23  ;;  %v5302_v23 = vld [vmem:[#allocation14 + $0x10] ss:$8 sps:$4 sm:$0xff]   ;;  %v5307_v60 = vld [vmem:[#allocation14 + $0x24] ss:$8 sps:$4 sm:$0xff]  }
 0x21c   : > { %1224 = vmatprep.subr.bf16.mxu1 %v5231_v22  ;;  %v683_v17 = vrot.slane %v4479_v15, 2  ;;  %1433 = vmatprep.subr.bf16.mxu0 %v5301_v20  ;;  %v5304_v22 = vld [vmem:[#allocation14 + $0x14] ss:$8 sps:$4 sm:$0xff]   ;;  %v5335_v14 = vld [vmem:[#allocation11 + $0x2c0] ss:$8 sps:$4 sm:$0xff]  }
 0x21d   : > { %1434 = vmatpush1.bf16.msra.mxu0 %v5299_v21  ;;  %v5340_v15 = vld [vmem:[#allocation11 + $0x2d4] ss:$8 sps:$4 sm:$0xff]   ;;  %v5344_v20 = vld [vmem:[#allocation11 + $0x2f0] ss:$8 sps:$4 sm:$0xff]   ;;  %v5349_v21 = vld [vmem:[#allocation11 + $0x304] ss:$8 sps:$4 sm:$0xff]  }
 0x21e   : > { %v685_v19 = vsel %vm682_vm7, %v683_v17, %v684_v18  ;;  %1435 = vmatprep.subr.bf16.mxu0 %v5304_v22  ;;  %v5343_v17 = vld [vmem:[#allocation11 + $0x2e4] ss:$8 sps:$4 sm:$0xff]   ;;  %v5341_v18 = vld [vmem:[#allocation11 + $0x2e0] ss:$8 sps:$4 sm:$0xff]  }
 0x21f   : > { %1225 = vmatpush1.bf16.msra.mxu1 %v5229_v24  ;;  %v5305_v24 = vld [vmem:[#allocation14 + $0x20] ss:$8 sps:$4 sm:$0xff]  }
 0x220   : > { %1226 = vmatprep.subr.bf16.mxu1 %v5234_v25  ;;  %v5308_v25 = vld [vmem:[#allocation14 + $0x30] ss:$8 sps:$4 sm:$0xff]  }
 0x221   : > { %1436 = vmatpush1.bf16.msra.mxu0 %v5302_v23  ;;  %v5347_v22 = vld [vmem:[#allocation11 + $0x300] ss:$8 sps:$4 sm:$0xff]   ;;  %v5352_v23 = vld [vmem:[#allocation11 + $0x314] ss:$8 sps:$4 sm:$0xff]  }
 0x222   : > { %1437 = vmatprep.subr.bf16.mxu0 %v5307_v60  ;;  %v5350_v60 = vld [vmem:[#allocation11 + $0x310] ss:$8 sps:$4 sm:$0xff]  }
 0x223   : > { %1227 = vmatpush1.bf16.msra.mxu1 %v5232_v26  ;;  %v5311_v26 = vld [vmem:[#allocation14 + $0x40] ss:$8 sps:$4 sm:$0xff]  }
 0x224   : > { %1228 = vmatprep.subr.bf16.mxu1 %v5237_v27  ;;  %v5313_v27 = vld [vmem:[#allocation14 + $0x44] ss:$8 sps:$4 sm:$0xff]  }
 0x225   : > { %1438 = vmatpush1.bf16.msra.mxu0 %v5305_v24  ;;  %v5355_v24 = vld [vmem:[#allocation11 + $0x324] ss:$8 sps:$4 sm:$0xff]  }
 0x226   : > { %1439 = vmatprep.subr.bf16.mxu0 %v5310_v2  ;;  %v5353_v2 = vld [vmem:[#allocation11 + $0x320] ss:$8 sps:$4 sm:$0xff]  }
 0x227   : > { %1229 = vmatpush1.bf16.msra.mxu1 %v5235_v28  ;;  %v5316_v28 = vld [vmem:[#allocation14 + $0x54] ss:$8 sps:$4 sm:$0xff]  }
 0x228   : > { %1230 = vmatprep.subr.bf16.mxu1 %v5240_v29  ;;  %v5314_v29 = vld [vmem:[#allocation14 + $0x50] ss:$8 sps:$4 sm:$0xff]  }
 0x229   : > { %1440 = vmatpush1.bf16.msra.mxu0 %v5308_v25  ;;  %v5358_v25 = vld [vmem:[#allocation11 + $0x334] ss:$8 sps:$4 sm:$0xff]  }
 0x22a   : > { %1441 = vmatprep.subr.bf16.mxu0 %v5313_v27  ;;  %v5359_v27 = vld [vmem:[#allocation11 + $0x340] ss:$8 sps:$4 sm:$0xff]  }
 0x22b   : > { %1231 = vmatpush1.bf16.msra.mxu1 %v5238_v30  ;;  %v5319_v30 = vld [vmem:[#allocation14 + $0x64] ss:$8 sps:$4 sm:$0xff]  }
 0x22c   : > { %1232 = vmatprep.subr.bf16.mxu1 %v5243_v32  ;;  %v5317_v32 = vld [vmem:[#allocation14 + $0x60] ss:$8 sps:$4 sm:$0xff]  }
 0x22d   : > { %1442 = vmatpush1.bf16.msra.mxu0 %v5311_v26  ;;  %v5356_v26 = vld [vmem:[#allocation11 + $0x330] ss:$8 sps:$4 sm:$0xff]  }
 0x22e   : > { %1443 = vmatprep.subr.bf16.mxu0 %v5316_v28  ;;  %v5361_v28 = vld [vmem:[#allocation11 + $0x344] ss:$8 sps:$4 sm:$0xff]  }
 0x22f   : > { %1233 = vmatpush1.bf16.msra.mxu1 %v5241_v33  ;;  %v5322_v33 = vld [vmem:[#allocation14 + $0x74] ss:$8 sps:$4 sm:$0xff]  }
 0x230   : > { %1234 = vmatprep.subr.bf16.mxu1 %v5246_v34  ;;  %v5320_v34 = vld [vmem:[#allocation14 + $0x70] ss:$8 sps:$4 sm:$0xff]  }
 0x231   : > { %1444 = vmatpush1.bf16.msra.mxu0 %v5314_v29  ;;  %v5364_v29 = vld [vmem:[#allocation11 + $0x354] ss:$8 sps:$4 sm:$0xff]  }
 0x232   : > { %1445 = vmatprep.subr.bf16.mxu0 %v5319_v30  ;;  %v5362_v30 = vld [vmem:[#allocation11 + $0x350] ss:$8 sps:$4 sm:$0xff]  }
 0x233   : > { %1235 = vmatpush1.bf16.msra.mxu1 %v5244_v35  ;;  %v5325_v35 = vld [vmem:[#allocation11 + $0x284] ss:$8 sps:$4 sm:$0xff]  }
 0x234   : > { %1236 = vmatprep.subr.bf16.mxu1 %v5249_v36  ;;  %v769_v36 = vlaneseq }
 0x235   : > { %1446 = vmatpush1.bf16.msra.mxu0 %v5317_v32  ;;  %v5367_v32 = vld [vmem:[#allocation11 + $0x364] ss:$8 sps:$4 sm:$0xff]  }
 0x236   : > { %1447 = vmatprep.subr.bf16.mxu0 %v5322_v33  ;;  %v5365_v33 = vld [vmem:[#allocation11 + $0x360] ss:$8 sps:$4 sm:$0xff]  }
 0x237   : > { %1237 = vmatpush1.bf16.msra.mxu1 %v5247_v37  ;;  %v770_v37 = vshrl.u32 %v769_v36, 7  ;;  %v5375_v36 = vld [vmem:[#allocation11 + $0x384] ss:$8 sps:$4 sm:$0xff]  }
 0x238   : > { %1238 = vmatprep.subr.bf16.mxu1 %v5252_v38 }
 0x239   : > { %1448 = vmatpush1.bf16.msra.mxu0 %v5320_v34  ;;  %v6622_v38 = vsub.s32 1, %v770_v37  ;;  %v5370_v34 = vld [vmem:[#allocation11 + $0x374] ss:$8 sps:$4 sm:$0xff]  }
 0x23a   : > { %2071 = vmatprep.subr.bf16.mxu0 %v5325_v35  ;;  %v5368_v35 = vld [vmem:[#allocation11 + $0x370] ss:$8 sps:$4 sm:$0xff]  }
 0x23b   : > { %1239 = vmatpush1.bf16.msra.mxu1 %v5250_v39  ;;  %v767_v39 = vld [vmem:[#allocation13] sm:$0x3] }
 0x23c   : > { %1240 = vmatprep.subr.bf16.mxu1 %v5255_v40  ;;  %v776_v40 = vrot.slane %v767_v39, %v6622_v38 }
 0x23f   : > { %1241 = vmatpush1.bf16.msra.mxu1 %v5253_v41 }
 0x240   : > { %1242 = vmatprep.subr.bf16.mxu1 %v5258_v42 }
 0x243   : > { %1243 = vmatpush1.bf16.msra.mxu1 %v5256_v43 }
 0x244   : > { %1244 = vmatprep.subr.bf16.mxu1 %v5261_v44 }
 0x247   : > { %1245 = vmatpush1.bf16.msra.mxu1 %v5259_v45 }
 0x248   : > { %1246 = vmatprep.subr.bf16.mxu1 %v5264_v47 }
 0x24b   : > { %1247 = vmatpush1.bf16.msra.mxu1 %v5262_v48 }
 0x24c   : > { %1248 = vmatprep.subr.bf16.mxu1 %v5267_v49  ;;  %v6625_v49 = vsub.s32 0, %v770_v37  ;;  %v6628_v37 = vld [vmem:[#allocation16] sm:$0x3] }
 0x24f   : > { %1249 = vmatpush1.bf16.msra.mxu1 %v5265_v51 }
 0x250   : > { %1250 = vmatprep.subr.bf16.mxu1 %v5270_v52  ;;  %v772_v52 = vrot.slane %v767_v39, %v6625_v49  ;;  %v1346_v39 = vrot.slane %v6628_v37, %v6625_v49 }
 0x253   : > { %1251 = vmatpush1.bf16.msra.mxu1 %v5268_v53 }
 0x254   : > { %1252 = vmatprep.subr.bf16.mxu1 %v5273_v55 }
 0x257   : > { %1253 = vmatpush1.bf16.msra.mxu1 %v5271_v56 }
 0x258   : > { %1265 = vmatprep.subr.bf16.mxu1 %v5276_v57 }
 0x25a   : > { %1255 = vmatmul.mubr.bf16.vlgmr.msra.gmra.mrb[0].mxu1 %v655_v3 }
 0x25b   : > { %1266 = vmatpush1.bf16.msra.mxu1 %v5274_v61  ;;  %1297 = vmatprep.mubr.bf16.mxu1 %v6184_v31 }
 0x25c   : > { %1267 = vmatprep.subr.bf16.mxu1 %v5279_v62 }
 0x25f   : > { %1268 = vmatpush1.bf16.msra.mxu1 %v5277_v4 }
 0x260   : > { %1269 = vmatprep.subr.bf16.mxu1 %v5282_v5 }
 0x263   : > { %1270 = vmatpush1.bf16.msra.mxu1 %v5280_v6 }
 0x264   : > { %1271 = vmatprep.subr.bf16.mxu1 %v5285_v1  ;;  %v5323_v1 = vld [vmem:[#allocation11 + $0x280] ss:$8 sps:$4 sm:$0xff]  }
 0x267   : > { %1272 = vmatpush1.bf16.msra.mxu1 %v5283_v63 }
 0x268   : > { %1273 = vmatprep.subr.bf16.mxu1 %v5288_v7  ;;  %v5328_v7 = vld [vmem:[#allocation11 + $0x294] ss:$8 sps:$4 sm:$0xff]  }
 0x26b   : > { %1274 = vmatpush1.bf16.msra.mxu1 %v5286_v8  ;;  %v5326_v8 = vld [vmem:[#allocation11 + $0x290] ss:$8 sps:$4 sm:$0xff]  }
 0x26c   : > { %1275 = vmatprep.subr.bf16.mxu1 %v5291_v9  ;;  %v5331_v9 = vld [vmem:[#allocation11 + $0x2a4] ss:$8 sps:$4 sm:$0xff]  }
 0x26f   : > { %1276 = vmatpush1.bf16.msra.mxu1 %v5289_v10  ;;  %v5329_v10 = vld [vmem:[#allocation11 + $0x2a0] ss:$8 sps:$4 sm:$0xff]  }
 0x270   : > { %1277 = vmatprep.subr.bf16.mxu1 %v5294_v11  ;;  %v5334_v11 = vld [vmem:[#allocation11 + $0x2b4] ss:$8 sps:$4 sm:$0xff]  }
 0x273   : > { %1278 = vmatpush1.bf16.msra.mxu1 %v5292_v12  ;;  %v5332_v12 = vld [vmem:[#allocation11 + $0x2b0] ss:$8 sps:$4 sm:$0xff]  }
 0x274   : > { %1279 = vmatprep.subr.bf16.mxu1 %v5297_v13  ;;  %v5337_v13 = vld [vmem:[#allocation11 + $0x2c4] ss:$8 sps:$4 sm:$0xff]  }
 0x277   : > { %1280 = vmatpush1.bf16.msra.mxu1 %v5295_v16  ;;  %v5338_v16 = vld [vmem:[#allocation11 + $0x2d0] ss:$8 sps:$4 sm:$0xff]  }
 0x27a   : > { %1298 = vmatmul.mubr.bf16.vlgmr.msra.gmra.mrb[0].mxu1 %v685_v19  ;;  %v5346_v19 = vld [vmem:[#allocation11 + $0x2f4] ss:$8 sps:$4 sm:$0xff]  }
 0x27b   : > { %2359 = vmatprep.mubr.bf16.mxu1 %v6184_v31 }
 0x34d   : > { %v1299_v41 = vpop.f32.mrb[0].mxu1 }
 0x34e   : > { %v1301_v42 = vpop.f32.mrb[1].mxu1  ;;  %v4978_v53 = vadd.f32 %v1299_v41, %v772_v52 }
 0x34f   : > { %v4979_v43 = vadd.f32 %v1301_v42, %v776_v40  ;;  %v1303_v44 = vpop.f32.mrb[2].mxu1 }
 0x350   : > { %v1305_v45 = vpop.f32.mrb[3].mxu1  ;;  %v4980_v56 = vadd.f32 %v1303_v44, %v772_v52 }
 0x351   : > { %v4560_v47 = vmul.f32 -1.442695, %v4979_v43  ;;  %v4981_v48 = vadd.f32 %v1305_v45, %v776_v40 }
 0x353   : > { %5781 = vpow2.f32 %v4560_v47  ;;  %v4561_v51 = vmul.f32 -1.442695, %v4981_v48 }
 0x355   : > { %5783 = vpow2.f32 %v4561_v51 }
 0x356   : > { %5785 = vtanh.f32 %v4978_v53 }
 0x35d   : > { %v5782_v55 = vpop.eup %5781 }
 0x35e   : > { %v1316_v57 = vadd.f32 1.0, %v5782_v55 }
 0x35f   : > { %v5784_v58 = vpop.eup %5783 }
 0x360   : > { %5787 = vrcp.f32 %v1316_v57  ;;  %v1317_v59 = vadd.f32 1.0, %v5784_v58  ;;  %v5786_v61 = vpop.eup %5785 }
 0x361   : > { %5789 = vtanh.f32 %v4980_v56 }
 0x362   : > { %5791 = vrcp.f32 %v1317_v59 }
 0x36a   : > { %v5788_v62 = vpop.eup %5787 }
 0x36b   : > { %v5790_v3 = vpop.eup %5789  ;;  %v1322_v4 = vmul.f32 %v5788_v62, %v5786_v61 }
 0x36c   : > { %v5792_v5 = vpop.eup %5791 }
 0x36d   : > { %v1323_v6 = vmul.f32 %v5792_v5, %v5790_v3 }
 0x36f   : > { %v1324_v63 = vpack.c.bf16 %v1323_v6, %v1322_v4 }
 0x371   : > { %1466 = vmatmul.mubr.bf16.vlgmr.msra.gmra.mrb[4].mxu0 %v1324_v63 }
 0x372   : > { %2072 = vmatpush1.bf16.msra.mxu0 %v5323_v1 }
 0x373   : > { %2073 = vmatprep.subr.bf16.mxu0 %v5328_v7 }
 0x376   : > { %2074 = vmatpush1.bf16.msra.mxu0 %v5326_v8 }
 0x377   : > { %2075 = vmatprep.subr.bf16.mxu0 %v5331_v9 }
 0x37a   : > { %2076 = vmatpush1.bf16.msra.mxu0 %v5329_v10 }
 0x37b   : > { %2077 = vmatprep.subr.bf16.mxu0 %v5334_v11 }
 0x37e   : > { %2078 = vmatpush1.bf16.msra.mxu0 %v5332_v12 }
 0x37f   : > { %2079 = vmatprep.subr.bf16.mxu0 %v5337_v13 }
 0x382   : > { %2080 = vmatpush1.bf16.msra.mxu0 %v5335_v14 }
 0x383   : > { %2081 = vmatprep.subr.bf16.mxu0 %v5340_v15 }
 0x386   : > { %2082 = vmatpush1.bf16.msra.mxu0 %v5338_v16 }
 0x387   : > { %2083 = vmatprep.subr.bf16.mxu0 %v5343_v17  ;;  %v5373_v17 = vld [vmem:[#allocation11 + $0x380] ss:$8 sps:$4 sm:$0xff]  }
 0x38a   : > { %2084 = vmatpush1.bf16.msra.mxu0 %v5341_v18 }
 0x38b   : > { %2085 = vmatprep.subr.bf16.mxu0 %v5346_v19 }
 0x38e   : > { %2086 = vmatpush1.bf16.msra.mxu0 %v5344_v20 }
 0x38f   : > { %2087 = vmatprep.subr.bf16.mxu0 %v5349_v21 }
 0x392   : > { %2088 = vmatpush1.bf16.msra.mxu0 %v5347_v22  ;;  %v5381_v22 = vld [vmem:[#allocation11 + $0x394] ss:$8 sps:$4 sm:$0xff]  }
 0x393   : > { %2089 = vmatprep.subr.bf16.mxu0 %v5352_v23 }
 0x396   : > { %2090 = vmatpush1.bf16.msra.mxu0 %v5350_v60  ;;  %v5379_v60 = vld [vmem:[#allocation11 + $0x390] ss:$8 sps:$4 sm:$0xff]  }
 0x397   : > { %2091 = vmatprep.subr.bf16.mxu0 %v5355_v24  ;;  %v5384_v24 = vld [vmem:[#allocation11 + $0x3a4] ss:$8 sps:$4 sm:$0xff]  }
 0x39a   : > { %2092 = vmatpush1.bf16.msra.mxu0 %v5353_v2  ;;  %v5382_v2 = vld [vmem:[#allocation11 + $0x3a0] ss:$8 sps:$4 sm:$0xff]  }
 0x39b   : > { %2093 = vmatprep.subr.bf16.mxu0 %v5358_v25  ;;  %v5387_v25 = vld [vmem:[#allocation11 + $0x3b4] ss:$8 sps:$4 sm:$0xff]  }
 0x39e   : > { %2094 = vmatpush1.bf16.msra.mxu0 %v5356_v26  ;;  %v5385_v26 = vld [vmem:[#allocation11 + $0x3b0] ss:$8 sps:$4 sm:$0xff]  }
 0x39f   : > { %2095 = vmatprep.subr.bf16.mxu0 %v5361_v28  ;;  %v5388_v28 = vld [vmem:[#allocation11 + $0x3c0] ss:$8 sps:$4 sm:$0xff]  }
 0x3a2   : > { %2096 = vmatpush1.bf16.msra.mxu0 %v5359_v27  ;;  %v5390_v27 = vld [vmem:[#allocation11 + $0x3c4] ss:$8 sps:$4 sm:$0xff]  }
 0x3a3   : > { %2097 = vmatprep.subr.bf16.mxu0 %v5364_v29  ;;  %v5393_v29 = vld [vmem:[#allocation11 + $0x3d4] ss:$8 sps:$4 sm:$0xff]  }
 0x3a6   : > { %2098 = vmatpush1.bf16.msra.mxu0 %v5362_v30  ;;  %v5391_v30 = vld [vmem:[#allocation11 + $0x3d0] ss:$8 sps:$4 sm:$0xff]  }
 0x3a7   : > { %2099 = vmatprep.subr.bf16.mxu0 %v5367_v32  ;;  %v5396_v32 = vld [vmem:[#allocation11 + $0x3e4] ss:$8 sps:$4 sm:$0xff]  }
 0x3aa   : > { %2100 = vmatpush1.bf16.msra.mxu0 %v5365_v33  ;;  %v5394_v33 = vld [vmem:[#allocation11 + $0x3e0] ss:$8 sps:$4 sm:$0xff]  }
 0x3ab   : > { %2101 = vmatprep.subr.bf16.mxu0 %v5370_v34  ;;  %v5399_v34 = vld [vmem:[#allocation11 + $0x3f4] ss:$8 sps:$4 sm:$0xff]  }
 0x3ae   : > { %2102 = vmatpush1.bf16.msra.mxu0 %v5368_v35  ;;  %v5397_v35 = vld [vmem:[#allocation11 + $0x3f0] ss:$8 sps:$4 sm:$0xff]  }
 0x3af   : > { %2114 = vmatprep.subr.bf16.mxu0 %v5375_v36  ;;  %v5402_v36 = vld [vmem:[#allocation11 + $0x404] ss:$8 sps:$4 sm:$0xff]  }
 0x444   : > { %v1467_v40 = vpop.f32.mrb[4].mxu0 }
 0x445   : > { %v1468_v41 = vadd.f32 %v1467_v40, %v1346_v39  ;;  %v6632_v42 = vpop.f32.mrb[5].mxu0  ;;  %v5405_v40 = vld [vmem:[#allocation11 + $0x414] ss:$8 sps:$4 sm:$0xff]  }
 0x446   : > { %v1471_v43 = vpop.f32.mrb[6].mxu0 }
 0x447   : > { %v6635_v44 = vadd.f32 %v1468_v41, %v6583_v46  ;;  %v1472_v45 = vadd.f32 %v1471_v43, %v1346_v39  ;;  %v6637_v47 = vpop.f32.mrb[7].mxu0  ;;  %v5400_v39 = vld [vmem:[#allocation11 + $0x400] ss:$8 sps:$4 sm:$0xff]   ;;  %v5403_v41 = vld [vmem:[#allocation11 + $0x410] ss:$8 sps:$4 sm:$0xff]  }
 0x448   : > { %v5408_v43 = vld [vmem:[#allocation11 + $0x424] ss:$8 sps:$4 sm:$0xff]  }
 0x449   : > { %v4913_v48 = vpack.c.bf16 %v6635_v44, %v6635_v44  ;;  %v6642_v51 = vadd.f32 %v1472_v45, %v6587_v50  ;;  %v5406_v45 = vld [vmem:[#allocation11 + $0x420] ss:$8 sps:$4 sm:$0xff]  }
 0x44b   : > { %v1496_v52 = vrot.slane %v4913_v48, 7  ;;  %v4914_v53 = vpack.c.bf16 %v6642_v51, %v6642_v51  ;;  %v5411_v48 = vld [vmem:[#allocation11 + $0x434] ss:$8 sps:$4 sm:$0xff]  }
 0x44d   : > { %v1497_v55 = vrot.slane %v1496_v52, 4  ;;  %1504 = vst [vmem:[#allocation4] sm:$0xe] %v1496_v52  ;;  %v1498_v56 = vrot.slane %v4914_v53, 7  ;;  %v5409_v52 = vld [vmem:[#allocation11 + $0x430] ss:$8 sps:$4 sm:$0xff]  }
 0x44e   : > { %v5414_v53 = vld [vmem:[#allocation11 + $0x444] ss:$8 sps:$4 sm:$0xff]  }
 0x44f   : > { %v1499_v46 = vsel %vm6591_vm3, %v1497_v55, %v1498_v56  ;;  %v1500_v57 = vrot.slane %v1498_v56, 4  ;;  %v5412_v55 = vld [vmem:[#allocation11 + $0x440] ss:$8 sps:$4 sm:$0xff]   ;;  %v5417_v56 = vld [vmem:[#allocation11 + $0x454] ss:$8 sps:$4 sm:$0xff]  }
 0x450   : > { %1505 = vst [vmem:[#allocation4 + $0x4] sm:$0xf] %v1499_v46  ;;  %v5415_v46 = vld [vmem:[#allocation11 + $0x450] ss:$8 sps:$4 sm:$0xff]  }
 0x451   : > { %1506 = vst [vmem:[#allocation4 + $0x8] sm:$0x1] %v1500_v57  ;;  %v5420_v57 = vld [vmem:[#allocation11 + $0x464] ss:$8 sps:$4 sm:$0xff]  }
 0x454   : > { %v1509_v58 = vld [vmem:[#allocation4] sm:$0xf] }
 0x455   : > { %v1512_v61 = vld [vmem:[#allocation4] sm:$0xe] }
 0x457   : > { %v6648_v59 = vld [vmem:[#allocation4 + $0x4] sm:$0xf] }
 0x458   : > { %v4581_v50 = vcombine.low %v1509_v58, %v6648_v59  ;;  %v6651_v62 = vld [vmem:[#allocation4 + $0x8] ss:$0 sps:$4 sm:$0x11]   ;;  %v6654_v3 = vcombine.low %v1512_v61, %v6648_v59  ;;  %v5376_v21 = vld [vmem:[#allocation4] sm:$0xff]   ;;  %v5423_v61 = vld [vmem:[#allocation11 + $0x474] ss:$8 sps:$4 sm:$0xff]  }
 0x459   : > { %v6656_v4 = vld [vmem:[#allocation4 + $0x8] ss:$0 sps:$4 sm:$0x33]   ;;  %v1537_v6 = vshll.u32 %v6651_v62, 16 }
 0x45a   : > { %v1532_v5 = vshll.u32 %v4581_v50, 16  ;;  %v1553_v1 = vshrl.u32 %v6654_v3, 16  ;;  %v1556_v63 = vshll.u32 %v6654_v3, 16  ;;  %v1561_v7 = vshrl.u32 %v6656_v4, 16  ;;  %v5418_v58 = vld [vmem:[#allocation11 + $0x460] ss:$8 sps:$4 sm:$0xff]  }
 0x45b   : > { %v1564_v8 = vshll.u32 %v6656_v4, 16  ;;  %v1530_v9 = vshrl.u32 %v4581_v50, 16  ;;  %v1539_v16 = vrot.slane %v1537_v6, 1  ;;  %v5421_v50 = vld [vmem:[#allocation11 + $0x470] ss:$8 sps:$4 sm:$0xff]   ;;  %v1545_v6 = vrot.slane %v6654_v3, 1 }
 0x45c   : > { %v1534_v10 = vrot.slane %v1532_v5, 1  ;;  %v1555_v11 = vrot.slane %v1553_v1, 1  ;;  %v1558_v12 = vrot.slane %v1556_v63, 2  ;;  %v1563_v13 = vrot.slane %v1561_v7, 1  ;;  %v5426_v5 = vld [vmem:[#allocation11 + $0x484] ss:$8 sps:$4 sm:$0xff]  }
 0x45d   : > { %v1566_v14 = vrot.slane %v1564_v8, 2  ;;  %v1546_v1 = vrot.slane %v6651_v62, 1  ;;  %v5424_v63 = vld [vmem:[#allocation11 + $0x480] ss:$8 sps:$4 sm:$0xff]   ;;  %v5429_v7 = vld [vmem:[#allocation11 + $0x494] ss:$8 sps:$4 sm:$0xff]  }
 0x45e   : > { %v1535_v15 = vor.u32 %v1534_v10, %v1530_v9  ;;  %v1559_v18 = vor.u32 %v1558_v12, %v1555_v11  ;;  %v5427_v9 = vld [vmem:[#allocation11 + $0x490] ss:$8 sps:$4 sm:$0xff]   ;;  %v5432_v10 = vld [vmem:[#allocation11 + $0x4a4] ss:$8 sps:$4 sm:$0xff]   ;;  %v5430_v11 = vld [vmem:[#allocation11 + $0x4a0] ss:$8 sps:$4 sm:$0xff]  }
 0x45f   : > { %v1567_v19 = vor.u32 %v1566_v14, %v1563_v13  ;;  %v1547_v8 = vsel %vm652_vm6, %v1545_v6, %v1546_v1  ;;  %v5435_v12 = vld [vmem:[#allocation11 + $0x4b4] ss:$8 sps:$4 sm:$0xff]   ;;  %v5433_v3 = vld [vmem:[#allocation11 + $0x4b0] ss:$8 sps:$4 sm:$0xff]   ;;  %v5438_v62 = vld [vmem:[#allocation11 + $0x4c4] ss:$8 sps:$4 sm:$0xff]  }
 0x460   : > { %v1540_v20 = vsel %vm635_vm4, %v1535_v15, %v1539_v16  ;;  %v5436_v13 = vld [vmem:[#allocation11 + $0x4c0] ss:$8 sps:$4 sm:$0xff]   ;;  %v5441_v14 = vld [vmem:[#allocation11 + $0x4d4] ss:$8 sps:$4 sm:$0xff]   ;;  %v5439_v15 = vld [vmem:[#allocation11 + $0x4d0] ss:$8 sps:$4 sm:$0xff]  }
 0x461   : > { %2103 = vmatprep.mubr.bf16.mxu0 %v1540_v20  ;;  %v1568_v23 = vsel %vm660_vm5, %v1559_v18, %v1567_v19  ;;  %v5444_v16 = vld [vmem:[#allocation11 + $0x4e4] ss:$8 sps:$4 sm:$0xff]   ;;  %v5447_v18 = vld [vmem:[#allocation11 + $0x4f4] ss:$8 sps:$4 sm:$0xff]  }
 0x462   : > { %2104 = vmatmul.mubr.bf16.vlgmr.msra.gmra.mrb[8].mxu0 %v5376_v21  ;;  %v1514_v19 = vld [vmem:[#allocation4] sm:$0xc]  ;;  %v5445_v21 = vld [vmem:[#allocation11 + $0x4f0] ss:$8 sps:$4 sm:$0xff]  }
 0x463   : > { %2115 = vmatpush1.bf16.msra.mxu0 %v5373_v17  ;;  %2146 = vmatprep.mubr.bf16.mxu0 %v1568_v23  ;;  %v5442_v17 = vld [vmem:[#allocation11 + $0x4e0] ss:$8 sps:$4 sm:$0xff]   ;;  %v4585_v20 = vcombine.low %v1514_v19, %v6648_v59  ;;  %v1574_v23 = vrot.slane %v6656_v4, 2  ;;  %v5457_v59 = vld [vmem:[#allocation14 + $0xa4] ss:$8 sps:$4 sm:$0xff]  }
 0x464   : > { %2116 = vmatprep.subr.bf16.mxu0 %v5381_v22  ;;  %v5458_v4 = vld [vmem:[#allocation14 + $0xb0] ss:$8 sps:$4 sm:$0xff]   ;;  %v5487_v19 = vld [vmem:[#allocation11 + $0x544] ss:$8 sps:$4 sm:$0xff]  }
 0x465   : > { %v1573_v22 = vrot.slane %v4585_v20, 2  ;;  %v5485_v20 = vld [vmem:[#allocation11 + $0x540] ss:$8 sps:$4 sm:$0xff]  }
 0x467   : > { %2117 = vmatpush1.bf16.msra.mxu0 %v5379_v60  ;;  %v1575_v60 = vsel %vm682_vm7, %v1573_v22, %v1574_v23  ;;  %v5488_v22 = vld [vmem:[#allocation11 + $0x550] ss:$8 sps:$4 sm:$0xff]   ;;  %v5493_v23 = vld [vmem:[#allocation11 + $0x564] ss:$8 sps:$4 sm:$0xff]  }
 0x468   : > { %2118 = vmatprep.subr.bf16.mxu0 %v5384_v24  ;;  %v5451_v24 = vld [vmem:[#allocation14 + $0x84] ss:$8 sps:$4 sm:$0xff]  }
 0x469   : > { %2327 = vmatprep.subr.bf16.mxu1 %v5451_v24  ;;  %v5496_v24 = vld [vmem:[#allocation11 + $0x574] ss:$8 sps:$4 sm:$0xff]  }
 0x46b   : > { %2119 = vmatpush1.bf16.msra.mxu0 %v5382_v2  ;;  %v5449_v2 = vld [vmem:[#allocation14 + $0x80] ss:$8 sps:$4 sm:$0xff]  }
 0x46c   : > { %2120 = vmatprep.subr.bf16.mxu0 %v5387_v25  ;;  %2328 = vmatpush1.bf16.msra.mxu1 %v5449_v2  ;;  %v5454_v25 = vld [vmem:[#allocation14 + $0x94] ss:$8 sps:$4 sm:$0xff]   ;;  %v5494_v2 = vld [vmem:[#allocation11 + $0x570] ss:$8 sps:$4 sm:$0xff]  }
 0x46d   : > { %2329 = vmatprep.subr.bf16.mxu1 %v5454_v25  ;;  %v5499_v25 = vld [vmem:[#allocation11 + $0x584] ss:$8 sps:$4 sm:$0xff]  }
 0x46f   : > { %2121 = vmatpush1.bf16.msra.mxu0 %v5385_v26  ;;  %v5452_v26 = vld [vmem:[#allocation14 + $0x90] ss:$8 sps:$4 sm:$0xff]  }
 0x470   : > { %2122 = vmatprep.subr.bf16.mxu0 %v5390_v27  ;;  %2330 = vmatpush1.bf16.msra.mxu1 %v5452_v26  ;;  %v5455_v27 = vld [vmem:[#allocation14 + $0xa0] ss:$8 sps:$4 sm:$0xff]  }
 0x471   : > { %2331 = vmatprep.subr.bf16.mxu1 %v5457_v59  ;;  %v5497_v26 = vld [vmem:[#allocation11 + $0x580] ss:$8 sps:$4 sm:$0xff]   ;;  %v5502_v59 = vld [vmem:[#allocation11 + $0x594] ss:$8 sps:$4 sm:$0xff]  }
 0x473   : > { %2123 = vmatpush1.bf16.msra.mxu0 %v5388_v28  ;;  %v5460_v28 = vld [vmem:[#allocation14 + $0xb4] ss:$8 sps:$4 sm:$0xff]  }
 0x474   : > { %2124 = vmatprep.subr.bf16.mxu0 %v5393_v29  ;;  %2332 = vmatpush1.bf16.msra.mxu1 %v5455_v27  ;;  %v5461_v29 = vld [vmem:[#allocation14 + $0xc0] ss:$8 sps:$4 sm:$0xff]  }
 0x475   : > { %2333 = vmatprep.subr.bf16.mxu1 %v5460_v28  ;;  %v5500_v27 = vld [vmem:[#allocation11 + $0x590] ss:$8 sps:$4 sm:$0xff]   ;;  %v5505_v28 = vld [vmem:[#allocation11 + $0x5a4] ss:$8 sps:$4 sm:$0xff]  }
 0x477   : > { %2125 = vmatpush1.bf16.msra.mxu0 %v5391_v30  ;;  %v5463_v30 = vld [vmem:[#allocation14 + $0xc4] ss:$8 sps:$4 sm:$0xff]  }
 0x478   : > { %2126 = vmatprep.subr.bf16.mxu0 %v5396_v32  ;;  %2334 = vmatpush1.bf16.msra.mxu1 %v5458_v4  ;;  %v5466_v32 = vld [vmem:[#allocation14 + $0xd4] ss:$8 sps:$4 sm:$0xff]   ;;  %v5503_v4 = vld [vmem:[#allocation11 + $0x5a0] ss:$8 sps:$4 sm:$0xff]  }
 0x479   : > { %2335 = vmatprep.subr.bf16.mxu1 %v5463_v30  ;;  %v5506_v30 = vld [vmem:[#allocation11 + $0x5b0] ss:$8 sps:$4 sm:$0xff]  }
 0x47b   : > { %2127 = vmatpush1.bf16.msra.mxu0 %v5394_v33  ;;  %v5464_v33 = vld [vmem:[#allocation14 + $0xd0] ss:$8 sps:$4 sm:$0xff]  }
 0x47c   : > { %2128 = vmatprep.subr.bf16.mxu0 %v5399_v34  ;;  %2336 = vmatpush1.bf16.msra.mxu1 %v5461_v29  ;;  %v5469_v34 = vld [vmem:[#allocation14 + $0xe4] ss:$8 sps:$4 sm:$0xff]  }
 0x47d   : > { %2337 = vmatprep.subr.bf16.mxu1 %v5466_v32  ;;  %v5508_v29 = vld [vmem:[#allocation11 + $0x5b4] ss:$8 sps:$4 sm:$0xff]   ;;  %v5509_v32 = vld [vmem:[#allocation11 + $0x5c0] ss:$8 sps:$4 sm:$0xff]  }
 0x47f   : > { %2129 = vmatpush1.bf16.msra.mxu0 %v5397_v35  ;;  %v5467_v35 = vld [vmem:[#allocation14 + $0xe0] ss:$8 sps:$4 sm:$0xff]  }
 0x480   : > { %2130 = vmatprep.subr.bf16.mxu0 %v5402_v36  ;;  %2338 = vmatpush1.bf16.msra.mxu1 %v5464_v33  ;;  %v5472_v36 = vld [vmem:[#allocation14 + $0xf4] ss:$8 sps:$4 sm:$0xff]  }
 0x481   : > { %2339 = vmatprep.subr.bf16.mxu1 %v5469_v34  ;;  %v5511_v33 = vld [vmem:[#allocation11 + $0x5c4] ss:$8 sps:$4 sm:$0xff]   ;;  %v5514_v34 = vld [vmem:[#allocation11 + $0x5d4] ss:$8 sps:$4 sm:$0xff]  }
 0x483   : > { %2131 = vmatpush1.bf16.msra.mxu0 %v5400_v39  ;;  %v5470_v39 = vld [vmem:[#allocation14 + $0xf0] ss:$8 sps:$4 sm:$0xff]  }
 0x484   : > { %2132 = vmatprep.subr.bf16.mxu0 %v5405_v40  ;;  %2340 = vmatpush1.bf16.msra.mxu1 %v5467_v35  ;;  %v5475_v40 = vld [vmem:[#allocation11 + $0x504] ss:$8 sps:$4 sm:$0xff]   ;;  %v5512_v35 = vld [vmem:[#allocation11 + $0x5d0] ss:$8 sps:$4 sm:$0xff]  }
 0x485   : > { %2341 = vmatprep.subr.bf16.mxu1 %v5472_v36  ;;  %v5517_v36 = vld [vmem:[#allocation11 + $0x5e4] ss:$8 sps:$4 sm:$0xff]  }
 0x487   : > { %2133 = vmatpush1.bf16.msra.mxu0 %v5403_v41  ;;  %v1659_v41 = vld [vmem:[#allocation13 + $0x2] sm:$0x3] }
 0x488   : > { %2134 = vmatprep.subr.bf16.mxu0 %v5408_v43  ;;  %2342 = vmatpush1.bf16.msra.mxu1 %v5470_v39  ;;  %v1668_v43 = vrot.slane %v1659_v41, %v6622_v38  ;;  %v5515_v39 = vld [vmem:[#allocation11 + $0x5e0] ss:$8 sps:$4 sm:$0xff]  }
 0x489   : > { %2965 = vmatprep.subr.bf16.mxu1 %v5475_v40  ;;  %v5520_v40 = vld [vmem:[#allocation11 + $0x5f4] ss:$8 sps:$4 sm:$0xff]  }
 0x48b   : > { %2135 = vmatpush1.bf16.msra.mxu0 %v5406_v45 }
 0x48c   : > { %2136 = vmatprep.subr.bf16.mxu0 %v5411_v48 }
 0x48f   : > { %2137 = vmatpush1.bf16.msra.mxu0 %v5409_v52 }
 0x490   : > { %2138 = vmatprep.subr.bf16.mxu0 %v5414_v53 }
 0x493   : > { %2139 = vmatpush1.bf16.msra.mxu0 %v5412_v55 }
 0x494   : > { %2140 = vmatprep.subr.bf16.mxu0 %v5417_v56 }
 0x497   : > { %2141 = vmatpush1.bf16.msra.mxu0 %v5415_v46 }
 0x498   : > { %2142 = vmatprep.subr.bf16.mxu0 %v5420_v57 }
 0x49b   : > { %2143 = vmatpush1.bf16.msra.mxu0 %v5418_v58  ;;  %v1664_v58 = vrot.slane %v1659_v41, %v6625_v49  ;;  %v5518_v41 = vld [vmem:[#allocation11 + $0x5f0] ss:$8 sps:$4 sm:$0xff]  }
 0x49c   : > { %2144 = vmatprep.subr.bf16.mxu0 %v5423_v61 }
 0x49f   : > { %2145 = vmatpush1.bf16.msra.mxu0 %v5421_v50 }
 0x4a0   : > { %2157 = vmatprep.subr.bf16.mxu0 %v5426_v5 }
 0x4a2   : > { %2147 = vmatmul.mubr.bf16.vlgmr.msra.gmra.mrb[8].mxu0 %v1547_v8 }
 0x4a3   : > { %2158 = vmatpush1.bf16.msra.mxu0 %v5424_v63  ;;  %2189 = vmatprep.mubr.bf16.mxu0 %v6184_v31 }
 0x4a4   : > { %2159 = vmatprep.subr.bf16.mxu0 %v5429_v7 }
 0x4a7   : > { %2160 = vmatpush1.bf16.msra.mxu0 %v5427_v9 }
 0x4a8   : > { %2161 = vmatprep.subr.bf16.mxu0 %v5432_v10 }
 0x4ab   : > { %2162 = vmatpush1.bf16.msra.mxu0 %v5430_v11 }
 0x4ac   : > { %2163 = vmatprep.subr.bf16.mxu0 %v5435_v12 }
 0x4af   : > { %2164 = vmatpush1.bf16.msra.mxu0 %v5433_v3  ;;  %v5473_v3 = vld [vmem:[#allocation11 + $0x500] ss:$8 sps:$4 sm:$0xff]  }
 0x4b0   : > { %2165 = vmatprep.subr.bf16.mxu0 %v5438_v62 }
 0x4b3   : > { %2166 = vmatpush1.bf16.msra.mxu0 %v5436_v13  ;;  %v5478_v13 = vld [vmem:[#allocation11 + $0x514] ss:$8 sps:$4 sm:$0xff]  }
 0x4b4   : > { %2167 = vmatprep.subr.bf16.mxu0 %v5441_v14  ;;  %v5476_v14 = vld [vmem:[#allocation11 + $0x510] ss:$8 sps:$4 sm:$0xff]  }
 0x4b7   : > { %2168 = vmatpush1.bf16.msra.mxu0 %v5439_v15  ;;  %v5481_v15 = vld [vmem:[#allocation11 + $0x524] ss:$8 sps:$4 sm:$0xff]  }
 0x4b8   : > { %2169 = vmatprep.subr.bf16.mxu0 %v5444_v16  ;;  %v5479_v16 = vld [vmem:[#allocation11 + $0x520] ss:$8 sps:$4 sm:$0xff]  }
 0x4bb   : > { %2170 = vmatpush1.bf16.msra.mxu0 %v5442_v17  ;;  %v5484_v17 = vld [vmem:[#allocation11 + $0x534] ss:$8 sps:$4 sm:$0xff]  }
 0x4bc   : > { %2171 = vmatprep.subr.bf16.mxu0 %v5447_v18  ;;  %v5482_v18 = vld [vmem:[#allocation11 + $0x530] ss:$8 sps:$4 sm:$0xff]  }
 0x4bf   : > { %2172 = vmatpush1.bf16.msra.mxu0 %v5445_v21  ;;  %v5490_v21 = vld [vmem:[#allocation11 + $0x554] ss:$8 sps:$4 sm:$0xff]  }
 0x4c2   : > { %2190 = vmatmul.mubr.bf16.vlgmr.msra.gmra.mrb[8].mxu0 %v1575_v60  ;;  %v5491_v60 = vld [vmem:[#allocation11 + $0x560] ss:$8 sps:$4 sm:$0xff]  }
 0x4c3   : > { %3253 = vmatprep.mubr.bf16.mxu0 %v6184_v31 }
 0x595   : > { %v2191_v45 = vpop.f32.mrb[8].mxu0 }
 0x596   : > { %v2193_v48 = vpop.f32.mrb[9].mxu0  ;;  %v4982_v61 = vadd.f32 %v2191_v45, %v1664_v58  ;;  %v2235_v45 = vld [vmem:[#allocation16 + $0x2] sm:$0x3] }
 0x597   : > { %v4983_v52 = vadd.f32 %v2193_v48, %v1668_v43  ;;  %v2195_v53 = vpop.f32.mrb[10].mxu0  ;;  %v2240_v48 = vrot.slane %v2235_v45, %v6625_v49 }
 0x598   : > { %v2197_v55 = vpop.f32.mrb[11].mxu0  ;;  %v4984_v5 = vadd.f32 %v2195_v53, %v1664_v58  ;;  %v2244_v53 = vrot.slane %v2235_v45, %v6622_v38  ;;  %v5538_v45 = vld [vmem:[#allocation11 + $0x640] ss:$8 sps:$4 sm:$0xff]  }
 0x599   : > { %v4666_v56 = vmul.f32 -1.442695, %v4983_v52  ;;  %v4985_v46 = vadd.f32 %v2197_v55, %v1668_v43  ;;  %v5525_v43 = vld [vmem:[#allocation11 + $0x604] ss:$8 sps:$4 sm:$0xff]   ;;  %v1350_v52 = vrot.slane %v6628_v37, %v6622_v38 }
 0x59b   : > { %5793 = vpow2.f32 %v4666_v56  ;;  %v4667_v57 = vmul.f32 -1.442695, %v4985_v46 }
 0x59d   : > { %5795 = vpow2.f32 %v4667_v57  ;;  %v1470_v57 = vadd.f32 %v6632_v42, %v1350_v52 }
 0x59e   : > { %5797 = vtanh.f32 %v4982_v61 }
 0x5a5   : > { %v5794_v50 = vpop.eup %5793 }
 0x5a6   : > { %v2208_v6 = vadd.f32 1.0, %v5794_v50 }
 0x5a7   : > { %v5796_v1 = vpop.eup %5795 }
 0x5a8   : > { %5799 = vrcp.f32 %v2208_v6  ;;  %v2209_v63 = vadd.f32 1.0, %v5796_v1  ;;  %v5798_v7 = vpop.eup %5797  ;;  %v1474_v1 = vadd.f32 %v6637_v47, %v1350_v52  ;;  %v5541_v52 = vld [vmem:[#allocation11 + $0x650] ss:$8 sps:$4 sm:$0xff]  }
 0x5a9   : > { %5801 = vtanh.f32 %v4984_v5 }
 0x5aa   : > { %5803 = vrcp.f32 %v2209_v63 }
 0x5b2   : > { %v5800_v8 = vpop.eup %5799 }
 0x5b3   : > { %v5802_v9 = vpop.eup %5801  ;;  %v2214_v10 = vmul.f32 %v5800_v8, %v5798_v7 }
 0x5b4   : > { %v5804_v11 = vpop.eup %5803 }
 0x5b5   : > { %v2215_v12 = vmul.f32 %v5804_v11, %v5802_v9 }
 0x5b7   : > { %v2216_v62 = vpack.c.bf16 %v2215_v12, %v2214_v10 }
 0x5b9   : > { %2360 = vmatmul.mubr.bf16.vlgmr.msra.gmra.mrb[4].mxu1 %v2216_v62 }
 0x5ba   : > { %2966 = vmatpush1.bf16.msra.mxu1 %v5473_v3 }
 0x5bb   : > { %2967 = vmatprep.subr.bf16.mxu1 %v5478_v13 }
 0x5be   : > { %2968 = vmatpush1.bf16.msra.mxu1 %v5476_v14 }
 0x5bf   : > { %2969 = vmatprep.subr.bf16.mxu1 %v5481_v15 }
 0x5c2   : > { %2970 = vmatpush1.bf16.msra.mxu1 %v5479_v16 }
 0x5c3   : > { %2971 = vmatprep.subr.bf16.mxu1 %v5484_v17 }
 0x5c6   : > { %2972 = vmatpush1.bf16.msra.mxu1 %v5482_v18 }
 0x5c7   : > { %2973 = vmatprep.subr.bf16.mxu1 %v5487_v19 }
 0x5ca   : > { %2974 = vmatpush1.bf16.msra.mxu1 %v5485_v20 }
 0x5cb   : > { %2975 = vmatprep.subr.bf16.mxu1 %v5490_v21 }
 0x5ce   : > { %2976 = vmatpush1.bf16.msra.mxu1 %v5488_v22 }
 0x5cf   : > { %2977 = vmatprep.subr.bf16.mxu1 %v5493_v23 }
 0x5d2   : > { %2978 = vmatpush1.bf16.msra.mxu1 %v5491_v60 }
 0x5d3   : > { %2979 = vmatprep.subr.bf16.mxu1 %v5496_v24 }
 0x5d6   : > { %2980 = vmatpush1.bf16.msra.mxu1 %v5494_v2 }
 0x5d7   : > { %2981 = vmatprep.subr.bf16.mxu1 %v5499_v25 }
 0x5da   : > { %2982 = vmatpush1.bf16.msra.mxu1 %v5497_v26 }
 0x5db   : > { %2983 = vmatprep.subr.bf16.mxu1 %v5502_v59 }
 0x5de   : > { %2984 = vmatpush1.bf16.msra.mxu1 %v5500_v27 }
 0x5df   : > { %2985 = vmatprep.subr.bf16.mxu1 %v5505_v28  ;;  %v5523_v28 = vld [vmem:[#allocation11 + $0x600] ss:$8 sps:$4 sm:$0xff]  }
 0x5e2   : > { %2986 = vmatpush1.bf16.msra.mxu1 %v5503_v4 }
 0x5e3   : > { %2987 = vmatprep.subr.bf16.mxu1 %v5508_v29 }
 0x5e6   : > { %2988 = vmatpush1.bf16.msra.mxu1 %v5506_v30 }
 0x5e7   : > { %2989 = vmatprep.subr.bf16.mxu1 %v5511_v33  ;;  %v5531_v33 = vld [vmem:[#allocation11 + $0x614] ss:$8 sps:$4 sm:$0xff]  }
 0x5ea   : > { %2990 = vmatpush1.bf16.msra.mxu1 %v5509_v32 }
 0x5eb   : > { %2991 = vmatprep.subr.bf16.mxu1 %v5514_v34 }
 0x5ee   : > { %2992 = vmatpush1.bf16.msra.mxu1 %v5512_v35  ;;  %v5529_v35 = vld [vmem:[#allocation11 + $0x610] ss:$8 sps:$4 sm:$0xff]  }
 0x5ef   : > { %2993 = vmatprep.subr.bf16.mxu1 %v5517_v36  ;;  %v5534_v36 = vld [vmem:[#allocation11 + $0x624] ss:$8 sps:$4 sm:$0xff]  }
 0x5f2   : > { %2994 = vmatpush1.bf16.msra.mxu1 %v5515_v39  ;;  %v5532_v39 = vld [vmem:[#allocation11 + $0x620] ss:$8 sps:$4 sm:$0xff]  }
 0x5f3   : > { %2995 = vmatprep.subr.bf16.mxu1 %v5520_v40  ;;  %v5537_v40 = vld [vmem:[#allocation11 + $0x634] ss:$8 sps:$4 sm:$0xff]  }
 0x5f6   : > { %2996 = vmatpush1.bf16.msra.mxu1 %v5518_v41  ;;  %v5535_v41 = vld [vmem:[#allocation11 + $0x630] ss:$8 sps:$4 sm:$0xff]  }
 0x5f7   : > { %3008 = vmatprep.subr.bf16.mxu1 %v5525_v43  ;;  %v5540_v43 = vld [vmem:[#allocation11 + $0x644] ss:$8 sps:$4 sm:$0xff]  }
 0x68c   : > { %v2361_v55 = vpop.f32.mrb[4].mxu1 }
 0x68d   : > { %v2362_v56 = vadd.f32 %v2361_v55, %v2240_v48  ;;  %v2363_v46 = vpop.f32.mrb[5].mxu1  ;;  %v5544_v55 = vld [vmem:[#allocation11 + $0x660] ss:$8 sps:$4 sm:$0xff]  }
 0x68e   : > { %v2364_v58 = vadd.f32 %v2363_v46, %v2244_v53  ;;  %v2365_v61 = vpop.f32.mrb[6].mxu1  ;;  %v5547_v46 = vld [vmem:[#allocation11 + $0x670] ss:$8 sps:$4 sm:$0xff]  }
 0x68f   : > { %v6681_v50 = vadd.f32 %v2362_v56, %v6635_v44  ;;  %v2366_v5 = vadd.f32 %v2365_v61, %v2240_v48  ;;  %v2367_v6 = vpop.f32.mrb[7].mxu1  ;;  %v5543_v48 = vld [vmem:[#allocation11 + $0x654] ss:$8 sps:$4 sm:$0xff]  }
 0x690   : > { %v6684_v63 = vadd.f32 %v2364_v58, %v1470_v57  ;;  %v2368_v7 = vadd.f32 %v2367_v6, %v2244_v53  ;;  %v5546_v53 = vld [vmem:[#allocation11 + $0x664] ss:$8 sps:$4 sm:$0xff]   ;;  %v5549_v56 = vld [vmem:[#allocation11 + $0x674] ss:$8 sps:$4 sm:$0xff]   ;;  %v5550_v58 = vld [vmem:[#allocation11 + $0x680] ss:$8 sps:$4 sm:$0xff]  }
 0x691   : > { %v4915_v37 = vpack.c.bf16 %v6681_v50, %v6681_v50  ;;  %v6689_v8 = vadd.f32 %v2366_v5, %v6642_v51  ;;  %v5552_v57 = vld [vmem:[#allocation11 + $0x684] ss:$8 sps:$4 sm:$0xff]   ;;  %v5555_v61 = vld [vmem:[#allocation11 + $0x694] ss:$8 sps:$4 sm:$0xff]   ;;  %v5553_v5 = vld [vmem:[#allocation11 + $0x690] ss:$8 sps:$4 sm:$0xff]  }
 0x692   : > { %v6691_v9 = vadd.f32 %v2368_v7, %v1474_v1  ;;  %v5558_v6 = vld [vmem:[#allocation11 + $0x6a4] ss:$8 sps:$4 sm:$0xff]   ;;  %v5556_v1 = vld [vmem:[#allocation11 + $0x6a0] ss:$8 sps:$4 sm:$0xff]   ;;  %v5561_v7 = vld [vmem:[#allocation11 + $0x6b4] ss:$8 sps:$4 sm:$0xff]  }
 0x693   : > { %v2390_v42 = vrot.slane %v4915_v37, 7  ;;  %v4916_v44 = vpack.c.bf16 %v6689_v8, %v6689_v8  ;;  %v5559_v37 = vld [vmem:[#allocation11 + $0x6b0] ss:$8 sps:$4 sm:$0xff]  }
 0x695   : > { %v2391_v10 = vrot.slane %v2390_v42, 4  ;;  %2398 = vst [vmem:[#allocation4] sm:$0xe] %v2390_v42  ;;  %v2392_v11 = vrot.slane %v4916_v44, 7  ;;  %v5564_v42 = vld [vmem:[#allocation11 + $0x6c4] ss:$8 sps:$4 sm:$0xff]  }
 0x696   : > { %v5562_v44 = vld [vmem:[#allocation11 + $0x6c0] ss:$8 sps:$4 sm:$0xff]  }
 0x697   : > { %v2393_v47 = vsel %vm6591_vm3, %v2391_v10, %v2392_v11  ;;  %v2394_v12 = vrot.slane %v2392_v11, 4  ;;  %v5567_v10 = vld [vmem:[#allocation11 + $0x6d4] ss:$8 sps:$4 sm:$0xff]   ;;  %v5565_v11 = vld [vmem:[#allocation11 + $0x6d0] ss:$8 sps:$4 sm:$0xff]  }
 0x698   : > { %2399 = vst [vmem:[#allocation4 + $0x4] sm:$0xf] %v2393_v47  ;;  %v5570_v47 = vld [vmem:[#allocation11 + $0x6e4] ss:$8 sps:$4 sm:$0xff]  }
 0x699   : > { %2400 = vst [vmem:[#allocation4 + $0x8] sm:$0x1] %v2394_v12  ;;  %v5568_v12 = vld [vmem:[#allocation11 + $0x6e0] ss:$8 sps:$4 sm:$0xff]  }
 0x69c   : > { %v2403_v3 = vld [vmem:[#allocation4] sm:$0xf] }
 0x69d   : > { %v2406_v51 = vld [vmem:[#allocation4] sm:$0xe] }
 0x69f   : > { %v6697_v62 = vld [vmem:[#allocation4 + $0x4] sm:$0xf] }
 0x6a0   : > { %v4687_v13 = vcombine.low %v2403_v3, %v6697_v62  ;;  %v6700_v14 = vld [vmem:[#allocation4 + $0x8] ss:$0 sps:$4 sm:$0x11]   ;;  %v6703_v15 = vcombine.low %v2406_v51, %v6697_v62  ;;  %v5526_v32 = vld [vmem:[#allocation4] sm:$0xff]   ;;  %v5573_v3 = vld [vmem:[#allocation11 + $0x6f4] ss:$8 sps:$4 sm:$0xff]  }
 0x6a1   : > { %v6705_v16 = vld [vmem:[#allocation4 + $0x8] ss:$0 sps:$4 sm:$0x33]   ;;  %v2431_v18 = vshll.u32 %v6700_v14, 16  ;;  %v5571_v51 = vld [vmem:[#allocation11 + $0x6f0] ss:$8 sps:$4 sm:$0xff]  }
 0x6a2   : > { %v2426_v17 = vshll.u32 %v4687_v13, 16  ;;  %v2447_v19 = vshrl.u32 %v6703_v15, 16  ;;  %v2450_v20 = vshll.u32 %v6703_v15, 16  ;;  %v2455_v21 = vshrl.u32 %v6705_v16, 16 }
 0x6a3   : > { %v2458_v22 = vshll.u32 %v6705_v16, 16  ;;  %v2424_v23 = vshrl.u32 %v4687_v13, 16  ;;  %v2433_v27 = vrot.slane %v2431_v18, 1  ;;  %v5576_v13 = vld [vmem:[#allocation11 + $0x704] ss:$8 sps:$4 sm:$0xff]   ;;  %v2440_v18 = vrot.slane %v6700_v14, 1 }
 0x6a4   : > { %v2428_v60 = vrot.slane %v2426_v17, 1  ;;  %v2449_v24 = vrot.slane %v2447_v19, 1  ;;  %v2452_v2 = vrot.slane %v2450_v20, 2  ;;  %v2457_v25 = vrot.slane %v2455_v21, 1  ;;  %v5574_v19 = vld [vmem:[#allocation11 + $0x700] ss:$8 sps:$4 sm:$0xff]  }
 0x6a5   : > { %v2460_v26 = vrot.slane %v2458_v22, 2  ;;  %v2439_v17 = vrot.slane %v6703_v15, 1  ;;  %v5579_v20 = vld [vmem:[#allocation11 + $0x714] ss:$8 sps:$4 sm:$0xff]   ;;  %v5577_v22 = vld [vmem:[#allocation11 + $0x710] ss:$8 sps:$4 sm:$0xff]  }
 0x6a6   : > { %v2429_v59 = vor.u32 %v2428_v60, %v2424_v23  ;;  %v2453_v4 = vor.u32 %v2452_v2, %v2449_v24  ;;  %v5582_v23 = vld [vmem:[#allocation11 + $0x724] ss:$8 sps:$4 sm:$0xff]   ;;  %v5580_v60 = vld [vmem:[#allocation11 + $0x720] ss:$8 sps:$4 sm:$0xff]   ;;  %v5585_v24 = vld [vmem:[#allocation11 + $0x734] ss:$8 sps:$4 sm:$0xff]  }
 0x6a7   : > { %v2461_v29 = vor.u32 %v2460_v26, %v2457_v25  ;;  %v2441_v21 = vsel %vm652_vm6, %v2439_v17, %v2440_v18  ;;  %v5583_v15 = vld [vmem:[#allocation11 + $0x730] ss:$8 sps:$4 sm:$0xff]   ;;  %v5588_v14 = vld [vmem:[#allocation11 + $0x744] ss:$8 sps:$4 sm:$0xff]   ;;  %v5586_v2 = vld [vmem:[#allocation11 + $0x740] ss:$8 sps:$4 sm:$0xff]  }
 0x6a8   : > { %v2434_v30 = vsel %vm635_vm4, %v2429_v59, %v2433_v27  ;;  %v5591_v25 = vld [vmem:[#allocation11 + $0x754] ss:$8 sps:$4 sm:$0xff]   ;;  %v5589_v26 = vld [vmem:[#allocation11 + $0x750] ss:$8 sps:$4 sm:$0xff]   ;;  %v5594_v59 = vld [vmem:[#allocation11 + $0x764] ss:$8 sps:$4 sm:$0xff]  }
 0x6a9   : > { %2997 = vmatprep.mubr.bf16.mxu1 %v2434_v30  ;;  %v2462_v34 = vsel %vm660_vm5, %v2453_v4, %v2461_v29  ;;  %v5592_v27 = vld [vmem:[#allocation11 + $0x760] ss:$8 sps:$4 sm:$0xff]   ;;  %v2408_v4 = vld [vmem:[#allocation4] sm:$0xc]  ;;  %v5595_v30 = vld [vmem:[#allocation11 + $0x770] ss:$8 sps:$4 sm:$0xff]  }
 0x6aa   : > { %2998 = vmatmul.mubr.bf16.vlgmr.msra.gmra.mrb[8].mxu1 %v5526_v32  ;;  %v4691_v29 = vcombine.low %v2408_v4, %v6697_v62  ;;  %v5607_v62 = vld [vmem:[#allocation14 + $0x124] ss:$8 sps:$4 sm:$0xff]   ;;  %v5635_v4 = vld [vmem:[#allocation11 + $0x7c0] ss:$8 sps:$4 sm:$0xff]  }
 0x6ab   : > { %3009 = vmatpush1.bf16.msra.mxu1 %v5523_v28  ;;  %3040 = vmatprep.mubr.bf16.mxu1 %v2462_v34  ;;  %v5597_v28 = vld [vmem:[#allocation11 + $0x774] ss:$8 sps:$4 sm:$0xff]  }
 0x6ac   : > { %3010 = vmatprep.subr.bf16.mxu1 %v5531_v33  ;;  %v2467_v32 = vrot.slane %v4691_v29, 2  ;;  %v2468_v33 = vrot.slane %v6705_v16, 2  ;;  %v5608_v16 = vld [vmem:[#allocation14 + $0x130] ss:$8 sps:$4 sm:$0xff]   ;;  %v5640_v29 = vld [vmem:[#allocation11 + $0x7d4] ss:$8 sps:$4 sm:$0xff]  }
 0x6ae   : > { %v2469_v34 = vsel %vm682_vm7, %v2467_v32, %v2468_v33  ;;  %v5643_v32 = vld [vmem:[#allocation11 + $0x7e4] ss:$8 sps:$4 sm:$0xff]   ;;  %v5641_v33 = vld [vmem:[#allocation11 + $0x7e0] ss:$8 sps:$4 sm:$0xff]  }
 0x6af   : > { %3011 = vmatpush1.bf16.msra.mxu1 %v5529_v35  ;;  %v5601_v35 = vld [vmem:[#allocation14 + $0x104] ss:$8 sps:$4 sm:$0xff]  }
 0x6b0   : > { %3012 = vmatprep.subr.bf16.mxu1 %v5534_v36  ;;  %v5599_v36 = vld [vmem:[#allocation14 + $0x100] ss:$8 sps:$4 sm:$0xff]   ;;  %3221 = vmatprep.subr.bf16.mxu0 %v5601_v35 }
 0x6b1   : > { %3222 = vmatpush1.bf16.msra.mxu0 %v5599_v36  ;;  %v5644_v35 = vld [vmem:[#allocation11 + $0x7f0] ss:$8 sps:$4 sm:$0xff]   ;;  %v5649_v36 = vld [vmem:[#allocation11 + $0x804] ss:$8 sps:$4 sm:$0xff]  }
 0x6b3   : > { %3013 = vmatpush1.bf16.msra.mxu1 %v5532_v39  ;;  %v5604_v39 = vld [vmem:[#allocation14 + $0x114] ss:$8 sps:$4 sm:$0xff]  }
 0x6b4   : > { %3014 = vmatprep.subr.bf16.mxu1 %v5537_v40  ;;  %v5602_v40 = vld [vmem:[#allocation14 + $0x110] ss:$8 sps:$4 sm:$0xff]   ;;  %3223 = vmatprep.subr.bf16.mxu0 %v5604_v39 }
 0x6b5   : > { %3224 = vmatpush1.bf16.msra.mxu0 %v5602_v40  ;;  %v5647_v39 = vld [vmem:[#allocation11 + $0x800] ss:$8 sps:$4 sm:$0xff]   ;;  %v5652_v40 = vld [vmem:[#allocation11 + $0x814] ss:$8 sps:$4 sm:$0xff]  }
 0x6b6   : > { %3225 = vmatprep.subr.bf16.mxu0 %v5607_v62  ;;  %v5650_v62 = vld [vmem:[#allocation11 + $0x810] ss:$8 sps:$4 sm:$0xff]  }
 0x6b7   : > { %3015 = vmatpush1.bf16.msra.mxu1 %v5535_v41  ;;  %v5605_v41 = vld [vmem:[#allocation14 + $0x120] ss:$8 sps:$4 sm:$0xff]  }
 0x6b8   : > { %3016 = vmatprep.subr.bf16.mxu1 %v5540_v43  ;;  %v5610_v43 = vld [vmem:[#allocation14 + $0x134] ss:$8 sps:$4 sm:$0xff]  }
 0x6b9   : > { %3226 = vmatpush1.bf16.msra.mxu0 %v5605_v41  ;;  %v5655_v41 = vld [vmem:[#allocation11 + $0x824] ss:$8 sps:$4 sm:$0xff]  }
 0x6ba   : > { %3227 = vmatprep.subr.bf16.mxu0 %v5610_v43  ;;  %v5653_v43 = vld [vmem:[#allocation11 + $0x820] ss:$8 sps:$4 sm:$0xff]  }
 0x6bb   : > { %3017 = vmatpush1.bf16.msra.mxu1 %v5538_v45  ;;  %v5611_v45 = vld [vmem:[#allocation14 + $0x140] ss:$8 sps:$4 sm:$0xff]  }
 0x6bc   : > { %3018 = vmatprep.subr.bf16.mxu1 %v5543_v48  ;;  %v5613_v48 = vld [vmem:[#allocation14 + $0x144] ss:$8 sps:$4 sm:$0xff]  }
 0x6bd   : > { %3228 = vmatpush1.bf16.msra.mxu0 %v5608_v16  ;;  %v5658_v16 = vld [vmem:[#allocation11 + $0x834] ss:$8 sps:$4 sm:$0xff]  }
 0x6be   : > { %3229 = vmatprep.subr.bf16.mxu0 %v5613_v48  ;;  %v5659_v48 = vld [vmem:[#allocation11 + $0x840] ss:$8 sps:$4 sm:$0xff]  }
 0x6bf   : > { %3019 = vmatpush1.bf16.msra.mxu1 %v5541_v52  ;;  %v5616_v52 = vld [vmem:[#allocation14 + $0x154] ss:$8 sps:$4 sm:$0xff]  }
 0x6c0   : > { %3020 = vmatprep.subr.bf16.mxu1 %v5546_v53  ;;  %v5614_v53 = vld [vmem:[#allocation14 + $0x150] ss:$8 sps:$4 sm:$0xff]  }
 0x6c1   : > { %3230 = vmatpush1.bf16.msra.mxu0 %v5611_v45  ;;  %v5656_v45 = vld [vmem:[#allocation11 + $0x830] ss:$8 sps:$4 sm:$0xff]  }
 0x6c2   : > { %3231 = vmatprep.subr.bf16.mxu0 %v5616_v52  ;;  %v5661_v52 = vld [vmem:[#allocation11 + $0x844] ss:$8 sps:$4 sm:$0xff]  }
 0x6c3   : > { %3021 = vmatpush1.bf16.msra.mxu1 %v5544_v55  ;;  %v5619_v55 = vld [vmem:[#allocation14 + $0x164] ss:$8 sps:$4 sm:$0xff]  }
 0x6c4   : > { %3022 = vmatprep.subr.bf16.mxu1 %v5549_v56  ;;  %v5617_v56 = vld [vmem:[#allocation14 + $0x160] ss:$8 sps:$4 sm:$0xff]  }
 0x6c5   : > { %3232 = vmatpush1.bf16.msra.mxu0 %v5614_v53  ;;  %v5664_v53 = vld [vmem:[#allocation11 + $0x854] ss:$8 sps:$4 sm:$0xff]  }
 0x6c6   : > { %3233 = vmatprep.subr.bf16.mxu0 %v5619_v55  ;;  %v5662_v55 = vld [vmem:[#allocation11 + $0x850] ss:$8 sps:$4 sm:$0xff]  }
 0x6c7   : > { %3023 = vmatpush1.bf16.msra.mxu1 %v5547_v46  ;;  %v5622_v46 = vld [vmem:[#allocation14 + $0x174] ss:$8 sps:$4 sm:$0xff]  }
 0x6c8   : > { %3024 = vmatprep.subr.bf16.mxu1 %v5552_v57  ;;  %v5620_v57 = vld [vmem:[#allocation14 + $0x170] ss:$8 sps:$4 sm:$0xff]  }
 0x6c9   : > { %3234 = vmatpush1.bf16.msra.mxu0 %v5617_v56  ;;  %v5667_v56 = vld [vmem:[#allocation11 + $0x864] ss:$8 sps:$4 sm:$0xff]  }
 0x6ca   : > { %3235 = vmatprep.subr.bf16.mxu0 %v5622_v46  ;;  %v5665_v46 = vld [vmem:[#allocation11 + $0x860] ss:$8 sps:$4 sm:$0xff]  }
 0x6cb   : > { %3025 = vmatpush1.bf16.msra.mxu1 %v5550_v58  ;;  %v5625_v58 = vld [vmem:[#allocation11 + $0x784] ss:$8 sps:$4 sm:$0xff]  }
 0x6cc   : > { %3026 = vmatprep.subr.bf16.mxu1 %v5555_v61  ;;  %v2553_v61 = vld [vmem:[#allocation13 + $0x4] sm:$0x3] }
 0x6cd   : > { %3236 = vmatpush1.bf16.msra.mxu0 %v5620_v57  ;;  %v5670_v57 = vld [vmem:[#allocation11 + $0x874] ss:$8 sps:$4 sm:$0xff]  }
 0x6ce   : > { %3859 = vmatprep.subr.bf16.mxu0 %v5625_v58  ;;  %v5668_v58 = vld [vmem:[#allocation11 + $0x870] ss:$8 sps:$4 sm:$0xff]  }
 0x6cf   : > { %3027 = vmatpush1.bf16.msra.mxu1 %v5553_v5  ;;  %v2562_v5 = vrot.slane %v2553_v61, %v6622_v38 }
 0x6d0   : > { %3028 = vmatprep.subr.bf16.mxu1 %v5558_v6 }
 0x6d3   : > { %3029 = vmatpush1.bf16.msra.mxu1 %v5556_v1 }
 0x6d4   : > { %3030 = vmatprep.subr.bf16.mxu1 %v5561_v7 }
 0x6d7   : > { %3031 = vmatpush1.bf16.msra.mxu1 %v5559_v37 }
 0x6d8   : > { %3032 = vmatprep.subr.bf16.mxu1 %v5564_v42 }
 0x6db   : > { %3033 = vmatpush1.bf16.msra.mxu1 %v5562_v44 }
 0x6dc   : > { %3034 = vmatprep.subr.bf16.mxu1 %v5567_v10 }
 0x6df   : > { %3035 = vmatpush1.bf16.msra.mxu1 %v5565_v11 }
 0x6e0   : > { %3036 = vmatprep.subr.bf16.mxu1 %v5570_v47  ;;  %v2558_v47 = vrot.slane %v2553_v61, %v6625_v49  ;;  %v5675_v61 = vld [vmem:[#allocation11 + $0x884] ss:$8 sps:$4 sm:$0xff]  }
 0x6e3   : > { %3037 = vmatpush1.bf16.msra.mxu1 %v5568_v12 }
 0x6e4   : > { %3038 = vmatprep.subr.bf16.mxu1 %v5573_v3 }
 0x6e7   : > { %3039 = vmatpush1.bf16.msra.mxu1 %v5571_v51 }
 0x6e8   : > { %3051 = vmatprep.subr.bf16.mxu1 %v5576_v13 }
 0x6ea   : > { %3041 = vmatmul.mubr.bf16.vlgmr.msra.gmra.mrb[8].mxu1 %v2441_v21 }
 0x6eb   : > { %3052 = vmatpush1.bf16.msra.mxu1 %v5574_v19  ;;  %3083 = vmatprep.mubr.bf16.mxu1 %v6184_v31 }
 0x6ec   : > { %3053 = vmatprep.subr.bf16.mxu1 %v5579_v20 }
 0x6ef   : > { %3054 = vmatpush1.bf16.msra.mxu1 %v5577_v22 }
 0x6f0   : > { %3055 = vmatprep.subr.bf16.mxu1 %v5582_v23 }
 0x6f3   : > { %3056 = vmatpush1.bf16.msra.mxu1 %v5580_v60 }
 0x6f4   : > { %3057 = vmatprep.subr.bf16.mxu1 %v5585_v24  ;;  %v5623_v24 = vld [vmem:[#allocation11 + $0x780] ss:$8 sps:$4 sm:$0xff]  }
 0x6f7   : > { %3058 = vmatpush1.bf16.msra.mxu1 %v5583_v15 }
 0x6f8   : > { %3059 = vmatprep.subr.bf16.mxu1 %v5588_v14  ;;  %v5628_v14 = vld [vmem:[#allocation11 + $0x794] ss:$8 sps:$4 sm:$0xff]  }
 0x6fb   : > { %3060 = vmatpush1.bf16.msra.mxu1 %v5586_v2  ;;  %v5626_v2 = vld [vmem:[#allocation11 + $0x790] ss:$8 sps:$4 sm:$0xff]  }
 0x6fc   : > { %3061 = vmatprep.subr.bf16.mxu1 %v5591_v25  ;;  %v5631_v25 = vld [vmem:[#allocation11 + $0x7a4] ss:$8 sps:$4 sm:$0xff]  }
 0x6ff   : > { %3062 = vmatpush1.bf16.msra.mxu1 %v5589_v26  ;;  %v5629_v26 = vld [vmem:[#allocation11 + $0x7a0] ss:$8 sps:$4 sm:$0xff]  }
 0x700   : > { %3063 = vmatprep.subr.bf16.mxu1 %v5594_v59  ;;  %v5634_v59 = vld [vmem:[#allocation11 + $0x7b4] ss:$8 sps:$4 sm:$0xff]  }
 0x703   : > { %3064 = vmatpush1.bf16.msra.mxu1 %v5592_v27  ;;  %v5632_v27 = vld [vmem:[#allocation11 + $0x7b0] ss:$8 sps:$4 sm:$0xff]  }
 0x704   : > { %3065 = vmatprep.subr.bf16.mxu1 %v5597_v28  ;;  %v5637_v28 = vld [vmem:[#allocation11 + $0x7c4] ss:$8 sps:$4 sm:$0xff]  }
 0x707   : > { %3066 = vmatpush1.bf16.msra.mxu1 %v5595_v30  ;;  %v5638_v30 = vld [vmem:[#allocation11 + $0x7d0] ss:$8 sps:$4 sm:$0xff]  }
 0x70a   : > { %3084 = vmatmul.mubr.bf16.vlgmr.msra.gmra.mrb[8].mxu1 %v2469_v34  ;;  %v5646_v34 = vld [vmem:[#allocation11 + $0x7f4] ss:$8 sps:$4 sm:$0xff]  }
 0x70b   : > { %4142 = vmatprep.mubr.bf16.mxu1 %v6184_v31 }
 0x7dd   : > { %v3085_v6 = vpop.f32.mrb[8].mxu1 }
 0x7de   : > { %v3087_v1 = vpop.f32.mrb[9].mxu1  ;;  %v4986_v12 = vadd.f32 %v3085_v6, %v2558_v47 }
 0x7df   : > { %v4987_v7 = vadd.f32 %v3087_v1, %v2562_v5  ;;  %v3089_v37 = vpop.f32.mrb[10].mxu1 }
 0x7e0   : > { %v3091_v42 = vpop.f32.mrb[11].mxu1  ;;  %v4988_v51 = vadd.f32 %v3089_v37, %v2558_v47 }
 0x7e1   : > { %v4772_v44 = vmul.f32 -1.442695, %v4987_v7  ;;  %v4989_v10 = vadd.f32 %v3091_v42, %v2562_v5  ;;  %v3129_v5 = vld [vmem:[#allocation16 + $0x4] sm:$0x3] }
 0x7e2   : > { %v3134_v6 = vrot.slane %v3129_v5, %v6625_v49  ;;  %v3138_v1 = vrot.slane %v3129_v5, %v6622_v38  ;;  %v5682_v5 = vld [vmem:[#allocation11 + $0x8a0] ss:$8 sps:$4 sm:$0xff]  }
 0x7e3   : > { %5805 = vpow2.f32 %v4772_v44  ;;  %v4773_v11 = vmul.f32 -1.442695, %v4989_v10 }
 0x7e5   : > { %5807 = vpow2.f32 %v4773_v11 }
 0x7e6   : > { %5809 = vtanh.f32 %v4986_v12 }
 0x7ed   : > { %v5806_v3 = vpop.eup %5805 }
 0x7ee   : > { %v3102_v13 = vadd.f32 1.0, %v5806_v3 }
 0x7ef   : > { %v5808_v17 = vpop.eup %5807 }
 0x7f0   : > { %5811 = vrcp.f32 %v3102_v13  ;;  %v3103_v18 = vadd.f32 1.0, %v5808_v17  ;;  %v5810_v19 = vpop.eup %5809 }
 0x7f1   : > { %5813 = vtanh.f32 %v4988_v51 }
 0x7f2   : > { %5815 = vrcp.f32 %v3103_v18 }
 0x7fa   : > { %v5812_v20 = vpop.eup %5811 }
 0x7fb   : > { %v5814_v21 = vpop.eup %5813  ;;  %v3108_v22 = vmul.f32 %v5812_v20, %v5810_v19 }
 0x7fc   : > { %v5816_v23 = vpop.eup %5815 }
 0x7fd   : > { %v3109_v60 = vmul.f32 %v5816_v23, %v5814_v21 }
 0x7ff   : > { %v3110_v15 = vpack.c.bf16 %v3109_v60, %v3108_v22 }
 0x801   : > { %3254 = vmatmul.mubr.bf16.vlgmr.msra.gmra.mrb[12].mxu0 %v3110_v15 }
 0x802   : > { %3860 = vmatpush1.bf16.msra.mxu0 %v5623_v24 }
 0x803   : > { %3861 = vmatprep.subr.bf16.mxu0 %v5628_v14 }
 0x806   : > { %3862 = vmatpush1.bf16.msra.mxu0 %v5626_v2 }
 0x807   : > { %3863 = vmatprep.subr.bf16.mxu0 %v5631_v25 }
 0x80a   : > { %3864 = vmatpush1.bf16.msra.mxu0 %v5629_v26 }
 0x80b   : > { %3865 = vmatprep.subr.bf16.mxu0 %v5634_v59 }
 0x80e   : > { %3866 = vmatpush1.bf16.msra.mxu0 %v5632_v27 }
 0x80f   : > { %3867 = vmatprep.subr.bf16.mxu0 %v5637_v28 }
 0x812   : > { %3868 = vmatpush1.bf16.msra.mxu0 %v5635_v4 }
 0x813   : > { %3869 = vmatprep.subr.bf16.mxu0 %v5640_v29 }
 0x816   : > { %3870 = vmatpush1.bf16.msra.mxu0 %v5638_v30 }
 0x817   : > { %3871 = vmatprep.subr.bf16.mxu0 %v5643_v32 }
 0x81a   : > { %3872 = vmatpush1.bf16.msra.mxu0 %v5641_v33 }
 0x81b   : > { %3873 = vmatprep.subr.bf16.mxu0 %v5646_v34 }
 0x81e   : > { %3874 = vmatpush1.bf16.msra.mxu0 %v5644_v35 }
 0x81f   : > { %3875 = vmatprep.subr.bf16.mxu0 %v5649_v36 }
 0x822   : > { %3876 = vmatpush1.bf16.msra.mxu0 %v5647_v39 }
 0x823   : > { %3877 = vmatprep.subr.bf16.mxu0 %v5652_v40 }
 0x826   : > { %3878 = vmatpush1.bf16.msra.mxu0 %v5650_v62 }
 0x827   : > { %3879 = vmatprep.subr.bf16.mxu0 %v5655_v41 }
 0x82a   : > { %3880 = vmatpush1.bf16.msra.mxu0 %v5653_v43 }
 0x82b   : > { %3881 = vmatprep.subr.bf16.mxu0 %v5658_v16 }
 0x82e   : > { %3882 = vmatpush1.bf16.msra.mxu0 %v5656_v45  ;;  %v5673_v45 = vld [vmem:[#allocation11 + $0x880] ss:$8 sps:$4 sm:$0xff]  }
 0x82f   : > { %3883 = vmatprep.subr.bf16.mxu0 %v5661_v52 }
 0x832   : > { %3884 = vmatpush1.bf16.msra.mxu0 %v5659_v48 }
 0x833   : > { %3885 = vmatprep.subr.bf16.mxu0 %v5664_v53 }
 0x836   : > { %3886 = vmatpush1.bf16.msra.mxu0 %v5662_v55 }
 0x837   : > { %3887 = vmatprep.subr.bf16.mxu0 %v5667_v56  ;;  %v5681_v56 = vld [vmem:[#allocation11 + $0x894] ss:$8 sps:$4 sm:$0xff]  }
 0x83a   : > { %3888 = vmatpush1.bf16.msra.mxu0 %v5665_v46 }
 0x83b   : > { %3889 = vmatprep.subr.bf16.mxu0 %v5670_v57 }
 0x83e   : > { %3890 = vmatpush1.bf16.msra.mxu0 %v5668_v58  ;;  %v5679_v58 = vld [vmem:[#allocation11 + $0x890] ss:$8 sps:$4 sm:$0xff]  }
 0x83f   : > { %3902 = vmatprep.subr.bf16.mxu0 %v5675_v61  ;;  %v5684_v61 = vld [vmem:[#allocation11 + $0x8a4] ss:$8 sps:$4 sm:$0xff]  }
 0x8d4   : > { %v3255_v7 = vpop.f32.mrb[12].mxu0 }
 0x8d5   : > { %v3256_v37 = vadd.f32 %v3255_v7, %v3134_v6  ;;  %v3257_v42 = vpop.f32.mrb[13].mxu0  ;;  %v5690_v7 = vld [vmem:[#allocation11 + $0x8c4] ss:$8 sps:$4 sm:$0xff]  }
 0x8d6   : > { %v3258_v44 = vadd.f32 %v3257_v42, %v3138_v1  ;;  %v3259_v10 = vpop.f32.mrb[14].mxu0  ;;  %v5693_v42 = vld [vmem:[#allocation11 + $0x8d4] ss:$8 sps:$4 sm:$0xff]  }
 0x8d7   : > { %v3266_v11 = vadd.f32 %v3256_v37, %v6681_v50  ;;  %v3260_v47 = vadd.f32 %v3259_v10, %v3134_v6  ;;  %v3261_v12 = vpop.f32.mrb[15].mxu0  ;;  %v5687_v6 = vld [vmem:[#allocation11 + $0x8b4] ss:$8 sps:$4 sm:$0xff]   ;;  %v5688_v37 = vld [vmem:[#allocation11 + $0x8c0] ss:$8 sps:$4 sm:$0xff]  }
 0x8d8   : > { %v6728_v3 = vadd.f32 %v3258_v44, %v6684_v63  ;;  %v3262_v51 = vadd.f32 %v3261_v12, %v3138_v1  ;;  %v5685_v1 = vld [vmem:[#allocation11 + $0x8b0] ss:$8 sps:$4 sm:$0xff]   ;;  %v5696_v10 = vld [vmem:[#allocation11 + $0x8e4] ss:$8 sps:$4 sm:$0xff]  }
 0x8d9   : > { %v4917_v13 = vpack.c.bf16 %v3266_v11, %v3266_v11  ;;  %v3267_v17 = vadd.f32 %v3260_v47, %v6689_v8  ;;  %v5691_v44 = vld [vmem:[#allocation11 + $0x8d0] ss:$8 sps:$4 sm:$0xff]   ;;  %v5694_v11 = vld [vmem:[#allocation11 + $0x8e0] ss:$8 sps:$4 sm:$0xff]   ;;  %v5699_v47 = vld [vmem:[#allocation11 + $0x8f4] ss:$8 sps:$4 sm:$0xff]  }
 0x8da   : > { %v6732_v18 = vadd.f32 %v3262_v51, %v6691_v9  ;;  %v5697_v12 = vld [vmem:[#allocation11 + $0x8f0] ss:$8 sps:$4 sm:$0xff]   ;;  %v5702_v51 = vld [vmem:[#allocation11 + $0x904] ss:$8 sps:$4 sm:$0xff]  }
 0x8db   : > { %v3284_v19 = vrot.slane %v4917_v13, 7  ;;  %v4918_v20 = vpack.c.bf16 %v3267_v17, %v3267_v17  ;;  %v5700_v13 = vld [vmem:[#allocation11 + $0x900] ss:$8 sps:$4 sm:$0xff]   ;;  %v5705_v17 = vld [vmem:[#allocation11 + $0x914] ss:$8 sps:$4 sm:$0xff]  }
 0x8dd   : > { %v3285_v21 = vrot.slane %v3284_v19, 4  ;;  %3292 = vst [vmem:[#allocation4] sm:$0xe] %v3284_v19  ;;  %v3286_v22 = vrot.slane %v4918_v20, 7  ;;  %v5703_v19 = vld [vmem:[#allocation11 + $0x910] ss:$8 sps:$4 sm:$0xff]  }
 0x8de   : > { %v5708_v20 = vld [vmem:[#allocation11 + $0x924] ss:$8 sps:$4 sm:$0xff]  }
 0x8df   : > { %v3287_v50 = vsel %vm6591_vm3, %v3285_v21, %v3286_v22  ;;  %v3288_v23 = vrot.slane %v3286_v22, 4  ;;  %v5706_v21 = vld [vmem:[#allocation11 + $0x920] ss:$8 sps:$4 sm:$0xff]   ;;  %v5711_v22 = vld [vmem:[#allocation11 + $0x934] ss:$8 sps:$4 sm:$0xff]  }
 0x8e0   : > { %3293 = vst [vmem:[#allocation4 + $0x4] sm:$0xf] %v3287_v50  ;;  %v5709_v50 = vld [vmem:[#allocation11 + $0x930] ss:$8 sps:$4 sm:$0xff]  }
 0x8e1   : > { %3294 = vst [vmem:[#allocation4 + $0x8] sm:$0x1] %v3288_v23  ;;  %v5714_v23 = vld [vmem:[#allocation11 + $0x944] ss:$8 sps:$4 sm:$0xff]  }
 0x8e4   : > { %v3297_v63 = vld [vmem:[#allocation4] sm:$0xf] }
 0x8e5   : > { %v3300_v60 = vld [vmem:[#allocation4] sm:$0xe] }
 0x8e6   : > { %v3302_v15 = vld [vmem:[#allocation4] sm:$0xc] }
 0x8e7   : > { %v3298_v24 = vld [vmem:[#allocation4 + $0x4] sm:$0xf] }
 0x8e8   : > { %v4793_v14 = vcombine.low %v3297_v63, %v3298_v24  ;;  %v5672_v8 = vld [vmem:[#allocation4 + $0x8] ss:$0 sps:$4 sm:$0x11]   ;;  %v4795_v2 = vcombine.low %v3300_v60, %v3298_v24  ;;  %v4797_v25 = vcombine.low %v3302_v15, %v3298_v24  ;;  %v5676_v55 = vld [vmem:[#allocation4] sm:$0xff]   ;;  %v5717_v60 = vld [vmem:[#allocation11 + $0x954] ss:$8 sps:$4 sm:$0xff]  }
 0x8e9   : > { %v5678_v9 = vld [vmem:[#allocation4 + $0x8] ss:$0 sps:$4 sm:$0x33]   ;;  %v3325_v59 = vshll.u32 %v5672_v8, 16  ;;  %v3334_v34 = vrot.slane %v5672_v8, 1 }
 0x8ea   : > { %v3320_v26 = vshll.u32 %v4793_v14, 16  ;;  %v3341_v27 = vshrl.u32 %v4795_v2, 16  ;;  %v3344_v28 = vshll.u32 %v4795_v2, 16  ;;  %v3349_v4 = vshrl.u32 %v5678_v9, 16  ;;  %v5712_v63 = vld [vmem:[#allocation11 + $0x940] ss:$8 sps:$4 sm:$0xff]  }
 0x8eb   : > { %v3352_v29 = vshll.u32 %v5678_v9, 16  ;;  %v3333_v54 = vrot.slane %v4795_v2, 1  ;;  %v3318_v30 = vshrl.u32 %v4793_v14, 16  ;;  %v3361_v40 = vrot.slane %v4797_v25, 2  ;;  %v5715_v24 = vld [vmem:[#allocation11 + $0x950] ss:$8 sps:$4 sm:$0xff]  }
 0x8ec   : > { %v3322_v32 = vrot.slane %v3320_v26, 1  ;;  %v3343_v33 = vrot.slane %v3341_v27, 1  ;;  %v3346_v35 = vrot.slane %v3344_v28, 2  ;;  %v3351_v36 = vrot.slane %v3349_v4, 1  ;;  %v5720_v15 = vld [vmem:[#allocation11 + $0x964] ss:$8 sps:$4 sm:$0xff]  }
 0x8ed   : > { %v3354_v39 = vrot.slane %v3352_v29, 2  ;;  %v3327_v41 = vrot.slane %v3325_v59, 1  ;;  %v6737_v43 = vsel %vm652_vm6, %v3333_v54, %v3334_v34  ;;  %v3362_v16 = vrot.slane %v5678_v9, 2  ;;  %v5718_v14 = vld [vmem:[#allocation11 + $0x960] ss:$8 sps:$4 sm:$0xff]  }
 0x8ee   : > { %v3323_v62 = vor.u32 %v3322_v32, %v3318_v30  ;;  %v3347_v48 = vor.u32 %v3346_v35, %v3343_v33  ;;  %v5723_v8 = vld [vmem:[#allocation11 + $0x974] ss:$8 sps:$4 sm:$0xff]   ;;  %v5721_v2 = vld [vmem:[#allocation11 + $0x970] ss:$8 sps:$4 sm:$0xff]   ;;  %v5726_v9 = vld [vmem:[#allocation11 + $0x984] ss:$8 sps:$4 sm:$0xff]  }
 0x8ef   : > { %v3355_v52 = vor.u32 %v3354_v39, %v3351_v36  ;;  %v6741_v46 = vsel %vm682_vm7, %v3361_v40, %v3362_v16  ;;  %v5724_v25 = vld [vmem:[#allocation11 + $0x980] ss:$8 sps:$4 sm:$0xff]   ;;  %v5729_v26 = vld [vmem:[#allocation11 + $0x994] ss:$8 sps:$4 sm:$0xff]   ;;  %v5727_v59 = vld [vmem:[#allocation11 + $0x990] ss:$8 sps:$4 sm:$0xff]  }
 0x8f0   : > { %v3328_v53 = vsel %vm635_vm4, %v3323_v62, %v3327_v41  ;;  %v5732_v27 = vld [vmem:[#allocation11 + $0x9a4] ss:$8 sps:$4 sm:$0xff]   ;;  %v5730_v28 = vld [vmem:[#allocation11 + $0x9a0] ss:$8 sps:$4 sm:$0xff]   ;;  %v5735_v4 = vld [vmem:[#allocation11 + $0x9b4] ss:$8 sps:$4 sm:$0xff]  }
 0x8f1   : > { %3891 = vmatprep.mubr.bf16.mxu0 %v3328_v53  ;;  %v3356_v57 = vsel %vm660_vm5, %v3347_v48, %v3355_v52  ;;  %v5733_v29 = vld [vmem:[#allocation11 + $0x9b0] ss:$8 sps:$4 sm:$0xff]   ;;  %v5738_v54 = vld [vmem:[#allocation11 + $0x9c4] ss:$8 sps:$4 sm:$0xff]   ;;  %v5736_v30 = vld [vmem:[#allocation11 + $0x9c0] ss:$8 sps:$4 sm:$0xff]  }
 0x8f2   : > { %3892 = vmatmul.mubr.bf16.vlgmr.msra.gmra.mrb[16].mxu0 %v5676_v55  ;;  %v5741_v32 = vld [vmem:[#allocation11 + $0x9d4] ss:$8 sps:$4 sm:$0xff]   ;;  %v5739_v33 = vld [vmem:[#allocation11 + $0x9d0] ss:$8 sps:$4 sm:$0xff]   ;;  %v5744_v34 = vld [vmem:[#allocation11 + $0x9e4] ss:$8 sps:$4 sm:$0xff]  }
 0x8f3   : > { %3903 = vmatpush1.bf16.msra.mxu0 %v5673_v45  ;;  %3934 = vmatprep.mubr.bf16.mxu0 %v3356_v57  ;;  %v5747_v35 = vld [vmem:[#allocation11 + $0x9f4] ss:$8 sps:$4 sm:$0xff]   ;;  %v5745_v36 = vld [vmem:[#allocation11 + $0x9f0] ss:$8 sps:$4 sm:$0xff]  }
 0x8f4   : > { %3904 = vmatprep.subr.bf16.mxu0 %v5681_v56  ;;  %v5751_v39 = vld [vmem:[#allocation14 + $0x184] ss:$8 sps:$4 sm:$0xff]   ;;  %v5749_v40 = vld [vmem:[#allocation14 + $0x180] ss:$8 sps:$4 sm:$0xff]   ;;  %v5754_v62 = vld [vmem:[#allocation14 + $0x194] ss:$8 sps:$4 sm:$0xff]  }
 0x8f5   : > { %4110 = vmatprep.subr.bf16.mxu1 %v5751_v39  ;;  %v5752_v41 = vld [vmem:[#allocation14 + $0x190] ss:$8 sps:$4 sm:$0xff]   ;;  %v5755_v16 = vld [vmem:[#allocation14 + $0x1a0] ss:$8 sps:$4 sm:$0xff]   ;;  %v5760_v45 = vld [vmem:[#allocation14 + $0x1b4] ss:$8 sps:$4 sm:$0xff]  }
 0x8f6   : > { %4111 = vmatpush1.bf16.msra.mxu1 %v5749_v40  ;;  %v5758_v48 = vld [vmem:[#allocation14 + $0x1b0] ss:$8 sps:$4 sm:$0xff]   ;;  %v5761_v52 = vld [vmem:[#allocation14 + $0x1c0] ss:$8 sps:$4 sm:$0xff]   ;;  %v5763_v53 = vld [vmem:[#allocation14 + $0x1c4] ss:$8 sps:$4 sm:$0xff]  }
 0x8f7   : > { %3905 = vmatpush1.bf16.msra.mxu0 %v5679_v58  ;;  %4112 = vmatprep.subr.bf16.mxu1 %v5754_v62  ;;  %v5766_v55 = vld [vmem:[#allocation14 + $0x1d4] ss:$8 sps:$4 sm:$0xff]   ;;  %v5764_v56 = vld [vmem:[#allocation14 + $0x1d0] ss:$8 sps:$4 sm:$0xff]   ;;  %v5767_v57 = vld [vmem:[#allocation14 + $0x1e0] ss:$8 sps:$4 sm:$0xff]  }
 0x8f8   : > { %3906 = vmatprep.subr.bf16.mxu0 %v5684_v61  ;;  %v5772_v58 = vld [vmem:[#allocation14 + $0x1f4] ss:$8 sps:$4 sm:$0xff]   ;;  %v5770_v61 = vld [vmem:[#allocation14 + $0x1f0] ss:$8 sps:$4 sm:$0xff]  }
 0x8fa   : > { %4113 = vmatpush1.bf16.msra.mxu1 %v5752_v41 }
 0x8fb   : > { %3907 = vmatpush1.bf16.msra.mxu0 %v5682_v5  ;;  %v3447_v5 = vld [vmem:[#allocation13 + $0x6] sm:$0x3] }
 0x8fc   : > { %3908 = vmatprep.subr.bf16.mxu0 %v5687_v6  ;;  %v3456_v6 = vrot.slane %v3447_v5, %v6622_v38 }
 0x8ff   : > { %3909 = vmatpush1.bf16.msra.mxu0 %v5685_v1 }
 0x900   : > { %3910 = vmatprep.subr.bf16.mxu0 %v5690_v7 }
 0x903   : > { %3911 = vmatpush1.bf16.msra.mxu0 %v5688_v37 }
 0x904   : > { %3912 = vmatprep.subr.bf16.mxu0 %v5693_v42 }
 0x907   : > { %3913 = vmatpush1.bf16.msra.mxu0 %v5691_v44 }
 0x908   : > { %3914 = vmatprep.subr.bf16.mxu0 %v5696_v10 }
 0x90b   : > { %3915 = vmatpush1.bf16.msra.mxu0 %v5694_v11 }
 0x90c   : > { %3916 = vmatprep.subr.bf16.mxu0 %v5699_v47 }
 0x90f   : > { %3917 = vmatpush1.bf16.msra.mxu0 %v5697_v12  ;;  %v3452_v12 = vrot.slane %v3447_v5, %v6625_v49  ;;  %v5774_v49 = vld [vmem:[#allocation17 + $0x8] sm:$0xff]  }
 0x910   : > { %3918 = vmatprep.subr.bf16.mxu0 %v5702_v51 }
 0x913   : > { %3919 = vmatpush1.bf16.msra.mxu0 %v5700_v13 }
 0x914   : > { %3920 = vmatprep.subr.bf16.mxu0 %v5705_v17 }
 0x917   : > { %3921 = vmatpush1.bf16.msra.mxu0 %v5703_v19 }
 0x918   : > { %3922 = vmatprep.subr.bf16.mxu0 %v5708_v20 }
 0x91b   : > { %3923 = vmatpush1.bf16.msra.mxu0 %v5706_v21 }
 0x91c   : > { %3924 = vmatprep.subr.bf16.mxu0 %v5711_v22 }
 0x91f   : > { %3925 = vmatpush1.bf16.msra.mxu0 %v5709_v50 }
 0x920   : > { %3926 = vmatprep.subr.bf16.mxu0 %v5714_v23 }
 0x923   : > { %3927 = vmatpush1.bf16.msra.mxu0 %v5712_v63 }
 0x924   : > { %3928 = vmatprep.subr.bf16.mxu0 %v5717_v60 }
 0x927   : > { %3929 = vmatpush1.bf16.msra.mxu0 %v5715_v24 }
 0x928   : > { %3930 = vmatprep.subr.bf16.mxu0 %v5720_v15  ;;  %v5773_v15 = vld [vmem:[#allocation17] sm:$0xff]  }
 0x92b   : > { %3931 = vmatpush1.bf16.msra.mxu0 %v5718_v14 }
 0x92c   : > { %3932 = vmatprep.subr.bf16.mxu0 %v5723_v8  ;;  %v5775_v8 = vld [vmem:[#allocation17 + $0x10] sm:$0xff]  }
 0x92f   : > { %3933 = vmatpush1.bf16.msra.mxu0 %v5721_v2  ;;  %v5776_v2 = vld [vmem:[#allocation17 + $0x18] sm:$0xff]  }
 0x930   : > { %3945 = vmatprep.subr.bf16.mxu0 %v5726_v9  ;;  %v5777_v9 = vld [vmem:[#allocation17 + $0x20] sm:$0xff]  }
 0x932   : > { %3935 = vmatmul.mubr.bf16.vlgmr.msra.gmra.mrb[16].mxu0 %v6737_v43  ;;  %v5757_v43 = vld [vmem:[#allocation14 + $0x1a4] ss:$8 sps:$4 sm:$0xff]  }
 0x933   : > { %3946 = vmatpush1.bf16.msra.mxu0 %v5724_v25  ;;  %3977 = vmatprep.mubr.bf16.mxu0 %v6184_v31  ;;  %v5742_v31 = vld [vmem:[#allocation11 + $0x9e0] ss:$8 sps:$4 sm:$0xff]   ;;  %v5778_v25 = vld [vmem:[#allocation17 + $0x28] sm:$0xff]  }
 0x934   : > { %3947 = vmatprep.subr.bf16.mxu0 %v5729_v26  ;;  %4114 = vmatprep.subr.bf16.mxu1 %v5757_v43  ;;  %v5779_v26 = vld [vmem:[#allocation17 + $0x30] sm:$0xff]  }
 0x935   : > { %4115 = vmatpush1.bf16.msra.mxu1 %v5755_v16 }
 0x936   : > { %4116 = vmatprep.subr.bf16.mxu1 %v5760_v45 }
 0x937   : > { %3948 = vmatpush1.bf16.msra.mxu0 %v5727_v59  ;;  %v5780_v59 = vld [vmem:[#allocation17 + $0x38] sm:$0xff]  }
 0x938   : > { %3949 = vmatprep.subr.bf16.mxu0 %v5732_v27  ;;  %v4023_v27 = vld [vmem:[#allocation16 + $0x6] sm:$0x3] }
 0x939   : > { %4117 = vmatpush1.bf16.msra.mxu1 %v5758_v48 }
 0x93a   : > { %4118 = vmatprep.subr.bf16.mxu1 %v5763_v53 }
 0x93b   : > { %3950 = vmatpush1.bf16.msra.mxu0 %v5730_v28  ;;  %v4028_v28 = vrot.slane %v4023_v27, %v6622_v38 }
 0x93c   : > { %3951 = vmatprep.subr.bf16.mxu0 %v5735_v4 }
 0x93d   : > { %4119 = vmatpush1.bf16.msra.mxu1 %v5761_v52 }
 0x93e   : > { %4120 = vmatprep.subr.bf16.mxu1 %v5766_v55 }
 0x93f   : > { %3952 = vmatpush1.bf16.msra.mxu0 %v5733_v29 }
 0x940   : > { %3953 = vmatprep.subr.bf16.mxu0 %v5738_v54 }
 0x941   : > { %4121 = vmatpush1.bf16.msra.mxu1 %v5764_v56 }
 0x943   : > { %3954 = vmatpush1.bf16.msra.mxu0 %v5736_v30 }
 0x944   : > { %3955 = vmatprep.subr.bf16.mxu0 %v5741_v32 }
 0x947   : > { %3956 = vmatpush1.bf16.msra.mxu0 %v5739_v33 }
 0x948   : > { %3957 = vmatprep.subr.bf16.mxu0 %v5744_v34 }
 0x94b   : > { %3958 = vmatpush1.bf16.msra.mxu0 %v5742_v31 }
 0x94c   : > { %3959 = vmatprep.subr.bf16.mxu0 %v5747_v35 }
 0x94f   : > { %3960 = vmatpush1.bf16.msra.mxu0 %v5745_v36 }
 0x952   : > { %3978 = vmatmul.mubr.bf16.vlgmr.msra.gmra.mrb[16].mxu0 %v6741_v46  ;;  %v5769_v46 = vld [vmem:[#allocation14 + $0x1e4] ss:$8 sps:$4 sm:$0xff]  }
 0x953   : > { %4122 = vmatprep.subr.bf16.mxu1 %v5769_v46 }
 0x954   : > { %4123 = vmatpush1.bf16.msra.mxu1 %v5767_v57 }
 0x955   : > { %4124 = vmatprep.subr.bf16.mxu1 %v5772_v58 }
 0x958   : > { %4125 = vmatpush1.bf16.msra.mxu1 %v5770_v61 }
 0x959   : > { %4958 = vmatprep.subr.bf16.mxu1 %v6182_v0 }
 0xa25   : > { %v3979_v1 = vpop.f32.mrb[16].mxu0 }
 0xa26   : > { %v3981_v7 = vpop.f32.mrb[17].mxu0  ;;  %v4990_v51 = vadd.f32 %v3979_v1, %v3452_v12 }
 0xa27   : > { %v4991_v37 = vadd.f32 %v3981_v7, %v3456_v6  ;;  %v3983_v42 = vpop.f32.mrb[18].mxu0 }
 0xa28   : > { %v3985_v44 = vpop.f32.mrb[19].mxu0  ;;  %v4992_v17 = vadd.f32 %v3983_v42, %v3452_v12 }
 0xa29   : > { %v4878_v10 = vmul.f32 -1.442695, %v4991_v37  ;;  %v4993_v11 = vadd.f32 %v3985_v44, %v3456_v6 }
 0xa2b   : > { %5817 = vpow2.f32 %v4878_v10  ;;  %v4879_v47 = vmul.f32 -1.442695, %v4993_v11 }
 0xa2d   : > { %5819 = vpow2.f32 %v4879_v47 }
 0xa2e   : > { %5821 = vtanh.f32 %v4990_v51 }
 0xa35   : > { %v5818_v13 = vpop.eup %5817 }
 0xa36   : > { %v3996_v19 = vadd.f32 1.0, %v5818_v13 }
 0xa37   : > { %v5820_v20 = vpop.eup %5819 }
 0xa38   : > { %5823 = vrcp.f32 %v3996_v19  ;;  %v3997_v21 = vadd.f32 1.0, %v5820_v20  ;;  %v5822_v22 = vpop.eup %5821 }
 0xa39   : > { %5825 = vtanh.f32 %v4992_v17 }
 0xa3a   : > { %5827 = vrcp.f32 %v3997_v21 }
 0xa42   : > { %v5824_v50 = vpop.eup %5823 }
 0xa43   : > { %v5826_v23 = vpop.eup %5825  ;;  %v4002_v63 = vmul.f32 %v5824_v50, %v5822_v22 }
 0xa44   : > { %v5828_v60 = vpop.eup %5827 }
 0xa45   : > { %v4003_v24 = vmul.f32 %v5828_v60, %v5826_v23 }
 0xa47   : > { %v4004_v14 = vpack.c.bf16 %v4003_v24, %v4002_v63 }
 0xa49   : > { %4143 = vmatmul.mubr.bf16.vlgmr.msra.gmra.mrb[12].mxu1 %v4004_v14 }
 0xa4a   : > { %4959 = vmatpush3.bf16.msra.mxu1 %v5773_v15  ;;  %4974 = vmatprep.mubr.msk.bf16.mxu1 %vm6183_vm0, %v6182_v0 }
 0xa4b   : > { %4960 = vmatprep.subr.bf16.mxu1 %v6182_v0 }
 0xa4e   : > { %4961 = vmatpush3.bf16.msra.mxu1 %v5774_v49 }
 0xa4f   : > { %4962 = vmatprep.subr.bf16.mxu1 %v6182_v0 }
 0xa52   : > { %4963 = vmatpush3.bf16.msra.mxu1 %v5775_v8 }
 0xa53   : > { %4964 = vmatprep.subr.bf16.mxu1 %v6182_v0 }
 0xa56   : > { %4965 = vmatpush3.bf16.msra.mxu1 %v5776_v2 }
 0xa57   : > { %4966 = vmatprep.subr.bf16.mxu1 %v6182_v0 }
 0xa5a   : > { %4967 = vmatpush3.bf16.msra.mxu1 %v5777_v9 }
 0xa5b   : > { %4968 = vmatprep.subr.bf16.mxu1 %v6182_v0 }
 0xa5e   : > { %4969 = vmatpush3.bf16.msra.mxu1 %v5778_v25 }
 0xa5f   : > { %4970 = vmatprep.subr.bf16.mxu1 %v6182_v0 }
 0xa62   : > { %4971 = vmatpush3.bf16.msra.mxu1 %v5779_v26 }
 0xa63   : > { %4972 = vmatprep.subr.bf16.mxu1 %v6182_v0  ;;  %v4896_v0 = vld [vmem:[#allocation19] ss:$0 sm:$0xff] }
 0xa66   : > { %4973 = vmatpush3.bf16.msra.mxu1 %v5780_v59 }
 0xb1c   : > { %v4144_v4 = vpop.f32.mrb[12].mxu1 }
 0xb1d   : > { %v4145_v29 = vpop.f32.mrb[13].mxu1 }
 0xb1e   : > { %v4146_v54 = vadd.f32 %v4145_v29, %v4028_v28  ;;  %v4147_v30 = vpop.f32.mrb[14].mxu1 }
 0xb1f   : > { %v4148_v32 = vpop.f32.mrb[15].mxu1 }
 0xb20   : > { %v4153_v33 = vadd.f32 %v4146_v54, %v6728_v3  ;;  %v4149_v34 = vadd.f32 %v4148_v32, %v4028_v28 }
 0xb22   : > { %v4154_v31 = vadd.f32 %v4149_v34, %v6732_v18 }
 0xb24   : > { %v4159_v35 = vpack.c.bf16 %v4154_v31, %v4153_v33 }
 0xb26   : > { %4975 = vmatmul.mubr.bf16.vlgmr.msra.gmra.mrb[16].mxu1 %v4159_v35 }
 0xbf9   : > { %v4265_v38 = vpop.f32.mrb[16].mxu1 }
 0xbfa   : > { %v4266_v36 = vadd.f32 %v4896_v0, %v4265_v38  ;;  %v4976_v39 = vpop.f32.mrb[17].mxu1 }
 0xbfb   : > { %v4268_v3 = vpop.f32.mrb[18].mxu1 }
 0xbfc   : > { %4272 = vst [vmem:[%s462_s20] sm:$0xff] %v4266_v36  ;;  %v4269_v18 = vadd.f32 %v4896_v0, %v4268_v3  ;;  %v4977_v40 = vpop.f32.mrb[19].mxu1 }
 0xbfe   : > { %4273 = vst [vmem:[%s462_s20 + $0x8] sm:$0xff] %v4269_v18 }
 0xbff   : > { %6096 = shalt.err (!%p6093_p9)
}
 0xc00   : > { %s6097_s9 = scalar_lea.hbm %s6769_s17, 256  ;;  %s6101_s20 = scalar_lea.hbm %s6858_s2, 512 }
 0xc01   : > { %p6098_p4 = scmp.ne.s32.totalorder %s6769_s17, %s6097_s9  ;;  %p6102_p2 = scmp.lt.u32.totalorder %s6769_s17, %s6858_s2 }
 0xc02   : > { %p6103_p6 = scmp.lt.u32.totalorder %s6101_s20, %s6097_s9  ;;  %p6105_p10 = scmp.lt.u32.totalorder %s6097_s9, %s6769_s17 }
 0xc03   : > { %p6099_p3 = pnand %p6098_p4, %p6859_p1 }
 0xc04   : > { %p6104_p5 = por %p6103_p6, %p6102_p2 }
 0xc05   : > { %p6100_p0 = pneg %p6099_p3 }
 0xc06   : > { %p6106_p11 = por %p6105_p10, %p6104_p5 }
 0xc08   : > { %p6107_p12 = pnand %p6106_p11, %p6100_p0 }
 0xc0a   : > { %6110 = shalt.err (!%p6107_p12)
}
 0xc0b   : > { %s6186_s19 = smov 128   ;;  %s6187_s15 = smov 8  }
 0xc0c   : > { %5060 = dma.vmem_to_hbm [thread:$0]  (%p6859_p1), %s6764_s22, 256, %s6769_s17, %s4275_s1, %s6186_s19, %s6186_s19, %s6187_s15  }
 0xc0d PF: > { %s4303_s24 = sand.u32 1, %s6153_s30   ;;  %p6860_p13 = scmp.ne.s32.totalorder %s6845_s28, 0 }
 0xc0e   : > { %p6861_p8 = scmp.ge.s32.totalorder %s6165_s12, 2  ;;  %s4304_s21 = scalar_lea.sflag [#allocation7], %s4303_s24 }
 0xc10   : > { %p5092_p7 = pnand %p6861_p8, %p6860_p13 }
 0xc12   : > { %6148 = dma.done.wait (!%p5092_p7), %s4304_s21, 256  }
 0xc13   : > { %6150 = vsyncadd (!%p5092_p7), %s4304_s21, 4294967040  ;;  %p26_p9 = scmp.ge.s32.totalorder %s6460_s27, 4   ;;  %s6862_s30 = smov %s6157_s10 }
 0xc14   : > { %s6863_s10 = smov %s6161_s11  ;;  %s6864_s11 = smov %s6471_s29 }
 0xc15   : > { %s6865_s12 = smov %s6460_s27  ;;  %28 = sbr.rel (!%p26_p9) target bundleno = 13 (0xd), region = 145 }
 0xc1c   :  { %4309 = vsyncpa [#allocation6], 1 }
 0xc1d   :  { %4311 = vsyncpa [#allocation6 + $0x1], 1 }
 0xc1e   :  { %4312 = vsyncpa [#allocation9], 1 }
 0xc1f   :  { %4313 = vsyncpa [#allocation12], 1 }
 0xc20   :  { %4314 = vsyncpa [#allocation15], 1 }
 0xc21   :  { %4315 = vsyncpa [#allocation18], 1 }
 0xc22   :  { %4316 = vsyncpa [#allocation7], 1 }
 0xc23   :  { %4318 = vsyncpa [#allocation7 + $0x1], 1 }

</bundles_post_ra>
